<compile_context>
chip_gen: v7x
topology: tpu7x:2x2x1
jax: 0.10.0
libtpu: 0.0.40
codegen_flags: <defaults>
</compile_context>

<pallas_src>
import functools
import math

import jax
import jax.numpy as jnp
from jax.experimental import pallas as pl
from jax.experimental.pallas import tpu as pltpu

WIN = 2              # DecoderLayer.win_size
N_POS = WIN * WIN    # tokens per attention window (w1*w2 = 4)
LN_EPS = 1e-5        # nn.LayerNorm default eps
_INV_SQRT2 = 1.0 / math.sqrt(2.0)


# ----------------------------- in-kernel helpers -----------------------------

def _norm_rows(x):
    """Row-wise LayerNorm normalization (no affine)."""
    mu = jnp.mean(x, axis=-1, keepdims=True)
    var = jnp.mean((x - mu) ** 2, axis=-1, keepdims=True)
    return (x - mu) * jax.lax.rsqrt(var + LN_EPS)


def _gelu_exact(x):
    # nn.GELU() default = exact erf formulation
    return 0.5 * x * (1.0 + jax.lax.erf(x * _INV_SQRT2))


# ------------------------------ fused Pallas kernel ---------------------------

def _decoder_layer_kernel(*refs, layout, n_pos, m_win):
    """One grid step = (B / grid) batch elements, all rows folded on M.

    refs = (acts_ref, slab_refs..., out_ref)
      acts_ref : (6, n_rows, d_model) — [ego_l, cav_l, pos_l, ego_g, cav_g, pos_g]
      slabs    : parameter slabs, sliced statically via `layout`
      out_ref  : (1, n_rows, d_model) — globally-grouped rows of the layer output
    Row layout inside a step: row = pos * m_win + batch_local * n_win + window.
    """
    acts_ref = refs[0]
    out_ref = refs[-1]
    slabs = refs[1:-1]
    f32 = jnp.float32

    def param(name):
        i, s, n = layout[name]
        return slabs[i][:, s:s + n]

    ego_l = acts_ref[0]
    cav_l = acts_ref[1]
    pos_l = acts_ref[2]
    ego_g = acts_ref[3]
    cav_g = acts_ref[4]
    pos_g = acts_ref[5]

    hsum = param('hsum')      # (d_ff, d_ff) per-head summation (scale folded in)
    perm = param('perm')      # (n_rows, n_rows) local->global row regroup

    def cross_attention(q_in, k_in, v_in, skip, c):
        # QKV projections with the LayerNorm affine pre-folded into the weights.
        q = jnp.dot(_norm_rows(q_in), param(c + 'wq'),
                    preferred_element_type=f32) + param(c + 'bq')
        k = jnp.dot(_norm_rows(k_in), param(c + 'wk'),
                    preferred_element_type=f32) + param(c + 'bk')
        v = jnp.dot(_norm_rows(v_in), param(c + 'wv'),
                    preferred_element_type=f32) + param(c + 'bv')
        d_ff = q.shape[-1]

        # All (qpos, kpos) products via one broadcast multiply (no concats).
        prods = (q.reshape(n_pos, 1, m_win, d_ff) *
                 k.reshape(1, n_pos, m_win, d_ff))
        # Per-head segmented reduction; result replicated across each head's
        # dim_head lanes, so the softmax below runs at full lane width.
        logits = jnp.dot(prods.reshape(n_pos * n_pos * m_win, d_ff), hsum,
                         preferred_element_type=f32)
        logits = logits.reshape(n_pos, n_pos, m_win, d_ff)
        v3 = v.reshape(n_pos, m_win, d_ff)

        # Softmax over the key-position axis: leading-axis (vreg-wise) max/sum.
        mx = logits[:, 0]
        for j in range(1, n_pos):
            mx = jnp.maximum(mx, logits[:, j])
        es = [jnp.exp(logits[:, j] - mx) for j in range(n_pos)]
        den = es[0]
        for j in range(1, n_pos):
            den = den + es[j]

        # Weighted V sum (heads already on their own lane groups), then
        # normalize once with the (idle) EUP reciprocal.
        acc = es[0] * v3[0][None]
        for j in range(1, n_pos):
            acc = acc + es[j] * v3[j][None]
        a = (acc * pl.reciprocal(den, approx=True)).reshape(n_pos * m_win, d_ff)

        z = jnp.dot(a, param(c + 'wp'),
                    preferred_element_type=f32) + param(c + 'bp')
        return z + skip

    def mlp_prenorm(x, m, p):
        h = jnp.dot(x, param(m + 'w1'),
                    preferred_element_type=f32) + param(m + 'b1')
        h = _gelu_exact(h)
        y = jnp.dot(h, param(m + 'w2'),
                    preferred_element_type=f32) + param(m + 'b2')
        return _norm_rows(x + y) * param(p + 'g') + param(p + 'b')

    # --- stage 1: local 2x2 windows ---
    a1 = cross_attention(ego_l + pos_l, cav_l + pos_l, cav_l, ego_l, 'c1.')
    k1 = mlp_prenorm(a1, 'm1.', 'pn1.')

    # Local -> strided ("global") regroup with one small permutation matmul.
    k1_g = jnp.dot(perm, k1, preferred_element_type=f32)

    # --- stage 2: strided ("global") 2x2 windows ---
    a2 = cross_attention(ego_g + pos_g, k1_g + pos_g, cav_g, ego_g, 'c2.')
    k2 = mlp_prenorm(a2, 'm2.', 'pn2.')

    out_ref[0] = k2.astype(out_ref.dtype)


# ------------------------------- JAX glue --------------------------------------

def _group_local_steps(x, G):
    """'b (x w1) (y w2) d' -> (G*n_rows, d); step rows = (pos, b_local, window)."""
    B, H, W, d = x.shape
    nx, ny = H // WIN, W // WIN
    nb = B // G
    t = x.reshape(B, nx, WIN, ny, WIN, d).transpose(0, 2, 4, 1, 3, 5)
    t = t.reshape(G, nb, N_POS, nx * ny, d).transpose(0, 2, 1, 3, 4)
    return t.reshape(G * N_POS * nb * nx * ny, d)


def _group_global_steps(x, G):
    """'b (w1 x) (w2 y) d' -> (G*n_rows, d); step rows = (pos, b_local, window)."""
    B, H, W, d = x.shape
    nx, ny = H // WIN, W // WIN
    nb = B // G
    t = x.reshape(B, WIN, nx, WIN, ny, d).transpose(0, 1, 3, 2, 4, 5)
    t = t.reshape(G, nb, N_POS, nx * ny, d).transpose(0, 2, 1, 3, 4)
    return t.reshape(G * N_POS * nb * nx * ny, d)


def _ungroup_global_to_nchw(out, B, H, W, G):
    """(G, n_rows, d) globally-grouped step rows -> (B, d, H, W) NCHW directly."""
    nx, ny = H // WIN, W // WIN
    nb = B // G
    d = out.shape[-1]
    t = out.reshape(G, WIN, WIN, nb, nx, ny, d)     # (G, w1, w2, b, x, y, d)
    t = t.transpose(0, 3, 6, 1, 4, 2, 5)            # (G, b, d, w1, x, w2, y)
    return t.reshape(B, d, H, W)


def _step_perm(H, W, nb):
    """0/1 matrix P with (global step rows) = P @ (local step rows)."""
    nx, ny = H // WIN, W // WIN
    n_win = nx * ny
    m_win = nb * n_win
    h = jnp.arange(H)[:, None]
    w = jnp.arange(W)[None, :]
    p_l = (h % WIN) * WIN + (w % WIN)
    w_l = (h // WIN) * ny + (w // WIN)
    p_g = (h // nx) * WIN + (w // ny)
    w_g = (h % nx) * ny + (w % ny)
    b = jnp.arange(nb)[:, None, None]
    r_l = (p_l[None] * m_win + b * n_win + w_l[None]).reshape(-1)
    r_g = (p_g[None] * m_win + b * n_win + w_g[None]).reshape(-1)
    n_rows = N_POS * m_win
    return jnp.zeros((n_rows, n_rows), jnp.float32).at[r_g, r_l].set(1.0)


def _fold_ln_linear(ln_g, ln_b, w, b):
    """LayerNorm(x) @ W + b == norm(x) @ (g ⊙ W) + (ln_b @ W + b)."""
    w_eff = w * ln_g.reshape(-1, 1)
    b_eff = jnp.dot(ln_b.reshape(1, -1), w) + b
    return w_eff, b_eff


def _pack_slabs(named_arrays):
    """Group 2-D arrays by row count; concat along columns into few slabs.
    Returns (slab_list, {name: (slab_index, col_start, n_cols)})."""
    groups = {}
    for name, a in named_arrays:
        groups.setdefault(int(a.shape[0]), []).append((name, a))
    slabs, layout = [], {}
    for rows in sorted(groups):
        items = groups[rows]
        col = 0
        for name, a in items:
            layout[name] = (len(slabs), col, int(a.shape[1]))
            col += int(a.shape[1])
        slabs.append(jnp.concatenate([a for _, a in items], axis=1))
    return slabs, layout


def decoder_layer(ego, cav, pos, lp, heads, d_ff, core_splits=2):
    """ego, cav, pos: (B, H, W, d_model) NHWC  ->  (B, d_model, H, W)."""
    B, H, W, d_model = ego.shape
    assert H % WIN == 0 and W % WIN == 0 and d_ff % heads == 0
    nx, ny = H // WIN, W // WIN
    n_win = nx * ny
    # At most one grid step per TensorCore (2 on v7x); batches fold onto M.
    G = core_splits if (core_splits > 1 and B % core_splits == 0) else 1
    nb = B // G
    m_win = nb * n_win
    n_rows = N_POS * m_win
    dim_head = d_ff // heads
    scale = float(dim_head) ** (-0.5)

    # One packed activation tensor holding both window groupings (built for
    # free in XLA outside the kernel).
    acts = jnp.stack([
        _group_local_steps(ego, G), _group_local_steps(cav, G),
        _group_local_steps(pos, G),
        _group_global_steps(ego, G), _group_global_steps(cav, G),
        _group_global_steps(pos, G)], axis=0)

    # Per-head summation matrix, replicated to full d_ff width, scale folded.
    head_of = jnp.arange(d_ff) // dim_head
    hsum = (head_of[:, None] == head_of[None, :]).astype(jnp.float32) * scale
    perm = _step_perm(H, W, nb)

    named = [('hsum', hsum), ('perm', perm)]
    for pre, cp in (('c1.', lp['cross1']), ('c2.', lp['cross2'])):
        wq, bq = _fold_ln_linear(cp['lnq_g'], cp['lnq_b'], cp['wq'], cp['bq'])
        wk, bk = _fold_ln_linear(cp['lnk_g'], cp['lnk_b'], cp['wk'], cp['bk'])
        wv, bv = _fold_ln_linear(cp['lnv_g'], cp['lnv_b'], cp['wv'], cp['bv'])
        named += [(pre + 'wq', wq), (pre + 'bq', bq),
                  (pre + 'wk', wk), (pre + 'bk', bk),
                  (pre + 'wv', wv), (pre + 'bv', bv),
                  (pre + 'wp', cp['wp']), (pre + 'bp', cp['bp'])]
    for mpre, ppre, mp, pn in (('m1.', 'pn1.', lp['mlp1'], lp['prenorm1']),
                               ('m2.', 'pn2.', lp['mlp2'], lp['prenorm2'])):
        named += [(mpre + 'w1', mp['w1']), (mpre + 'b1', mp['b1']),
                  (mpre + 'w2', mp['w2']), (mpre + 'b2', mp['b2']),
                  (ppre + 'g', pn[0]), (ppre + 'b', pn[1])]
    slabs, layout = _pack_slabs(named)

    acts_spec = pl.BlockSpec((6, n_rows, d_model), lambda g: (0, g, 0))
    slab_specs = [pl.BlockSpec(s.shape, lambda g, nd=s.ndim: (0,) * nd)
                  for s in slabs]
    out_spec = pl.BlockSpec((1, n_rows, d_model), lambda g: (g, 0, 0))

    out = pl.pallas_call(
        functools.partial(_decoder_layer_kernel, layout=layout,
                          n_pos=N_POS, m_win=m_win),
        out_shape=jax.ShapeDtypeStruct((G, n_rows, d_model), jnp.float32),
        grid=(G,),
        in_specs=[acts_spec] + slab_specs,
        out_specs=out_spec,
        compiler_params=pltpu.CompilerParams(
            dimension_semantics=("parallel",)),
    )(acts, *slabs)

    return _ungroup_global_to_nchw(out, B, H, W, G)


def position_embedding_sine(b, H, Wd, d_model, temperature=10000.0):
    # TODO(synk): PositionEmbeddingSine source not provided in the module; this is
    # the standard DETR-style sine embedding (normalize=False) in NHWC, plain JAX.
    num_pos_feats = d_model // 2
    y_embed = jnp.broadcast_to(
        jnp.arange(1, H + 1, dtype=jnp.float32)[:, None], (H, Wd))
    x_embed = jnp.broadcast_to(
        jnp.arange(1, Wd + 1, dtype=jnp.float32)[None, :], (H, Wd))
    dim_t = jnp.arange(num_pos_feats, dtype=jnp.float32)
    dim_t = temperature ** (2.0 * jnp.floor(dim_t / 2.0) / num_pos_feats)
    pos_x = x_embed[:, :, None] / dim_t
    pos_y = y_embed[:, :, None] / dim_t
    pos_x = jnp.stack([jnp.sin(pos_x[:, :, 0::2]), jnp.cos(pos_x[:, :, 1::2])],
                      axis=3).reshape(H, Wd, -1)
    pos_y = jnp.stack([jnp.sin(pos_y[:, :, 0::2]), jnp.cos(pos_y[:, :, 1::2])],
                      axis=3).reshape(H, Wd, -1)
    pos = jnp.concatenate([pos_y, pos_x], axis=2)              # (H, W, d_model)
    return jnp.broadcast_to(pos[None], (b, H, Wd, d_model))


def transformer_decoder(ego_nchw, cav_nchw, params, heads, d_ff):
    ego = jnp.transpose(ego_nchw, (0, 2, 3, 1))                # NCHW -> NHWC
    cav = jnp.transpose(cav_nchw, (0, 2, 3, 1))
    b, H, Wd, d_model = ego.shape
    pos = position_embedding_sine(b, H, Wd, d_model)
    output = cav
    # Mirrors the reference loop exactly: each layer returns (b, d, h, w) and is
    # fed back as-is (only meaningful for num_layers == 1, same as in PyTorch).
    for lp in params['layers']:
        output = decoder_layer(ego, output, pos, lp, heads, d_ff)
    return output


# ------------------------- deterministic parameter init ------------------------

def _init_dense(key, fan_in, fan_out):
    kw, kb = jax.random.split(key)
    w = jax.random.normal(kw, (fan_in, fan_out), jnp.float32) / math.sqrt(fan_in)
    b = 0.02 * jax.random.normal(kb, (1, fan_out), jnp.float32)
    return w, b


def _init_ln(key, dim):
    kg, kb = jax.random.split(key)
    g = 1.0 + 0.1 * jax.random.normal(kg, (1, dim), jnp.float32)
    b = 0.05 * jax.random.normal(kb, (1, dim), jnp.float32)
    return g, b


def _init_cross(key, d_model, d_ff):
    ks = jax.random.split(key, 7)
    lnq_g, lnq_b = _init_ln(ks[0], d_model)
    lnk_g, lnk_b = _init_ln(ks[1], d_model)
    lnv_g, lnv_b = _init_ln(ks[2], d_model)
    wq, bq = _init_dense(ks[3], d_model, d_ff)
    wk, bk = _init_dense(ks[4], d_model, d_ff)
    wv, bv = _init_dense(ks[5], d_model, d_ff)
    wp, bp = _init_dense(ks[6], d_ff, d_model)
    return dict(lnq_g=lnq_g, lnq_b=lnq_b, wq=wq, bq=bq,
                lnk_g=lnk_g, lnk_b=lnk_b, wk=wk, bk=bk,
                lnv_g=lnv_g, lnv_b=lnv_b, wv=wv, bv=bv,
                wp=wp, bp=bp)


def _init_mlp(key, d_model):
    k1, k2 = jax.random.split(key)
    w1, b1 = _init_dense(k1, d_model, 2 * d_model)
    w2, b2 = _init_dense(k2, 2 * d_model, d_model)
    return dict(w1=w1, b1=b1, w2=w2, b2=b2)


def _init_layer(key, d_model, d_ff):
    ks = jax.random.split(key, 6)
    return dict(
        cross1=_init_cross(ks[0], d_model, d_ff),
        cross2=_init_cross(ks[1], d_model, d_ff),
        mlp1=_init_mlp(ks[2], d_model),
        mlp2=_init_mlp(ks[3], d_model),
        prenorm1=_init_ln(ks[4], d_model),
        prenorm2=_init_ln(ks[5], d_model),
    )


def init_decoder(key, d_model, d_ff, num_layers):
    keys = jax.random.split(key, num_layers)
    return dict(layers=[_init_layer(keys[i], d_model, d_ff)
                        for i in range(num_layers)])


# ------------------------------------ main -------------------------------------

if __name__ == "__main__":
    d_model, num_heads, d_ff, num_layers = 32, 2, 32, 1
    B, H, W = 2, 8, 8

    key = jax.random.PRNGKey(0)
    k_ego, k_cav, k_params = jax.random.split(key, 3)
    ego_feature = jax.random.normal(k_ego, (B, d_model, H, W), jnp.float32)  # NCHW
    cav_feature = jax.random.normal(k_cav, (B, d_model, H, W), jnp.float32)  # NCHW

    params = init_decoder(k_params, d_model, d_ff, num_layers)

    fwd = jax.jit(lambda e, c, p: transformer_decoder(e, c, p, num_heads, d_ff))
    out = fwd(ego_feature, cav_feature, params)
    jax.block_until_ready(out)
    assert out.shape == (B, d_model, H, W), out.shape
    print("KERNEL_OK")
</pallas_src>

<mosaic_0001>
module attributes {stable_mosaic.version = 11 : i64} {
  func.func @_decoder_layer_kernel(%arg0: i32, %arg1: memref<6x64x32xf32, #tpu.memory_space<vmem>>, %arg2: memref<1x576xf32, #tpu.memory_space<vmem>>, %arg3: memref<32x416xf32, #tpu.memory_space<vmem>>, %arg4: memref<64x128xf32, #tpu.memory_space<vmem>>, %arg5: memref<1x64x32xf32, #tpu.memory_space<vmem>>) attributes {dimension_semantics = [#tpu.dimension_semantics<parallel>], iteration_bounds = array<i64: 2>, scalar_prefetch = 0 : i64, scratch_operands = 0 : i64, tpu.core_type = #tpu.core_type<tc>, window_params = [{transform_indices = @transform_0, window_bounds = array<i64: 6, 64, 32>}, {pipeline_mode = #tpu.pipeline_mode<synchronous>, transform_indices = @transform_1, window_bounds = array<i64: 1, 576>}, {pipeline_mode = #tpu.pipeline_mode<synchronous>, transform_indices = @transform_2, window_bounds = array<i64: 32, 416>}, {pipeline_mode = #tpu.pipeline_mode<synchronous>, transform_indices = @transform_3, window_bounds = array<i64: 64, 128>}, {transform_indices = @transform_4, window_bounds = array<i64: 1, 64, 32>}]} {
    %c0 = arith.constant 0 : index
    %c0_0 = arith.constant 0 : index
    %c0_1 = arith.constant 0 : index
    %0 = vector.load %arg1[%c0, %c0_0, %c0_1] : memref<6x64x32xf32, #tpu.memory_space<vmem>>, vector<1x64x32xf32>
    %1 = vector.shape_cast %0 : vector<1x64x32xf32> to vector<64x32xf32>
    %c1 = arith.constant 1 : index
    %c0_2 = arith.constant 0 : index
    %c0_3 = arith.constant 0 : index
    %2 = vector.load %arg1[%c1, %c0_2, %c0_3] : memref<6x64x32xf32, #tpu.memory_space<vmem>>, vector<1x64x32xf32>
    %3 = vector.shape_cast %2 : vector<1x64x32xf32> to vector<64x32xf32>
    %c2 = arith.constant 2 : index
    %c0_4 = arith.constant 0 : index
    %c0_5 = arith.constant 0 : index
    %4 = vector.load %arg1[%c2, %c0_4, %c0_5] : memref<6x64x32xf32, #tpu.memory_space<vmem>>, vector<1x64x32xf32>
    %5 = vector.shape_cast %4 : vector<1x64x32xf32> to vector<64x32xf32>
    %c3 = arith.constant 3 : index
    %c0_6 = arith.constant 0 : index
    %c0_7 = arith.constant 0 : index
    %6 = vector.load %arg1[%c3, %c0_6, %c0_7] : memref<6x64x32xf32, #tpu.memory_space<vmem>>, vector<1x64x32xf32>
    %7 = vector.shape_cast %6 : vector<1x64x32xf32> to vector<64x32xf32>
    %c4 = arith.constant 4 : index
    %c0_8 = arith.constant 0 : index
    %c0_9 = arith.constant 0 : index
    %8 = vector.load %arg1[%c4, %c0_8, %c0_9] : memref<6x64x32xf32, #tpu.memory_space<vmem>>, vector<1x64x32xf32>
    %9 = vector.shape_cast %8 : vector<1x64x32xf32> to vector<64x32xf32>
    %c5 = arith.constant 5 : index
    %c0_10 = arith.constant 0 : index
    %c0_11 = arith.constant 0 : index
    %10 = vector.load %arg1[%c5, %c0_10, %c0_11] : memref<6x64x32xf32, #tpu.memory_space<vmem>>, vector<1x64x32xf32>
    %11 = vector.shape_cast %10 : vector<1x64x32xf32> to vector<64x32xf32>
    %c0_12 = arith.constant 0 : index
    %c0_13 = arith.constant 0 : index
    %12 = vector.load %arg3[%c0_12, %c0_13] : memref<32x416xf32, #tpu.memory_space<vmem>>, vector<32x32xf32>
    %c0_14 = arith.constant 0 : index
    %c0_15 = arith.constant 0 : index
    %13 = vector.load %arg4[%c0_14, %c0_15] : memref<64x128xf32, #tpu.memory_space<vmem>>, vector<64x64xf32>
    %14 = arith.addf %1, %5 : vector<64x32xf32>
    %15 = arith.addf %3, %5 : vector<64x32xf32>
    %cst = arith.constant dense<0.000000e+00> : vector<64xf32>
    %16 = vector.multi_reduction <add>, %14, %cst [1] : vector<64x32xf32> to vector<64xf32>
    %17 = vector.shape_cast %16 : vector<64xf32> to vector<64x1xf32>
    %cst_16 = arith.constant 3.200000e+01 : f32
    %18 = vector.broadcast %cst_16 : f32 to vector<64x1xf32>
    %19 = arith.divf %17, %18 : vector<64x1xf32>
    %20 = vector.broadcast %19 : vector<64x1xf32> to vector<64x32xf32>
    %21 = arith.subf %14, %20 : vector<64x32xf32>
    %22 = arith.mulf %21, %21 : vector<64x32xf32>
    %cst_17 = arith.constant dense<0.000000e+00> : vector<64xf32>
    %23 = vector.multi_reduction <add>, %22, %cst_17 [1] : vector<64x32xf32> to vector<64xf32>
    %24 = vector.shape_cast %23 : vector<64xf32> to vector<64x1xf32>
    %cst_18 = arith.constant 3.200000e+01 : f32
    %25 = vector.broadcast %cst_18 : f32 to vector<64x1xf32>
    %26 = arith.divf %24, %25 : vector<64x1xf32>
    %27 = vector.broadcast %19 : vector<64x1xf32> to vector<64x32xf32>
    %28 = arith.subf %14, %27 : vector<64x32xf32>
    %cst_19 = arith.constant 9.99999974E-6 : f32
    %29 = vector.broadcast %cst_19 : f32 to vector<64x1xf32>
    %30 = arith.addf %26, %29 : vector<64x1xf32>
    %31 = math.rsqrt %30 : vector<64x1xf32>
    %32 = vector.broadcast %31 : vector<64x1xf32> to vector<64x32xf32>
    %33 = arith.mulf %28, %32 : vector<64x32xf32>
    %c0_20 = arith.constant 0 : index
    %c32 = arith.constant 32 : index
    %34 = vector.load %arg3[%c0_20, %c32] : memref<32x416xf32, #tpu.memory_space<vmem>>, vector<32x32xf32>
    %cst_21 = arith.constant dense<0.000000e+00> : vector<64x32xf32>
    %35 = tpu.matmul %33, %34, %cst_21 {dimension_numbers = #tpu.dot_dimension_numbers<[1], [0], [0], [1], [0, 0, 1, 1], [], []>} : vector<64x32xf32>, vector<32x32xf32>, vector<64x32xf32> -> vector<64x32xf32>
    %c0_22 = arith.constant 0 : index
    %c0_23 = arith.constant 0 : index
    %36 = vector.load %arg2[%c0_22, %c0_23] : memref<1x576xf32, #tpu.memory_space<vmem>>, vector<1x32xf32>
    %37 = vector.broadcast %36 : vector<1x32xf32> to vector<64x32xf32>
    %38 = arith.addf %35, %37 : vector<64x32xf32>
    %cst_24 = arith.constant dense<0.000000e+00> : vector<64xf32>
    %39 = vector.multi_reduction <add>, %15, %cst_24 [1] : vector<64x32xf32> to vector<64xf32>
    %40 = vector.shape_cast %39 : vector<64xf32> to vector<64x1xf32>
    %cst_25 = arith.constant 3.200000e+01 : f32
    %41 = vector.broadcast %cst_25 : f32 to vector<64x1xf32>
    %42 = arith.divf %40, %41 : vector<64x1xf32>
    %43 = vector.broadcast %42 : vector<64x1xf32> to vector<64x32xf32>
    %44 = arith.subf %15, %43 : vector<64x32xf32>
    %45 = arith.mulf %44, %44 : vector<64x32xf32>
    %cst_26 = arith.constant dense<0.000000e+00> : vector<64xf32>
    %46 = vector.multi_reduction <add>, %45, %cst_26 [1] : vector<64x32xf32> to vector<64xf32>
    %47 = vector.shape_cast %46 : vector<64xf32> to vector<64x1xf32>
    %cst_27 = arith.constant 3.200000e+01 : f32
    %48 = vector.broadcast %cst_27 : f32 to vector<64x1xf32>
    %49 = arith.divf %47, %48 : vector<64x1xf32>
    %50 = vector.broadcast %42 : vector<64x1xf32> to vector<64x32xf32>
    %51 = arith.subf %15, %50 : vector<64x32xf32>
    %cst_28 = arith.constant 9.99999974E-6 : f32
    %52 = vector.broadcast %cst_28 : f32 to vector<64x1xf32>
    %53 = arith.addf %49, %52 : vector<64x1xf32>
    %54 = math.rsqrt %53 : vector<64x1xf32>
    %55 = vector.broadcast %54 : vector<64x1xf32> to vector<64x32xf32>
    %56 = arith.mulf %51, %55 : vector<64x32xf32>
    %c0_29 = arith.constant 0 : index
    %c64 = arith.constant 64 : index
    %57 = vector.load %arg3[%c0_29, %c64] : memref<32x416xf32, #tpu.memory_space<vmem>>, vector<32x32xf32>
    %cst_30 = arith.constant dense<0.000000e+00> : vector<64x32xf32>
    %58 = tpu.matmul %56, %57, %cst_30 {dimension_numbers = #tpu.dot_dimension_numbers<[1], [0], [0], [1], [0, 0, 1, 1], [], []>} : vector<64x32xf32>, vector<32x32xf32>, vector<64x32xf32> -> vector<64x32xf32>
    %c0_31 = arith.constant 0 : index
    %c32_32 = arith.constant 32 : index
    %59 = vector.load %arg2[%c0_31, %c32_32] : memref<1x576xf32, #tpu.memory_space<vmem>>, vector<1x32xf32>
    %60 = vector.broadcast %59 : vector<1x32xf32> to vector<64x32xf32>
    %61 = arith.addf %58, %60 : vector<64x32xf32>
    %cst_33 = arith.constant dense<0.000000e+00> : vector<64xf32>
    %62 = vector.multi_reduction <add>, %3, %cst_33 [1] : vector<64x32xf32> to vector<64xf32>
    %63 = vector.shape_cast %62 : vector<64xf32> to vector<64x1xf32>
    %cst_34 = arith.constant 3.200000e+01 : f32
    %64 = vector.broadcast %cst_34 : f32 to vector<64x1xf32>
    %65 = arith.divf %63, %64 : vector<64x1xf32>
    %66 = vector.broadcast %65 : vector<64x1xf32> to vector<64x32xf32>
    %67 = arith.subf %3, %66 : vector<64x32xf32>
    %68 = arith.mulf %67, %67 : vector<64x32xf32>
    %cst_35 = arith.constant dense<0.000000e+00> : vector<64xf32>
    %69 = vector.multi_reduction <add>, %68, %cst_35 [1] : vector<64x32xf32> to vector<64xf32>
    %70 = vector.shape_cast %69 : vector<64xf32> to vector<64x1xf32>
    %cst_36 = arith.constant 3.200000e+01 : f32
    %71 = vector.broadcast %cst_36 : f32 to vector<64x1xf32>
    %72 = arith.divf %70, %71 : vector<64x1xf32>
    %73 = vector.broadcast %65 : vector<64x1xf32> to vector<64x32xf32>
    %74 = arith.subf %3, %73 : vector<64x32xf32>
    %cst_37 = arith.constant 9.99999974E-6 : f32
    %75 = vector.broadcast %cst_37 : f32 to vector<64x1xf32>
    %76 = arith.addf %72, %75 : vector<64x1xf32>
    %77 = math.rsqrt %76 : vector<64x1xf32>
    %78 = vector.broadcast %77 : vector<64x1xf32> to vector<64x32xf32>
    %79 = arith.mulf %74, %78 : vector<64x32xf32>
    %c0_38 = arith.constant 0 : index
    %c96 = arith.constant 96 : index
    %80 = vector.load %arg3[%c0_38, %c96] : memref<32x416xf32, #tpu.memory_space<vmem>>, vector<32x32xf32>
    %cst_39 = arith.constant dense<0.000000e+00> : vector<64x32xf32>
    %81 = tpu.matmul %79, %80, %cst_39 {dimension_numbers = #tpu.dot_dimension_numbers<[1], [0], [0], [1], [0, 0, 1, 1], [], []>} : vector<64x32xf32>, vector<32x32xf32>, vector<64x32xf32> -> vector<64x32xf32>
    %c0_40 = arith.constant 0 : index
    %c64_41 = arith.constant 64 : index
    %82 = vector.load %arg2[%c0_40, %c64_41] : memref<1x576xf32, #tpu.memory_space<vmem>>, vector<1x32xf32>
    %83 = vector.broadcast %82 : vector<1x32xf32> to vector<64x32xf32>
    %84 = arith.addf %81, %83 : vector<64x32xf32>
    %85 = vector.shape_cast %38 : vector<64x32xf32> to vector<4x1x16x32xf32>
    %86 = vector.shape_cast %61 : vector<64x32xf32> to vector<1x4x16x32xf32>
    %87 = vector.broadcast %85 : vector<4x1x16x32xf32> to vector<4x4x16x32xf32>
    %88 = vector.broadcast %86 : vector<1x4x16x32xf32> to vector<4x4x16x32xf32>
    %89 = arith.mulf %87, %88 : vector<4x4x16x32xf32>
    %90 = vector.shape_cast %89 : vector<4x4x16x32xf32> to vector<256x32xf32>
    %cst_42 = arith.constant dense<0.000000e+00> : vector<256x32xf32>
    %91 = tpu.matmul %90, %12, %cst_42 {dimension_numbers = #tpu.dot_dimension_numbers<[1], [0], [0], [1], [0, 0, 1, 1], [], []>} : vector<256x32xf32>, vector<32x32xf32>, vector<256x32xf32> -> vector<256x32xf32>
    %92 = vector.shape_cast %91 : vector<256x32xf32> to vector<4x4x16x32xf32>
    %93 = vector.shape_cast %84 : vector<64x32xf32> to vector<4x16x32xf32>
    %94 = vector.extract_strided_slice %92 {offsets = [0, 0, 0, 0], sizes = [4, 1, 16, 32], strides = [1, 1, 1, 1]} : vector<4x4x16x32xf32> to vector<4x1x16x32xf32>
    %95 = vector.shape_cast %94 : vector<4x1x16x32xf32> to vector<4x16x32xf32>
    %96 = vector.extract_strided_slice %92 {offsets = [0, 1, 0, 0], sizes = [4, 1, 16, 32], strides = [1, 1, 1, 1]} : vector<4x4x16x32xf32> to vector<4x1x16x32xf32>
    %97 = vector.shape_cast %96 : vector<4x1x16x32xf32> to vector<4x16x32xf32>
    %98 = arith.maximumf %95, %97 : vector<4x16x32xf32>
    %99 = vector.extract_strided_slice %92 {offsets = [0, 2, 0, 0], sizes = [4, 1, 16, 32], strides = [1, 1, 1, 1]} : vector<4x4x16x32xf32> to vector<4x1x16x32xf32>
    %100 = vector.shape_cast %99 : vector<4x1x16x32xf32> to vector<4x16x32xf32>
    %101 = arith.maximumf %98, %100 : vector<4x16x32xf32>
    %102 = vector.extract_strided_slice %92 {offsets = [0, 3, 0, 0], sizes = [4, 1, 16, 32], strides = [1, 1, 1, 1]} : vector<4x4x16x32xf32> to vector<4x1x16x32xf32>
    %103 = vector.shape_cast %102 : vector<4x1x16x32xf32> to vector<4x16x32xf32>
    %104 = arith.maximumf %101, %103 : vector<4x16x32xf32>
    %105 = vector.extract_strided_slice %92 {offsets = [0, 0, 0, 0], sizes = [4, 1, 16, 32], strides = [1, 1, 1, 1]} : vector<4x4x16x32xf32> to vector<4x1x16x32xf32>
    %106 = vector.shape_cast %105 : vector<4x1x16x32xf32> to vector<4x16x32xf32>
    %107 = arith.subf %106, %104 : vector<4x16x32xf32>
    %108 = math.exp %107 : vector<4x16x32xf32>
    %109 = vector.extract_strided_slice %92 {offsets = [0, 1, 0, 0], sizes = [4, 1, 16, 32], strides = [1, 1, 1, 1]} : vector<4x4x16x32xf32> to vector<4x1x16x32xf32>
    %110 = vector.shape_cast %109 : vector<4x1x16x32xf32> to vector<4x16x32xf32>
    %111 = arith.subf %110, %104 : vector<4x16x32xf32>
    %112 = math.exp %111 : vector<4x16x32xf32>
    %113 = vector.extract_strided_slice %92 {offsets = [0, 2, 0, 0], sizes = [4, 1, 16, 32], strides = [1, 1, 1, 1]} : vector<4x4x16x32xf32> to vector<4x1x16x32xf32>
    %114 = vector.shape_cast %113 : vector<4x1x16x32xf32> to vector<4x16x32xf32>
    %115 = arith.subf %114, %104 : vector<4x16x32xf32>
    %116 = math.exp %115 : vector<4x16x32xf32>
    %117 = vector.extract_strided_slice %92 {offsets = [0, 3, 0, 0], sizes = [4, 1, 16, 32], strides = [1, 1, 1, 1]} : vector<4x4x16x32xf32> to vector<4x1x16x32xf32>
    %118 = vector.shape_cast %117 : vector<4x1x16x32xf32> to vector<4x16x32xf32>
    %119 = arith.subf %118, %104 : vector<4x16x32xf32>
    %120 = math.exp %119 : vector<4x16x32xf32>
    %121 = arith.addf %108, %112 : vector<4x16x32xf32>
    %122 = arith.addf %121, %116 : vector<4x16x32xf32>
    %123 = arith.addf %122, %120 : vector<4x16x32xf32>
    %124 = vector.extract_strided_slice %93 {offsets = [0, 0, 0], sizes = [1, 16, 32], strides = [1, 1, 1]} : vector<4x16x32xf32> to vector<1x16x32xf32>
    %125 = vector.shape_cast %124 : vector<1x16x32xf32> to vector<16x32xf32>
    %126 = vector.shape_cast %125 : vector<16x32xf32> to vector<1x16x32xf32>
    %127 = vector.broadcast %126 : vector<1x16x32xf32> to vector<4x16x32xf32>
    %128 = arith.mulf %108, %127 : vector<4x16x32xf32>
    %129 = vector.extract_strided_slice %93 {offsets = [1, 0, 0], sizes = [1, 16, 32], strides = [1, 1, 1]} : vector<4x16x32xf32> to vector<1x16x32xf32>
    %130 = vector.shape_cast %129 : vector<1x16x32xf32> to vector<16x32xf32>
    %131 = vector.shape_cast %130 : vector<16x32xf32> to vector<1x16x32xf32>
    %132 = vector.broadcast %131 : vector<1x16x32xf32> to vector<4x16x32xf32>
    %133 = arith.mulf %112, %132 : vector<4x16x32xf32>
    %134 = arith.addf %128, %133 : vector<4x16x32xf32>
    %135 = vector.extract_strided_slice %93 {offsets = [2, 0, 0], sizes = [1, 16, 32], strides = [1, 1, 1]} : vector<4x16x32xf32> to vector<1x16x32xf32>
    %136 = vector.shape_cast %135 : vector<1x16x32xf32> to vector<16x32xf32>
    %137 = vector.shape_cast %136 : vector<16x32xf32> to vector<1x16x32xf32>
    %138 = vector.broadcast %137 : vector<1x16x32xf32> to vector<4x16x32xf32>
    %139 = arith.mulf %116, %138 : vector<4x16x32xf32>
    %140 = arith.addf %134, %139 : vector<4x16x32xf32>
    %141 = vector.extract_strided_slice %93 {offsets = [3, 0, 0], sizes = [1, 16, 32], strides = [1, 1, 1]} : vector<4x16x32xf32> to vector<1x16x32xf32>
    %142 = vector.shape_cast %141 : vector<1x16x32xf32> to vector<16x32xf32>
    %143 = vector.shape_cast %142 : vector<16x32xf32> to vector<1x16x32xf32>
    %144 = vector.broadcast %143 : vector<1x16x32xf32> to vector<4x16x32xf32>
    %145 = arith.mulf %120, %144 : vector<4x16x32xf32>
    %146 = arith.addf %140, %145 : vector<4x16x32xf32>
    %147 = tpu.reciprocal %123 {approx = true} : vector<4x16x32xf32> -> vector<4x16x32xf32>
    %148 = arith.mulf %146, %147 : vector<4x16x32xf32>
    %149 = vector.shape_cast %148 : vector<4x16x32xf32> to vector<64x32xf32>
    %c0_43 = arith.constant 0 : index
    %c128 = arith.constant 128 : index
    %150 = vector.load %arg3[%c0_43, %c128] : memref<32x416xf32, #tpu.memory_space<vmem>>, vector<32x32xf32>
    %cst_44 = arith.constant dense<0.000000e+00> : vector<64x32xf32>
    %151 = tpu.matmul %149, %150, %cst_44 {dimension_numbers = #tpu.dot_dimension_numbers<[1], [0], [0], [1], [0, 0, 1, 1], [], []>} : vector<64x32xf32>, vector<32x32xf32>, vector<64x32xf32> -> vector<64x32xf32>
    %c0_45 = arith.constant 0 : index
    %c96_46 = arith.constant 96 : index
    %152 = vector.load %arg2[%c0_45, %c96_46] : memref<1x576xf32, #tpu.memory_space<vmem>>, vector<1x32xf32>
    %153 = vector.broadcast %152 : vector<1x32xf32> to vector<64x32xf32>
    %154 = arith.addf %151, %153 : vector<64x32xf32>
    %155 = arith.addf %154, %1 : vector<64x32xf32>
    %c0_47 = arith.constant 0 : index
    %c288 = arith.constant 288 : index
    %156 = vector.load %arg3[%c0_47, %c288] : memref<32x416xf32, #tpu.memory_space<vmem>>, vector<32x64xf32>
    %cst_48 = arith.constant dense<0.000000e+00> : vector<64x64xf32>
    %157 = tpu.matmul %155, %156, %cst_48 {dimension_numbers = #tpu.dot_dimension_numbers<[1], [0], [0], [1], [0, 0, 1, 1], [], []>} : vector<64x32xf32>, vector<32x64xf32>, vector<64x64xf32> -> vector<64x64xf32>
    %c0_49 = arith.constant 0 : index
    %c256 = arith.constant 256 : index
    %158 = vector.load %arg2[%c0_49, %c256] : memref<1x576xf32, #tpu.memory_space<vmem>>, vector<1x64xf32>
    %159 = vector.broadcast %158 : vector<1x64xf32> to vector<64x64xf32>
    %160 = arith.addf %157, %159 : vector<64x64xf32>
    %cst_50 = arith.constant 5.000000e-01 : f32
    %161 = vector.broadcast %cst_50 : f32 to vector<64x64xf32>
    %162 = arith.mulf %161, %160 : vector<64x64xf32>
    %cst_51 = arith.constant 0.707106769 : f32
    %163 = vector.broadcast %cst_51 : f32 to vector<64x64xf32>
    %164 = arith.mulf %160, %163 : vector<64x64xf32>
    %165 = math.erf %164 : vector<64x64xf32>
    %cst_52 = arith.constant 1.000000e+00 : f32
    %166 = vector.broadcast %cst_52 : f32 to vector<64x64xf32>
    %167 = arith.addf %166, %165 : vector<64x64xf32>
    %168 = arith.mulf %162, %167 : vector<64x64xf32>
    %c0_53 = arith.constant 0 : index
    %c64_54 = arith.constant 64 : index
    %169 = vector.load %arg4[%c0_53, %c64_54] : memref<64x128xf32, #tpu.memory_space<vmem>>, vector<64x32xf32>
    %cst_55 = arith.constant dense<0.000000e+00> : vector<64x32xf32>
    %170 = tpu.matmul %168, %169, %cst_55 {dimension_numbers = #tpu.dot_dimension_numbers<[1], [0], [0], [1], [0, 0, 1, 1], [], []>} : vector<64x64xf32>, vector<64x32xf32>, vector<64x32xf32> -> vector<64x32xf32>
    %c0_56 = arith.constant 0 : index
    %c320 = arith.constant 320 : index
    %171 = vector.load %arg2[%c0_56, %c320] : memref<1x576xf32, #tpu.memory_space<vmem>>, vector<1x32xf32>
    %172 = vector.broadcast %171 : vector<1x32xf32> to vector<64x32xf32>
    %173 = arith.addf %170, %172 : vector<64x32xf32>
    %174 = arith.addf %155, %173 : vector<64x32xf32>
    %cst_57 = arith.constant dense<0.000000e+00> : vector<64xf32>
    %175 = vector.multi_reduction <add>, %174, %cst_57 [1] : vector<64x32xf32> to vector<64xf32>
    %176 = vector.shape_cast %175 : vector<64xf32> to vector<64x1xf32>
    %cst_58 = arith.constant 3.200000e+01 : f32
    %177 = vector.broadcast %cst_58 : f32 to vector<64x1xf32>
    %178 = arith.divf %176, %177 : vector<64x1xf32>
    %179 = vector.broadcast %178 : vector<64x1xf32> to vector<64x32xf32>
    %180 = arith.subf %174, %179 : vector<64x32xf32>
    %181 = arith.mulf %180, %180 : vector<64x32xf32>
    %cst_59 = arith.constant dense<0.000000e+00> : vector<64xf32>
    %182 = vector.multi_reduction <add>, %181, %cst_59 [1] : vector<64x32xf32> to vector<64xf32>
    %183 = vector.shape_cast %182 : vector<64xf32> to vector<64x1xf32>
    %cst_60 = arith.constant 3.200000e+01 : f32
    %184 = vector.broadcast %cst_60 : f32 to vector<64x1xf32>
    %185 = arith.divf %183, %184 : vector<64x1xf32>
    %186 = vector.broadcast %178 : vector<64x1xf32> to vector<64x32xf32>
    %187 = arith.subf %174, %186 : vector<64x32xf32>
    %cst_61 = arith.constant 9.99999974E-6 : f32
    %188 = vector.broadcast %cst_61 : f32 to vector<64x1xf32>
    %189 = arith.addf %185, %188 : vector<64x1xf32>
    %190 = math.rsqrt %189 : vector<64x1xf32>
    %191 = vector.broadcast %190 : vector<64x1xf32> to vector<64x32xf32>
    %192 = arith.mulf %187, %191 : vector<64x32xf32>
    %c0_62 = arith.constant 0 : index
    %c352 = arith.constant 352 : index
    %193 = vector.load %arg2[%c0_62, %c352] : memref<1x576xf32, #tpu.memory_space<vmem>>, vector<1x32xf32>
    %194 = vector.broadcast %193 : vector<1x32xf32> to vector<64x32xf32>
    %195 = arith.mulf %192, %194 : vector<64x32xf32>
    %c0_63 = arith.constant 0 : index
    %c384 = arith.constant 384 : index
    %196 = vector.load %arg2[%c0_63, %c384] : memref<1x576xf32, #tpu.memory_space<vmem>>, vector<1x32xf32>
    %197 = vector.broadcast %196 : vector<1x32xf32> to vector<64x32xf32>
    %198 = arith.addf %195, %197 : vector<64x32xf32>
    %cst_64 = arith.constant dense<0.000000e+00> : vector<64x32xf32>
    %199 = tpu.matmul %13, %198, %cst_64 {dimension_numbers = #tpu.dot_dimension_numbers<[1], [0], [0], [1], [0, 0, 1, 1], [], []>} : vector<64x64xf32>, vector<64x32xf32>, vector<64x32xf32> -> vector<64x32xf32>
    %200 = arith.addf %7, %11 : vector<64x32xf32>
    %201 = arith.addf %199, %11 : vector<64x32xf32>
    %cst_65 = arith.constant dense<0.000000e+00> : vector<64xf32>
    %202 = vector.multi_reduction <add>, %200, %cst_65 [1] : vector<64x32xf32> to vector<64xf32>
    %203 = vector.shape_cast %202 : vector<64xf32> to vector<64x1xf32>
    %cst_66 = arith.constant 3.200000e+01 : f32
    %204 = vector.broadcast %cst_66 : f32 to vector<64x1xf32>
    %205 = arith.divf %203, %204 : vector<64x1xf32>
    %206 = vector.broadcast %205 : vector<64x1xf32> to vector<64x32xf32>
    %207 = arith.subf %200, %206 : vector<64x32xf32>
    %208 = arith.mulf %207, %207 : vector<64x32xf32>
    %cst_67 = arith.constant dense<0.000000e+00> : vector<64xf32>
    %209 = vector.multi_reduction <add>, %208, %cst_67 [1] : vector<64x32xf32> to vector<64xf32>
    %210 = vector.shape_cast %209 : vector<64xf32> to vector<64x1xf32>
    %cst_68 = arith.constant 3.200000e+01 : f32
    %211 = vector.broadcast %cst_68 : f32 to vector<64x1xf32>
    %212 = arith.divf %210, %211 : vector<64x1xf32>
    %213 = vector.broadcast %205 : vector<64x1xf32> to vector<64x32xf32>
    %214 = arith.subf %200, %213 : vector<64x32xf32>
    %cst_69 = arith.constant 9.99999974E-6 : f32
    %215 = vector.broadcast %cst_69 : f32 to vector<64x1xf32>
    %216 = arith.addf %212, %215 : vector<64x1xf32>
    %217 = math.rsqrt %216 : vector<64x1xf32>
    %218 = vector.broadcast %217 : vector<64x1xf32> to vector<64x32xf32>
    %219 = arith.mulf %214, %218 : vector<64x32xf32>
    %c0_70 = arith.constant 0 : index
    %c160 = arith.constant 160 : index
    %220 = vector.load %arg3[%c0_70, %c160] : memref<32x416xf32, #tpu.memory_space<vmem>>, vector<32x32xf32>
    %cst_71 = arith.constant dense<0.000000e+00> : vector<64x32xf32>
    %221 = tpu.matmul %219, %220, %cst_71 {dimension_numbers = #tpu.dot_dimension_numbers<[1], [0], [0], [1], [0, 0, 1, 1], [], []>} : vector<64x32xf32>, vector<32x32xf32>, vector<64x32xf32> -> vector<64x32xf32>
    %c0_72 = arith.constant 0 : index
    %c128_73 = arith.constant 128 : index
    %222 = vector.load %arg2[%c0_72, %c128_73] : memref<1x576xf32, #tpu.memory_space<vmem>>, vector<1x32xf32>
    %223 = vector.broadcast %222 : vector<1x32xf32> to vector<64x32xf32>
    %224 = arith.addf %221, %223 : vector<64x32xf32>
    %cst_74 = arith.constant dense<0.000000e+00> : vector<64xf32>
    %225 = vector.multi_reduction <add>, %201, %cst_74 [1] : vector<64x32xf32> to vector<64xf32>
    %226 = vector.shape_cast %225 : vector<64xf32> to vector<64x1xf32>
    %cst_75 = arith.constant 3.200000e+01 : f32
    %227 = vector.broadcast %cst_75 : f32 to vector<64x1xf32>
    %228 = arith.divf %226, %227 : vector<64x1xf32>
    %229 = vector.broadcast %228 : vector<64x1xf32> to vector<64x32xf32>
    %230 = arith.subf %201, %229 : vector<64x32xf32>
    %231 = arith.mulf %230, %230 : vector<64x32xf32>
    %cst_76 = arith.constant dense<0.000000e+00> : vector<64xf32>
    %232 = vector.multi_reduction <add>, %231, %cst_76 [1] : vector<64x32xf32> to vector<64xf32>
    %233 = vector.shape_cast %232 : vector<64xf32> to vector<64x1xf32>
    %cst_77 = arith.constant 3.200000e+01 : f32
    %234 = vector.broadcast %cst_77 : f32 to vector<64x1xf32>
    %235 = arith.divf %233, %234 : vector<64x1xf32>
    %236 = vector.broadcast %228 : vector<64x1xf32> to vector<64x32xf32>
    %237 = arith.subf %201, %236 : vector<64x32xf32>
    %cst_78 = arith.constant 9.99999974E-6 : f32
    %238 = vector.broadcast %cst_78 : f32 to vector<64x1xf32>
    %239 = arith.addf %235, %238 : vector<64x1xf32>
    %240 = math.rsqrt %239 : vector<64x1xf32>
    %241 = vector.broadcast %240 : vector<64x1xf32> to vector<64x32xf32>
    %242 = arith.mulf %237, %241 : vector<64x32xf32>
    %c0_79 = arith.constant 0 : index
    %c192 = arith.constant 192 : index
    %243 = vector.load %arg3[%c0_79, %c192] : memref<32x416xf32, #tpu.memory_space<vmem>>, vector<32x32xf32>
    %cst_80 = arith.constant dense<0.000000e+00> : vector<64x32xf32>
    %244 = tpu.matmul %242, %243, %cst_80 {dimension_numbers = #tpu.dot_dimension_numbers<[1], [0], [0], [1], [0, 0, 1, 1], [], []>} : vector<64x32xf32>, vector<32x32xf32>, vector<64x32xf32> -> vector<64x32xf32>
    %c0_81 = arith.constant 0 : index
    %c160_82 = arith.constant 160 : index
    %245 = vector.load %arg2[%c0_81, %c160_82] : memref<1x576xf32, #tpu.memory_space<vmem>>, vector<1x32xf32>
    %246 = vector.broadcast %245 : vector<1x32xf32> to vector<64x32xf32>
    %247 = arith.addf %244, %246 : vector<64x32xf32>
    %cst_83 = arith.constant dense<0.000000e+00> : vector<64xf32>
    %248 = vector.multi_reduction <add>, %9, %cst_83 [1] : vector<64x32xf32> to vector<64xf32>
    %249 = vector.shape_cast %248 : vector<64xf32> to vector<64x1xf32>
    %cst_84 = arith.constant 3.200000e+01 : f32
    %250 = vector.broadcast %cst_84 : f32 to vector<64x1xf32>
    %251 = arith.divf %249, %250 : vector<64x1xf32>
    %252 = vector.broadcast %251 : vector<64x1xf32> to vector<64x32xf32>
    %253 = arith.subf %9, %252 : vector<64x32xf32>
    %254 = arith.mulf %253, %253 : vector<64x32xf32>
    %cst_85 = arith.constant dense<0.000000e+00> : vector<64xf32>
    %255 = vector.multi_reduction <add>, %254, %cst_85 [1] : vector<64x32xf32> to vector<64xf32>
    %256 = vector.shape_cast %255 : vector<64xf32> to vector<64x1xf32>
    %cst_86 = arith.constant 3.200000e+01 : f32
    %257 = vector.broadcast %cst_86 : f32 to vector<64x1xf32>
    %258 = arith.divf %256, %257 : vector<64x1xf32>
    %259 = vector.broadcast %251 : vector<64x1xf32> to vector<64x32xf32>
    %260 = arith.subf %9, %259 : vector<64x32xf32>
    %cst_87 = arith.constant 9.99999974E-6 : f32
    %261 = vector.broadcast %cst_87 : f32 to vector<64x1xf32>
    %262 = arith.addf %258, %261 : vector<64x1xf32>
    %263 = math.rsqrt %262 : vector<64x1xf32>
    %264 = vector.broadcast %263 : vector<64x1xf32> to vector<64x32xf32>
    %265 = arith.mulf %260, %264 : vector<64x32xf32>
    %c0_88 = arith.constant 0 : index
    %c224 = arith.constant 224 : index
    %266 = vector.load %arg3[%c0_88, %c224] : memref<32x416xf32, #tpu.memory_space<vmem>>, vector<32x32xf32>
    %cst_89 = arith.constant dense<0.000000e+00> : vector<64x32xf32>
    %267 = tpu.matmul %265, %266, %cst_89 {dimension_numbers = #tpu.dot_dimension_numbers<[1], [0], [0], [1], [0, 0, 1, 1], [], []>} : vector<64x32xf32>, vector<32x32xf32>, vector<64x32xf32> -> vector<64x32xf32>
    %c0_90 = arith.constant 0 : index
    %c192_91 = arith.constant 192 : index
    %268 = vector.load %arg2[%c0_90, %c192_91] : memref<1x576xf32, #tpu.memory_space<vmem>>, vector<1x32xf32>
    %269 = vector.broadcast %268 : vector<1x32xf32> to vector<64x32xf32>
    %270 = arith.addf %267, %269 : vector<64x32xf32>
    %271 = vector.shape_cast %224 : vector<64x32xf32> to vector<4x1x16x32xf32>
    %272 = vector.shape_cast %247 : vector<64x32xf32> to vector<1x4x16x32xf32>
    %273 = vector.broadcast %271 : vector<4x1x16x32xf32> to vector<4x4x16x32xf32>
    %274 = vector.broadcast %272 : vector<1x4x16x32xf32> to vector<4x4x16x32xf32>
    %275 = arith.mulf %273, %274 : vector<4x4x16x32xf32>
    %276 = vector.shape_cast %275 : vector<4x4x16x32xf32> to vector<256x32xf32>
    %cst_92 = arith.constant dense<0.000000e+00> : vector<256x32xf32>
    %277 = tpu.matmul %276, %12, %cst_92 {dimension_numbers = #tpu.dot_dimension_numbers<[1], [0], [0], [1], [0, 0, 1, 1], [], []>} : vector<256x32xf32>, vector<32x32xf32>, vector<256x32xf32> -> vector<256x32xf32>
    %278 = vector.shape_cast %277 : vector<256x32xf32> to vector<4x4x16x32xf32>
    %279 = vector.shape_cast %270 : vector<64x32xf32> to vector<4x16x32xf32>
    %280 = vector.extract_strided_slice %278 {offsets = [0, 0, 0, 0], sizes = [4, 1, 16, 32], strides = [1, 1, 1, 1]} : vector<4x4x16x32xf32> to vector<4x1x16x32xf32>
    %281 = vector.shape_cast %280 : vector<4x1x16x32xf32> to vector<4x16x32xf32>
    %282 = vector.extract_strided_slice %278 {offsets = [0, 1, 0, 0], sizes = [4, 1, 16, 32], strides = [1, 1, 1, 1]} : vector<4x4x16x32xf32> to vector<4x1x16x32xf32>
    %283 = vector.shape_cast %282 : vector<4x1x16x32xf32> to vector<4x16x32xf32>
    %284 = arith.maximumf %281, %283 : vector<4x16x32xf32>
    %285 = vector.extract_strided_slice %278 {offsets = [0, 2, 0, 0], sizes = [4, 1, 16, 32], strides = [1, 1, 1, 1]} : vector<4x4x16x32xf32> to vector<4x1x16x32xf32>
    %286 = vector.shape_cast %285 : vector<4x1x16x32xf32> to vector<4x16x32xf32>
    %287 = arith.maximumf %284, %286 : vector<4x16x32xf32>
    %288 = vector.extract_strided_slice %278 {offsets = [0, 3, 0, 0], sizes = [4, 1, 16, 32], strides = [1, 1, 1, 1]} : vector<4x4x16x32xf32> to vector<4x1x16x32xf32>
    %289 = vector.shape_cast %288 : vector<4x1x16x32xf32> to vector<4x16x32xf32>
    %290 = arith.maximumf %287, %289 : vector<4x16x32xf32>
    %291 = vector.extract_strided_slice %278 {offsets = [0, 0, 0, 0], sizes = [4, 1, 16, 32], strides = [1, 1, 1, 1]} : vector<4x4x16x32xf32> to vector<4x1x16x32xf32>
    %292 = vector.shape_cast %291 : vector<4x1x16x32xf32> to vector<4x16x32xf32>
    %293 = arith.subf %292, %290 : vector<4x16x32xf32>
    %294 = math.exp %293 : vector<4x16x32xf32>
    %295 = vector.extract_strided_slice %278 {offsets = [0, 1, 0, 0], sizes = [4, 1, 16, 32], strides = [1, 1, 1, 1]} : vector<4x4x16x32xf32> to vector<4x1x16x32xf32>
    %296 = vector.shape_cast %295 : vector<4x1x16x32xf32> to vector<4x16x32xf32>
    %297 = arith.subf %296, %290 : vector<4x16x32xf32>
    %298 = math.exp %297 : vector<4x16x32xf32>
    %299 = vector.extract_strided_slice %278 {offsets = [0, 2, 0, 0], sizes = [4, 1, 16, 32], strides = [1, 1, 1, 1]} : vector<4x4x16x32xf32> to vector<4x1x16x32xf32>
    %300 = vector.shape_cast %299 : vector<4x1x16x32xf32> to vector<4x16x32xf32>
    %301 = arith.subf %300, %290 : vector<4x16x32xf32>
    %302 = math.exp %301 : vector<4x16x32xf32>
    %303 = vector.extract_strided_slice %278 {offsets = [0, 3, 0, 0], sizes = [4, 1, 16, 32], strides = [1, 1, 1, 1]} : vector<4x4x16x32xf32> to vector<4x1x16x32xf32>
    %304 = vector.shape_cast %303 : vector<4x1x16x32xf32> to vector<4x16x32xf32>
    %305 = arith.subf %304, %290 : vector<4x16x32xf32>
    %306 = math.exp %305 : vector<4x16x32xf32>
    %307 = arith.addf %294, %298 : vector<4x16x32xf32>
    %308 = arith.addf %307, %302 : vector<4x16x32xf32>
    %309 = arith.addf %308, %306 : vector<4x16x32xf32>
    %310 = vector.extract_strided_slice %279 {offsets = [0, 0, 0], sizes = [1, 16, 32], strides = [1, 1, 1]} : vector<4x16x32xf32> to vector<1x16x32xf32>
    %311 = vector.shape_cast %310 : vector<1x16x32xf32> to vector<16x32xf32>
    %312 = vector.shape_cast %311 : vector<16x32xf32> to vector<1x16x32xf32>
    %313 = vector.broadcast %312 : vector<1x16x32xf32> to vector<4x16x32xf32>
    %314 = arith.mulf %294, %313 : vector<4x16x32xf32>
    %315 = vector.extract_strided_slice %279 {offsets = [1, 0, 0], sizes = [1, 16, 32], strides = [1, 1, 1]} : vector<4x16x32xf32> to vector<1x16x32xf32>
    %316 = vector.shape_cast %315 : vector<1x16x32xf32> to vector<16x32xf32>
    %317 = vector.shape_cast %316 : vector<16x32xf32> to vector<1x16x32xf32>
    %318 = vector.broadcast %317 : vector<1x16x32xf32> to vector<4x16x32xf32>
    %319 = arith.mulf %298, %318 : vector<4x16x32xf32>
    %320 = arith.addf %314, %319 : vector<4x16x32xf32>
    %321 = vector.extract_strided_slice %279 {offsets = [2, 0, 0], sizes = [1, 16, 32], strides = [1, 1, 1]} : vector<4x16x32xf32> to vector<1x16x32xf32>
    %322 = vector.shape_cast %321 : vector<1x16x32xf32> to vector<16x32xf32>
    %323 = vector.shape_cast %322 : vector<16x32xf32> to vector<1x16x32xf32>
    %324 = vector.broadcast %323 : vector<1x16x32xf32> to vector<4x16x32xf32>
    %325 = arith.mulf %302, %324 : vector<4x16x32xf32>
    %326 = arith.addf %320, %325 : vector<4x16x32xf32>
    %327 = vector.extract_strided_slice %279 {offsets = [3, 0, 0], sizes = [1, 16, 32], strides = [1, 1, 1]} : vector<4x16x32xf32> to vector<1x16x32xf32>
    %328 = vector.shape_cast %327 : vector<1x16x32xf32> to vector<16x32xf32>
    %329 = vector.shape_cast %328 : vector<16x32xf32> to vector<1x16x32xf32>
    %330 = vector.broadcast %329 : vector<1x16x32xf32> to vector<4x16x32xf32>
    %331 = arith.mulf %306, %330 : vector<4x16x32xf32>
    %332 = arith.addf %326, %331 : vector<4x16x32xf32>
    %333 = tpu.reciprocal %309 {approx = true} : vector<4x16x32xf32> -> vector<4x16x32xf32>
    %334 = arith.mulf %332, %333 : vector<4x16x32xf32>
    %335 = vector.shape_cast %334 : vector<4x16x32xf32> to vector<64x32xf32>
    %c0_93 = arith.constant 0 : index
    %c256_94 = arith.constant 256 : index
    %336 = vector.load %arg3[%c0_93, %c256_94] : memref<32x416xf32, #tpu.memory_space<vmem>>, vector<32x32xf32>
    %cst_95 = arith.constant dense<0.000000e+00> : vector<64x32xf32>
    %337 = tpu.matmul %335, %336, %cst_95 {dimension_numbers = #tpu.dot_dimension_numbers<[1], [0], [0], [1], [0, 0, 1, 1], [], []>} : vector<64x32xf32>, vector<32x32xf32>, vector<64x32xf32> -> vector<64x32xf32>
    %c0_96 = arith.constant 0 : index
    %c224_97 = arith.constant 224 : index
    %338 = vector.load %arg2[%c0_96, %c224_97] : memref<1x576xf32, #tpu.memory_space<vmem>>, vector<1x32xf32>
    %339 = vector.broadcast %338 : vector<1x32xf32> to vector<64x32xf32>
    %340 = arith.addf %337, %339 : vector<64x32xf32>
    %341 = arith.addf %340, %7 : vector<64x32xf32>
    %c0_98 = arith.constant 0 : index
    %c352_99 = arith.constant 352 : index
    %342 = vector.load %arg3[%c0_98, %c352_99] : memref<32x416xf32, #tpu.memory_space<vmem>>, vector<32x64xf32>
    %cst_100 = arith.constant dense<0.000000e+00> : vector<64x64xf32>
    %343 = tpu.matmul %341, %342, %cst_100 {dimension_numbers = #tpu.dot_dimension_numbers<[1], [0], [0], [1], [0, 0, 1, 1], [], []>} : vector<64x32xf32>, vector<32x64xf32>, vector<64x64xf32> -> vector<64x64xf32>
    %c0_101 = arith.constant 0 : index
    %c416 = arith.constant 416 : index
    %344 = vector.load %arg2[%c0_101, %c416] : memref<1x576xf32, #tpu.memory_space<vmem>>, vector<1x64xf32>
    %345 = vector.broadcast %344 : vector<1x64xf32> to vector<64x64xf32>
    %346 = arith.addf %343, %345 : vector<64x64xf32>
    %cst_102 = arith.constant 5.000000e-01 : f32
    %347 = vector.broadcast %cst_102 : f32 to vector<64x64xf32>
    %348 = arith.mulf %347, %346 : vector<64x64xf32>
    %cst_103 = arith.constant 0.707106769 : f32
    %349 = vector.broadcast %cst_103 : f32 to vector<64x64xf32>
    %350 = arith.mulf %346, %349 : vector<64x64xf32>
    %351 = math.erf %350 : vector<64x64xf32>
    %cst_104 = arith.constant 1.000000e+00 : f32
    %352 = vector.broadcast %cst_104 : f32 to vector<64x64xf32>
    %353 = arith.addf %352, %351 : vector<64x64xf32>
    %354 = arith.mulf %348, %353 : vector<64x64xf32>
    %c0_105 = arith.constant 0 : index
    %c96_106 = arith.constant 96 : index
    %355 = vector.load %arg4[%c0_105, %c96_106] : memref<64x128xf32, #tpu.memory_space<vmem>>, vector<64x32xf32>
    %cst_107 = arith.constant dense<0.000000e+00> : vector<64x32xf32>
    %356 = tpu.matmul %354, %355, %cst_107 {dimension_numbers = #tpu.dot_dimension_numbers<[1], [0], [0], [1], [0, 0, 1, 1], [], []>} : vector<64x64xf32>, vector<64x32xf32>, vector<64x32xf32> -> vector<64x32xf32>
    %c0_108 = arith.constant 0 : index
    %c480 = arith.constant 480 : index
    %357 = vector.load %arg2[%c0_108, %c480] : memref<1x576xf32, #tpu.memory_space<vmem>>, vector<1x32xf32>
    %358 = vector.broadcast %357 : vector<1x32xf32> to vector<64x32xf32>
    %359 = arith.addf %356, %358 : vector<64x32xf32>
    %360 = arith.addf %341, %359 : vector<64x32xf32>
    %cst_109 = arith.constant dense<0.000000e+00> : vector<64xf32>
    %361 = vector.multi_reduction <add>, %360, %cst_109 [1] : vector<64x32xf32> to vector<64xf32>
    %362 = vector.shape_cast %361 : vector<64xf32> to vector<64x1xf32>
    %cst_110 = arith.constant 3.200000e+01 : f32
    %363 = vector.broadcast %cst_110 : f32 to vector<64x1xf32>
    %364 = arith.divf %362, %363 : vector<64x1xf32>
    %365 = vector.broadcast %364 : vector<64x1xf32> to vector<64x32xf32>
    %366 = arith.subf %360, %365 : vector<64x32xf32>
    %367 = arith.mulf %366, %366 : vector<64x32xf32>
    %cst_111 = arith.constant dense<0.000000e+00> : vector<64xf32>
    %368 = vector.multi_reduction <add>, %367, %cst_111 [1] : vector<64x32xf32> to vector<64xf32>
    %369 = vector.shape_cast %368 : vector<64xf32> to vector<64x1xf32>
    %cst_112 = arith.constant 3.200000e+01 : f32
    %370 = vector.broadcast %cst_112 : f32 to vector<64x1xf32>
    %371 = arith.divf %369, %370 : vector<64x1xf32>
    %372 = vector.broadcast %364 : vector<64x1xf32> to vector<64x32xf32>
    %373 = arith.subf %360, %372 : vector<64x32xf32>
    %cst_113 = arith.constant 9.99999974E-6 : f32
    %374 = vector.broadcast %cst_113 : f32 to vector<64x1xf32>
    %375 = arith.addf %371, %374 : vector<64x1xf32>
    %376 = math.rsqrt %375 : vector<64x1xf32>
    %377 = vector.broadcast %376 : vector<64x1xf32> to vector<64x32xf32>
    %378 = arith.mulf %373, %377 : vector<64x32xf32>
    %c0_114 = arith.constant 0 : index
    %c512 = arith.constant 512 : index
    %379 = vector.load %arg2[%c0_114, %c512] : memref<1x576xf32, #tpu.memory_space<vmem>>, vector<1x32xf32>
    %380 = vector.broadcast %379 : vector<1x32xf32> to vector<64x32xf32>
    %381 = arith.mulf %378, %380 : vector<64x32xf32>
    %c0_115 = arith.constant 0 : index
    %c544 = arith.constant 544 : index
    %382 = vector.load %arg2[%c0_115, %c544] : memref<1x576xf32, #tpu.memory_space<vmem>>, vector<1x32xf32>
    %383 = vector.broadcast %382 : vector<1x32xf32> to vector<64x32xf32>
    %384 = arith.addf %381, %383 : vector<64x32xf32>
    %c0_116 = arith.constant 0 : index
    %c0_117 = arith.constant 0 : index
    %c0_118 = arith.constant 0 : index
    %385 = vector.load %arg5[%c0_116, %c0_117, %c0_118] : memref<1x64x32xf32, #tpu.memory_space<vmem>>, vector<1x64x32xf32>
    %386 = vector.shape_cast %385 : vector<1x64x32xf32> to vector<64x32xf32>
    %387 = vector.shape_cast %384 : vector<64x32xf32> to vector<1x64x32xf32>
    tpu.vector_store %arg5[%c0_116, %c0_117, %c0_118], %387 {strides = array<i32>} : memref<1x64x32xf32, #tpu.memory_space<vmem>>, vector<1x64x32xf32>,
    return
  }
  func.func @transform_0(%arg0: i32) -> (i32, i32, i32) {
    %c0_i32 = arith.constant 0 : i32
    %c0_i32_0 = arith.constant 0 : i32
    %c0_i32_1 = arith.constant 0 : i32
    return %c0_i32, %arg0, %c0_i32_0 : i32, i32, i32
  }
  func.func @transform_1(%arg0: i32) -> (i32, i32) {
    %c0_i32 = arith.constant 0 : i32
    %c0_i32_0 = arith.constant 0 : i32
    %c0_i32_1 = arith.constant 0 : i32
    return %c0_i32, %c0_i32_0 : i32, i32
  }
  func.func @transform_2(%arg0: i32) -> (i32, i32) {
    %c0_i32 = arith.constant 0 : i32
    %c0_i32_0 = arith.constant 0 : i32
    %c0_i32_1 = arith.constant 0 : i32
    return %c0_i32, %c0_i32_0 : i32, i32
  }
  func.func @transform_3(%arg0: i32) -> (i32, i32) {
    %c0_i32 = arith.constant 0 : i32
    %c0_i32_0 = arith.constant 0 : i32
    %c0_i32_1 = arith.constant 0 : i32
    return %c0_i32, %c0_i32_0 : i32, i32
  }
  func.func @transform_4(%arg0: i32) -> (i32, i32, i32) {
    %c0_i32 = arith.constant 0 : i32
    %c0_i32_0 = arith.constant 0 : i32
    %c0_i32_1 = arith.constant 0 : i32
    return %arg0, %c0_i32, %c0_i32_0 : i32, i32, i32
  }
}

</mosaic_0001>

<bundles_post_ra>
// kernel: _lambda_.1
= control target key start
LH: loop header
LB: loop body
LE: loop exit
PB: predicated region body
PF: predicated region fallthrough
CT: control target
= control target key end

     0   :  { %s6208_s15 = smov 0   ;;  %s6210_s16 = smov 0   ;;  %s7933_s0 = inlined_call_operand.vmem [shape: f32[6,128,32], index: 0, kind: input, shape index: {}]   ;;  %s7934_s1 = inlined_call_operand.vmem [shape: f32[1,576], index: 1, kind: input, shape index: {}]   ;;  %s7935_s2 = inlined_call_operand.vmem [shape: f32[32,416], index: 2, kind: input, shape index: {}]   ;;  %s7936_s3 = inlined_call_operand.vmem [shape: f32[64,128], index: 3, kind: input, shape index: {}]   ;;  %s7937_s4 = inlined_call_operand.vmem [shape: f32[2,64,32], index: 4, kind: output, shape index: {}]  }
   0x1   :  { %s6212_s17 = smov 0  }
   0x2 LB: > { %s4634_s18 = sadd.s32 4294967295, %s6178_s17   ;;  %s6225_s19 = sadd.s32 1, %s6178_s17   ;;  %s6178_s17 = sphi %s6212_s17, %s7940_s17   ;;  %s6174_s16 = sphi %s6210_s16, %s7939_s16   ;;  %s6170_s15 = sphi %s6208_s15, %s7938_s15  }
   0x3   : > { %s18_s20 = ssub.s32 %s6178_s17, %s6225_s19  ;;  %s21_s21 = sadd.s32 1, %s6174_s16 }
   0x4   : > { %p19_p0 = scmp.eq.s32.totalorder %s18_s20, 0  ;;  %p28_p1 = scmp.ne.s32.totalorder %s6174_s16, %s6170_s15 }
   0x5   : > { %p29_p2 = scmp.eq.s32.totalorder %s6178_s17, 0  ;;  %p4637_p4 = scmp.ge.s32.totalorder %s6178_s17, 2 }
   0x6   : > { %s6234_s22 = scalar_select %p19_p0, %s6174_s16, %s21_s21  }
   0x7   : > { %p30_p3 = por %p29_p2, %p28_p1  ;;  %152 = sbr.rel (%p4637_p4) target bundleno = 43 (0x2b), region = 28 }
   0xe   : > { %155 = sbr.rel (!%p30_p3) target bundleno = 43 (0x2b), region = 32  ;;  %s157_s23 = sand.u32 (%p30_p3), 1, %s6174_s16  }
   0xf   : > { %s4858_s24 = sshll.u32 (%p30_p3), %s6178_s17, 6  ;;  %s5644_s25 = smul.u32 (%p30_p3), 384, %s157_s23 }
  0x10   : > { %s6242_s28 = scalar_lea.vmem (%p30_p3), %s7933_s0, %s4858_s24 }
  0x11   : > { %v284_v0 = vld [vmem:[%s6242_s28] sm:$0xff] (%p30_p3)  ;;  %v286_v1 = vld [vmem:[%s6242_s28 + $0x8] sm:$0xff] (%p30_p3)  ;;  %v288_v2 = vld [vmem:[%s6242_s28 + $0x10] sm:$0xff] (%p30_p3)  ;;  %s6250_s29 = scalar_lea.vmem (%p30_p3), [#allocation2], %s5644_s25 }
  0x12   : > { %v290_v3 = vld [vmem:[%s6242_s28 + $0x18] sm:$0xff] (%p30_p3)  ;;  %v292_v4 = vld [vmem:[%s6242_s28 + $0x20] sm:$0xff] (%p30_p3)  ;;  %v294_v5 = vld [vmem:[%s6242_s28 + $0x28] sm:$0xff] (%p30_p3)  ;;  %285 = vst [vmem:[%s6250_s29] sm:$0xff] (%p30_p3), %v284_v0 }
  0x13   : > { %287 = vst [vmem:[%s6250_s29 + $0x8] sm:$0xff] (%p30_p3), %v286_v1  ;;  %289 = vst [vmem:[%s6250_s29 + $0x10] sm:$0xff] (%p30_p3), %v288_v2  ;;  %v296_v6 = vld [vmem:[%s6242_s28 + $0x30] sm:$0xff] (%p30_p3)  ;;  %v298_v7 = vld [vmem:[%s6242_s28 + $0x38] sm:$0xff] (%p30_p3) }
  0x14   : > { %291 = vst [vmem:[%s6250_s29 + $0x18] sm:$0xff] (%p30_p3), %v290_v3  ;;  %293 = vst [vmem:[%s6250_s29 + $0x20] sm:$0xff] (%p30_p3), %v292_v4  ;;  %v300_v8 = vld [vmem:[%s6242_s28 + $0x80] sm:$0xff] (%p30_p3)  ;;  %v302_v9 = vld [vmem:[%s6242_s28 + $0x88] sm:$0xff] (%p30_p3) }
  0x15   : > { %295 = vst [vmem:[%s6250_s29 + $0x28] sm:$0xff] %v294_v5  ;;  %297 = vst [vmem:[%s6250_s29 + $0x30] sm:$0xff] %v296_v6  ;;  %v304_v10 = vld [vmem:[%s6242_s28 + $0x90] sm:$0xff]  ;;  %v306_v11 = vld [vmem:[%s6242_s28 + $0x98] sm:$0xff] }
  0x16   : > { %299 = vst [vmem:[%s6250_s29 + $0x38] sm:$0xff] %v298_v7  ;;  %301 = vst [vmem:[%s6250_s29 + $0x40] sm:$0xff] %v300_v8  ;;  %v308_v12 = vld [vmem:[%s6242_s28 + $0xa0] sm:$0xff]  ;;  %v310_v13 = vld [vmem:[%s6242_s28 + $0xa8] sm:$0xff] }
  0x17   : > { %303 = vst [vmem:[%s6250_s29 + $0x48] sm:$0xff] %v302_v9  ;;  %305 = vst [vmem:[%s6250_s29 + $0x50] sm:$0xff] %v304_v10  ;;  %v312_v14 = vld [vmem:[%s6242_s28 + $0xb0] sm:$0xff]  ;;  %v314_v15 = vld [vmem:[%s6242_s28 + $0xb8] sm:$0xff] }
  0x18   : > { %307 = vst [vmem:[%s6250_s29 + $0x58] sm:$0xff] %v306_v11  ;;  %309 = vst [vmem:[%s6250_s29 + $0x60] sm:$0xff] %v308_v12  ;;  %v316_v16 = vld [vmem:[%s6242_s28 + $0x100] sm:$0xff]  ;;  %v318_v17 = vld [vmem:[%s6242_s28 + $0x108] sm:$0xff] }
  0x19   : > { %311 = vst [vmem:[%s6250_s29 + $0x68] sm:$0xff] %v310_v13  ;;  %313 = vst [vmem:[%s6250_s29 + $0x70] sm:$0xff] %v312_v14  ;;  %v320_v18 = vld [vmem:[%s6242_s28 + $0x110] sm:$0xff]  ;;  %v322_v19 = vld [vmem:[%s6242_s28 + $0x118] sm:$0xff] }
  0x1a   : > { %315 = vst [vmem:[%s6250_s29 + $0x78] sm:$0xff] %v314_v15  ;;  %317 = vst [vmem:[%s6250_s29 + $0x80] sm:$0xff] %v316_v16  ;;  %v324_v20 = vld [vmem:[%s6242_s28 + $0x120] sm:$0xff]  ;;  %v326_v21 = vld [vmem:[%s6242_s28 + $0x128] sm:$0xff] }
  0x1b   : > { %319 = vst [vmem:[%s6250_s29 + $0x88] sm:$0xff] %v318_v17  ;;  %321 = vst [vmem:[%s6250_s29 + $0x90] sm:$0xff] %v320_v18  ;;  %v328_v22 = vld [vmem:[%s6242_s28 + $0x130] sm:$0xff]  ;;  %v330_v23 = vld [vmem:[%s6242_s28 + $0x138] sm:$0xff] }
  0x1c   : > { %323 = vst [vmem:[%s6250_s29 + $0x98] sm:$0xff] %v322_v19  ;;  %325 = vst [vmem:[%s6250_s29 + $0xa0] sm:$0xff] %v324_v20  ;;  %v332_v24 = vld [vmem:[%s6242_s28 + $0x180] sm:$0xff]  ;;  %v334_v25 = vld [vmem:[%s6242_s28 + $0x188] sm:$0xff] }
  0x1d   : > { %327 = vst [vmem:[%s6250_s29 + $0xa8] sm:$0xff] %v326_v21  ;;  %329 = vst [vmem:[%s6250_s29 + $0xb0] sm:$0xff] %v328_v22  ;;  %v336_v26 = vld [vmem:[%s6242_s28 + $0x190] sm:$0xff]  ;;  %v338_v27 = vld [vmem:[%s6242_s28 + $0x198] sm:$0xff] }
  0x1e   : > { %331 = vst [vmem:[%s6250_s29 + $0xb8] sm:$0xff] %v330_v23  ;;  %333 = vst [vmem:[%s6250_s29 + $0xc0] sm:$0xff] %v332_v24  ;;  %v340_v28 = vld [vmem:[%s6242_s28 + $0x1a0] sm:$0xff]  ;;  %v342_v29 = vld [vmem:[%s6242_s28 + $0x1a8] sm:$0xff] }
  0x1f   : > { %335 = vst [vmem:[%s6250_s29 + $0xc8] sm:$0xff] %v334_v25  ;;  %337 = vst [vmem:[%s6250_s29 + $0xd0] sm:$0xff] %v336_v26  ;;  %v344_v30 = vld [vmem:[%s6242_s28 + $0x1b0] sm:$0xff]  ;;  %v346_v31 = vld [vmem:[%s6242_s28 + $0x1b8] sm:$0xff] }
  0x20   : > { %339 = vst [vmem:[%s6250_s29 + $0xd8] sm:$0xff] %v338_v27  ;;  %341 = vst [vmem:[%s6250_s29 + $0xe0] sm:$0xff] %v340_v28  ;;  %v348_v32 = vld [vmem:[%s6242_s28 + $0x200] sm:$0xff]  ;;  %v350_v33 = vld [vmem:[%s6242_s28 + $0x208] sm:$0xff] }
  0x21   : > { %343 = vst [vmem:[%s6250_s29 + $0xe8] sm:$0xff] %v342_v29  ;;  %345 = vst [vmem:[%s6250_s29 + $0xf0] sm:$0xff] %v344_v30  ;;  %v352_v34 = vld [vmem:[%s6242_s28 + $0x210] sm:$0xff]  ;;  %v354_v35 = vld [vmem:[%s6242_s28 + $0x218] sm:$0xff] }
  0x22   : > { %347 = vst [vmem:[%s6250_s29 + $0xf8] sm:$0xff] %v346_v31  ;;  %349 = vst [vmem:[%s6250_s29 + $0x100] sm:$0xff] %v348_v32  ;;  %v356_v36 = vld [vmem:[%s6242_s28 + $0x220] sm:$0xff]  ;;  %v358_v37 = vld [vmem:[%s6242_s28 + $0x228] sm:$0xff] }
  0x23   : > { %351 = vst [vmem:[%s6250_s29 + $0x108] sm:$0xff] %v350_v33  ;;  %353 = vst [vmem:[%s6250_s29 + $0x110] sm:$0xff] %v352_v34  ;;  %v360_v38 = vld [vmem:[%s6242_s28 + $0x230] sm:$0xff]  ;;  %v362_v39 = vld [vmem:[%s6242_s28 + $0x238] sm:$0xff] }
  0x24   : > { %355 = vst [vmem:[%s6250_s29 + $0x118] sm:$0xff] %v354_v35  ;;  %357 = vst [vmem:[%s6250_s29 + $0x120] sm:$0xff] %v356_v36  ;;  %v364_v40 = vld [vmem:[%s6242_s28 + $0x280] sm:$0xff]  ;;  %v366_v41 = vld [vmem:[%s6242_s28 + $0x288] sm:$0xff] }
  0x25   : > { %359 = vst [vmem:[%s6250_s29 + $0x128] sm:$0xff] %v358_v37  ;;  %361 = vst [vmem:[%s6250_s29 + $0x130] sm:$0xff] %v360_v38  ;;  %v368_v42 = vld [vmem:[%s6242_s28 + $0x290] sm:$0xff]  ;;  %v370_v43 = vld [vmem:[%s6242_s28 + $0x298] sm:$0xff] }
  0x26   : > { %363 = vst [vmem:[%s6250_s29 + $0x138] sm:$0xff] %v362_v39  ;;  %365 = vst [vmem:[%s6250_s29 + $0x140] sm:$0xff] %v364_v40  ;;  %v372_v44 = vld [vmem:[%s6242_s28 + $0x2a0] sm:$0xff]  ;;  %v374_v45 = vld [vmem:[%s6242_s28 + $0x2a8] sm:$0xff] }
  0x27   : > { %367 = vst [vmem:[%s6250_s29 + $0x148] sm:$0xff] %v366_v41  ;;  %369 = vst [vmem:[%s6250_s29 + $0x150] sm:$0xff] %v368_v42  ;;  %v376_v46 = vld [vmem:[%s6242_s28 + $0x2b0] sm:$0xff]  ;;  %v378_v47 = vld [vmem:[%s6242_s28 + $0x2b8] sm:$0xff] }
  0x28   : > { %371 = vst [vmem:[%s6250_s29 + $0x158] sm:$0xff] %v370_v43  ;;  %373 = vst [vmem:[%s6250_s29 + $0x160] sm:$0xff] %v372_v44 }
  0x29   : > { %375 = vst [vmem:[%s6250_s29 + $0x168] sm:$0xff] %v374_v45  ;;  %377 = vst [vmem:[%s6250_s29 + $0x170] sm:$0xff] %v376_v46 }
  0x2a   : > { %379 = vst [vmem:[%s6250_s29 + $0x178] sm:$0xff] %v378_v47 }
  0x2b PF: > { %p4640_p5 = scmp.ge.s32.totalorder %s6178_s17, 1  ;;  %p384_p6 = scmp.lt.s32.totalorder %s6178_s17, 3 }
  0x2d   : > { %p385_p7 = pnand %p4640_p5, %p384_p6 }
  0x2e   : > { %s391_s30 = sand.u32 (!%p385_p7), 1, %s6170_s15   ;;  %vm503_vm0 = vcmask (!%p385_p7), 261120   ;;  %v6462_v40 = vld [vmem:[%s7935_s2 + $0x40] sm:$0xff] (!%p385_p7)  ;;  %s6180_s15 = smov (!%p385_p7), 96   ;;  %vm2201_vm1 = vcmask (!%p385_p7), 523264  }
  0x2f   : > { %388 = sbr.rel (%p385_p7) target bundleno = 3999 (0xf9f), region = 70  ;;  %v6467_v41 = vld [vmem:[%s7935_s2 + $0x60] sm:$0xff] (!%p385_p7)  ;;  %s6181_s20 = smov (!%p385_p7), 64  }
  0x30   : > { %s5645_s5 = smul.u32 (!%p385_p7), 384, %s391_s30  ;;  %v6471_v42 = vpack.i.bf16 (!%p385_p7), %v6467_v41, %v6462_v40  ;;  %v6476_v43 = vld [vmem:[%s7935_s2] sm:$0xff] (!%p385_p7)  ;;  %s6182_s24 = smov (!%p385_p7), 32  }
  0x31   : > { %v6481_v44 = vld [vmem:[%s7935_s2 + $0x20] sm:$0xff] (!%p385_p7)  ;;  %p417_p8 = scmp.lt.s32.totalorder (!%p385_p7), %s4634_s18, 1 }
  0x32   : > { %s6345_s6 = scalar_lea.vmem (!%p385_p7), [#allocation2], %s5645_s5  ;;  %v6485_v45 = vpack.i.bf16 (!%p385_p7), %v6481_v44, %v6476_v43 }
  0x33   : > { %v426_v48 = vld [vmem:[%s6345_s6 + $0x20] sm:$0xff] (!%p385_p7)  ;;  %v428_v50 = vld [vmem:[%s6345_s6 + $0x30] sm:$0xff] (!%p385_p7)  ;;  %v427_v53 = vld [vmem:[%s6345_s6 + $0x28] sm:$0xff] (!%p385_p7) }
  0x34   : > { %v4655_v49 = vld [vmem:[%s6345_s6 + $0xa0] sm:$0xff] (!%p385_p7)  ;;  %v4657_v52 = vld [vmem:[%s6345_s6 + $0xb0] sm:$0xff] (!%p385_p7)  ;;  %v4656_v54 = vld [vmem:[%s6345_s6 + $0xa8] sm:$0xff] (!%p385_p7) }
  0x35   : > { %v6350_v51 = vadd.f32 (!%p385_p7), %v4655_v49, %v426_v48  ;;  %v6355_v55 = vadd.f32 (!%p385_p7), %v4657_v52, %v428_v50  ;;  %v6357_v56 = vadd.f32 (!%p385_p7), %v4656_v54, %v427_v53  ;;  %v429_v57 = vld [vmem:[%s6345_s6 + $0x38] sm:$0xff] (!%p385_p7)  ;;  %v422_v59 = vld [vmem:[%s6345_s6] sm:$0xff] (!%p385_p7)  ;;  %v423_v5 = vld [vmem:[%s6345_s6 + $0x8] sm:$0xff] (!%p385_p7) }
  0x36   : > { %v4658_v58 = vld [vmem:[%s6345_s6 + $0xb8] sm:$0xff]  ;;  %v4651_v62 = vld [vmem:[%s6345_s6 + $0x80] sm:$0xff]  ;;  %v4652_v6 = vld [vmem:[%s6345_s6 + $0x88] sm:$0xff]  ;;  %s7942_s18 = smov (!%p417_p8, %s4634_s18), 1 }
  0x37   : > { %v516_v60 = vsel %vm503_vm0, %v6350_v51, 0.0  ;;  %v6364_v61 = vadd.f32 %v4658_v58, %v429_v57  ;;  %v6368_v63 = vld [vmem:[%s6345_s6 + $0x40] sm:$0xff]  ;;  %v522_v0 = vsel %vm503_vm0, %v6355_v55, 0.0  ;;  %v519_v1 = vsel %vm503_vm0, %v6357_v56, 0.0  ;;  %v6384_v7 = vld [vmem:[%s6345_s6 + $0x48] sm:$0xff]  ;;  %v6396_v12 = vld [vmem:[%s6345_s6 + $0x50] sm:$0xff] }
  0x38   : > { %517 = vadd.xlane.f32.xlu0 %v516_v60  ;;  %523 = vadd.xlane.f32.xlu1 %v522_v0  ;;  %v6374_v2 = vadd.f32 %v4651_v62, %v422_v59  ;;  %v6379_v4 = vadd.f32 %v4651_v62, %v6368_v63  ;;  %v6388_v9 = vadd.f32 %v4652_v6, %v423_v5  ;;  %v4653_v13 = vld [vmem:[%s6345_s6 + $0x90] sm:$0xff]  ;;  %v6400_v14 = vld [vmem:[%s6345_s6 + $0x58] sm:$0xff]  ;;  %v6414_v20 = vld [vmem:[%s6345_s6 + $0x60] sm:$0xff] }
  0x39   : > { %v525_v3 = vsel %vm503_vm0, %v6364_v61, 0.0  ;;  %v6393_v11 = vadd.f32 %v4652_v6, %v6384_v7  ;;  %v4654_v15 = vld [vmem:[%s6345_s6 + $0x98] sm:$0xff]  ;;  %v6406_v17 = vadd.f32 %v4653_v13, %v6396_v12  ;;  %v6417_v21 = vld [vmem:[%s6345_s6 + $0x68] sm:$0xff]  ;;  %v6422_v23 = vadd.f32 %v4655_v49, %v6414_v20  ;;  %v6430_v26 = vld [vmem:[%s6345_s6 + $0x70] sm:$0xff] }
  0x3a   : > { %v504_v8 = vsel %vm503_vm0, %v6374_v2, 0.0  ;;  %v761_v10 = vsel %vm503_vm0, %v6379_v4, 0.0  ;;  %v507_v16 = vsel %vm503_vm0, %v6388_v9, 0.0  ;;  %v6411_v19 = vadd.f32 %v4654_v15, %v6400_v14  ;;  %v6433_v27 = vld [vmem:[%s6345_s6 + $0x78] sm:$0xff]  ;;  %v424_v32 = vld [vmem:[%s6345_s6 + $0x10] sm:$0xff] }
  0x3b   : > { %v764_v18 = vsel %vm503_vm0, %v6393_v11, 0.0  ;;  %v767_v22 = vsel %vm503_vm0, %v6406_v17, 0.0  ;;  %v6427_v25 = vadd.f32 %v4656_v54, %v6417_v21  ;;  %v773_v28 = vsel %vm503_vm0, %v6422_v23, 0.0  ;;  %v425_v33 = vld [vmem:[%s6345_s6 + $0x18] sm:$0xff] }
  0x3c   : > { %520 = vadd.xlane.f32.xlu0 %v519_v1  ;;  %526 = vadd.xlane.f32.xlu1 %v525_v3  ;;  %v770_v24 = vsel %vm503_vm0, %v6411_v19, 0.0  ;;  %v6438_v29 = vadd.f32 %v4657_v52, %v6430_v26  ;;  %v6443_v31 = vadd.f32 %v4658_v58, %v6433_v27  ;;  %v6449_v35 = vadd.f32 %v4653_v13, %v424_v32 }
  0x3d   : > { %v776_v30 = vsel %vm503_vm0, %v6427_v25, 0.0  ;;  %v6453_v37 = vadd.f32 %v4654_v15, %v425_v33 }
  0x3e   : > { %v779_v34 = vsel %vm503_vm0, %v6438_v29, 0.0  ;;  %v782_v36 = vsel %vm503_vm0, %v6443_v31, 0.0  ;;  %v510_v38 = vsel %vm503_vm0, %v6449_v35, 0.0 }
  0x3f   : > { %v513_v39 = vsel %vm503_vm0, %v6453_v37, 0.0 }
  0x40   : > { %505 = vadd.xlane.f32.xlu0 %v504_v8  ;;  %762 = vadd.xlane.f32.xlu1 %v761_v10 }
  0x44   : > { %508 = vadd.xlane.f32.xlu0 %v507_v16  ;;  %765 = vadd.xlane.f32.xlu1 %v764_v18 }
  0x48   : > { %768 = vadd.xlane.f32.xlu0 %v767_v22  ;;  %771 = vadd.xlane.f32.xlu1 %v770_v24 }
  0x4c   : > { %774 = vadd.xlane.f32.xlu0 %v773_v28  ;;  %777 = vadd.xlane.f32.xlu1 %v776_v30 }
  0x50   : > { %780 = vadd.xlane.f32.xlu0 %v779_v34  ;;  %783 = vadd.xlane.f32.xlu1 %v782_v36 }
  0x54   : > { %511 = vadd.xlane.f32.xlu0 %v510_v38  ;;  %514 = vadd.xlane.f32.xlu1 %v513_v39 }
  0x65   : > { %5679 = vrot.lane.b32.xlu1 %v6471_v42, %s6180_s15 }
  0x6a   : > { %5674 = vrot.lane.b32.xlu0 %v6485_v45, %s6180_s15 }
  0xc5   : > { %v518_v46 = vpop.xlane.xlu0 %517  ;;  %v524_v48 = vpop.xlane.xlu1 %523 }
  0xc6   : > { %v533_v47 = vmul.f32 0.03125, %v518_v46  ;;  %v535_v49 = vmul.f32 0.03125, %v524_v48 }
  0xc8   : > { %v6492_v50 = vsub.f32 %v6350_v51, %v533_v47  ;;  %v6495_v52 = vsub.f32 %v6355_v55, %v535_v49 }
  0xc9   : > { %v521_v53 = vpop.xlane.xlu0 %520  ;;  %v527_v57 = vpop.xlane.xlu1 %526 }
  0xca   : > { %v534_v54 = vmul.f32 0.03125, %v521_v53  ;;  %v549_v58 = vmul.f32 %v6492_v50, %v6492_v50  ;;  %v536_v59 = vmul.f32 0.03125, %v527_v57  ;;  %v551_v60 = vmul.f32 %v6495_v52, %v6495_v52 }
  0xcc   : > { %v6502_v62 = vsub.f32 %v6357_v56, %v534_v54  ;;  %v565_v0 = vsel %vm503_vm0, %v549_v58, 0.0  ;;  %v6506_v51 = vsub.f32 %v6364_v61, %v536_v59  ;;  %v571_v6 = vsel %vm503_vm0, %v551_v60, 0.0 }
  0xcd   : > { %566 = vadd.xlane.f32.xlu0 %v565_v0  ;;  %v506_v55 = vpop.xlane.xlu0 %505  ;;  %v763_v3 = vpop.xlane.xlu1 %762 }
  0xce   : > { %v529_v1 = vmul.f32 0.03125, %v506_v55  ;;  %v550_v5 = vmul.f32 %v6502_v62, %v6502_v62  ;;  %v785_v8 = vmul.f32 0.03125, %v763_v3  ;;  %v552_v10 = vmul.f32 %v6506_v51, %v6506_v51 }
  0xd0   : > { %v6514_v56 = vsub.f32 %v6374_v2, %v529_v1  ;;  %v568_v13 = vsel %vm503_vm0, %v550_v5, 0.0  ;;  %v6518_v61 = vsub.f32 %v6379_v4, %v785_v8  ;;  %v574_v22 = vsel %vm503_vm0, %v552_v10, 0.0 }
  0xd1   : > { %569 = vadd.xlane.f32.xlu1 %v568_v13  ;;  %572 = vadd.xlane.f32.xlu0 %v571_v6  ;;  %v509_v15 = vpop.xlane.xlu0 %508  ;;  %v766_v18 = vpop.xlane.xlu1 %765 }
  0xd2   : > { %v530_v16 = vmul.f32 0.03125, %v509_v15  ;;  %v545_v24 = vmul.f32 %v6514_v56, %v6514_v56  ;;  %v786_v28 = vmul.f32 0.03125, %v766_v18  ;;  %v801_v2 = vmul.f32 %v6518_v61, %v6518_v61 }
  0xd4   : > { %v6526_v30 = vsub.f32 %v6388_v9, %v530_v16  ;;  %v553_v4 = vsel %vm503_vm0, %v545_v24, 0.0  ;;  %v6530_v32 = vsub.f32 %v6393_v11, %v786_v28  ;;  %v809_v38 = vsel %vm503_vm0, %v801_v2, 0.0 }
  0xd5   : > { %575 = vadd.xlane.f32.xlu1 %v574_v22  ;;  %554 = vadd.xlane.f32.xlu0 %v553_v4  ;;  %v769_v33 = vpop.xlane.xlu0 %768  ;;  %v772_v36 = vpop.xlane.xlu1 %771 }
  0xd6   : > { %v787_v34 = vmul.f32 0.03125, %v769_v33  ;;  %v546_v39 = vmul.f32 %v6526_v30, %v6526_v30  ;;  %v788_v46 = vmul.f32 0.03125, %v772_v36  ;;  %v802_v9 = vmul.f32 %v6530_v32, %v6530_v32 }
  0xd8   : > { %v6538_v47 = vsub.f32 %v6406_v17, %v787_v34  ;;  %v556_v11 = vsel %vm503_vm0, %v546_v39, 0.0  ;;  %v6542_v48 = vsub.f32 %v6411_v19, %v788_v46  ;;  %v812_v57 = vsel %vm503_vm0, %v802_v9, 0.0 }
  0xd9   : > { %810 = vadd.xlane.f32.xlu1 %v809_v38  ;;  %557 = vadd.xlane.f32.xlu0 %v556_v11  ;;  %v775_v49 = vpop.xlane.xlu0 %774  ;;  %v778_v54 = vpop.xlane.xlu1 %777 }
  0xda   : > { %v789_v53 = vmul.f32 0.03125, %v775_v49  ;;  %v803_v58 = vmul.f32 %v6538_v47, %v6538_v47  ;;  %v790_v59 = vmul.f32 0.03125, %v778_v54  ;;  %v804_v17 = vmul.f32 %v6542_v48, %v6542_v48 }
  0xdc   : > { %v6550_v60 = vsub.f32 %v6422_v23, %v789_v53  ;;  %v815_v19 = vsel %vm503_vm0, %v803_v58, 0.0  ;;  %v6554_v0 = vsub.f32 %v6427_v25, %v790_v59  ;;  %v818_v5 = vsel %vm503_vm0, %v804_v17, 0.0 }
  0xdd   : > { %813 = vadd.xlane.f32.xlu1 %v812_v57  ;;  %816 = vadd.xlane.f32.xlu0 %v815_v19  ;;  %v781_v55 = vpop.xlane.xlu0 %780  ;;  %v784_v3 = vpop.xlane.xlu1 %783  ;;  %v1009_v57 = vsel %vm503_vm0, %v6368_v63, 0.0  ;;  %v1015_v58 = vsel %vm503_vm0, %v6396_v12, 0.0  ;;  %v1018_v59 = vsel %vm503_vm0, %v6400_v14, 0.0  ;;  %v1021_v17 = vsel %vm503_vm0, %v6414_v20, 0.0 }
  0xde   : > { %v791_v1 = vmul.f32 0.03125, %v781_v55  ;;  %v805_v6 = vmul.f32 %v6550_v60, %v6550_v60  ;;  %v792_v8 = vmul.f32 0.03125, %v784_v3  ;;  %v806_v23 = vmul.f32 %v6554_v0, %v6554_v0 }
  0xdf   : > { %v1012_v19 = vsel %vm503_vm0, %v6384_v7, 0.0  ;;  %v1027_v55 = vsel %vm503_vm0, %v6430_v26, 0.0  ;;  %v1030_v3 = vsel %vm503_vm0, %v6433_v27, 0.0 }
  0xe0   : > { %v6562_v10 = vsub.f32 %v6438_v29, %v791_v1  ;;  %v821_v25 = vsel %vm503_vm0, %v805_v6, 0.0  ;;  %v6566_v13 = vsub.f32 %v6443_v31, %v792_v8  ;;  %v824_v16 = vsel %vm503_vm0, %v806_v23, 0.0 }
  0xe1   : > { %819 = vadd.xlane.f32.xlu1 %v818_v5  ;;  %822 = vadd.xlane.f32.xlu0 %v821_v25  ;;  %v512_v15 = vpop.xlane.xlu0 %511  ;;  %v515_v24 = vpop.xlane.xlu1 %514  ;;  %v1024_v1 = vsel %vm503_vm0, %v6417_v21, 0.0  ;;  %v6610_v5 = vld [vmem:[%s7934_s1] ss:$0 sm:$0xff] }
  0xe2   : > { %v807_v18 = vmul.f32 %v6562_v10, %v6562_v10  ;;  %v531_v22 = vmul.f32 0.03125, %v512_v15  ;;  %v808_v28 = vmul.f32 %v6566_v13, %v6566_v13  ;;  %v532_v29 = vmul.f32 0.03125, %v515_v24 }
  0xe4   : > { %v827_v2 = vsel %vm503_vm0, %v807_v18, 0.0  ;;  %v6575_v4 = vsub.f32 %v6449_v35, %v531_v22  ;;  %v830_v31 = vsel %vm503_vm0, %v808_v28, 0.0  ;;  %v6579_v34 = vsub.f32 %v6453_v37, %v532_v29 }
  0xe5   : > { %825 = vadd.xlane.f32.xlu1 %v824_v16  ;;  %828 = vadd.xlane.f32.xlu0 %v827_v2  ;;  %v5675_v33 = vpop.permute.xlu0 %5674  ;;  %v5680_v46 = vpop.permute.xlu1 %5679 }
  0xe6   : > { %v547_v36 = vmul.f32 %v6575_v4, %v6575_v4  ;;  %v5677_v38 = vunpack.i.h.bf16 %v5675_v33  ;;  %v5676_v39 = vunpack.i.l.bf16 %v5675_v33  ;;  %v5682_v9 = vunpack.i.h.bf16 %v5680_v46 }
  0xe7   : > { %v5681_v11 = vunpack.i.l.bf16 %v5680_v46  ;;  %v548_v54 = vmul.f32 %v6579_v34, %v6579_v34 }
  0xe8   : > { %v5496_v49 = vpack.c.bf16 %v5677_v38, %v5676_v39  ;;  %v559_v53 = vsel %vm503_vm0, %v547_v36, 0.0 }
  0xe9   : > { %831 = vadd.xlane.f32.xlu1 %v830_v31  ;;  %v5500_v35 = vpack.c.bf16 %v5682_v9, %v5681_v11  ;;  %v562_v37 = vsel %vm503_vm0, %v548_v54, 0.0 }
  0xea   : > { %5497 = vmatprep.subr.bf16.mxu0 %v5496_v49  ;;  %5640 = vmatprep.subr.bf16.mxu1 %v5496_v49 }
  0xeb   : > { %5499 = vmatpush3.bf16.msra.mxu0 %v5496_v49  ;;  %5642 = vmatpush3.bf16.msra.mxu1 %v5496_v49 }
  0xec   : > { %5501 = vmatprep.subr.bf16.mxu0 %v5500_v35  ;;  %5641 = vmatprep.subr.bf16.mxu1 %v5500_v35 }
  0xed   : > { %560 = vadd.xlane.f32.xlu1 %v559_v53 }
  0xef   : > { %5503 = vmatpush3.bf16.msra.mxu0 %v5500_v35  ;;  %5643 = vmatpush3.bf16.msra.mxu1 %v5500_v35 }
  0xf1   : > { %563 = vadd.xlane.f32.xlu1 %v562_v37 }
  0xfb   : > { %5684 = vrot.lane.b32.xlu0 %v6485_v45, %s6181_s20 }
 0x102   : > { %5689 = vrot.lane.b32.xlu1 %v6471_v42, %s6181_s20 }
 0x11a   : > { %1010 = vadd.xlane.f32.xlu0 %v1009_v57 }
 0x11e   : > { %1016 = vadd.xlane.f32.xlu0 %v1015_v58 }
 0x122   : > { %1019 = vadd.xlane.f32.xlu0 %v1018_v59 }
 0x126   : > { %1022 = vadd.xlane.f32.xlu0 %v1021_v17  ;;  %1013 = vadd.xlane.f32.xlu1 %v1012_v19 }
 0x12a   : > { %1028 = vadd.xlane.f32.xlu0 %v1027_v55  ;;  %1025 = vadd.xlane.f32.xlu1 %v1024_v1 }
 0x12e   : > { %1031 = vadd.xlane.f32.xlu1 %v1030_v3 }
 0x140   : > { %877 = vrot.lane.b32.xlu0 %v6610_v5, %s6180_s15 }
 0x15a   : > { %v567_v6 = vpop.xlane.xlu0 %566 }
 0x15b   : > { %v581_v8 = vmul.f32 0.03125, %v567_v6 }
 0x15d   : > { %v589_v23 = vadd.f32 1e-05, %v581_v8 }
 0x15e   : > { %v570_v25 = vpop.xlane.xlu1 %569  ;;  %v573_v15 = vpop.xlane.xlu0 %572 }
 0x15f   : > { %5803 = vrsqrt.f32 %v589_v23  ;;  %v582_v16 = vmul.f32 0.03125, %v570_v25  ;;  %v583_v18 = vmul.f32 0.03125, %v573_v15 }
 0x161   : > { %v590_v22 = vadd.f32 1e-05, %v582_v16  ;;  %v591_v24 = vadd.f32 1e-05, %v583_v18 }
 0x162   : > { %v576_v28 = vpop.xlane.xlu1 %575  ;;  %v555_v29 = vpop.xlane.xlu0 %554 }
 0x163   : > { %5805 = vrsqrt.f32 %v590_v22  ;;  %v584_v2 = vmul.f32 0.03125, %v576_v28  ;;  %v577_v31 = vmul.f32 0.03125, %v555_v29 }
 0x164   : > { %5807 = vrsqrt.f32 %v591_v24 }
 0x165   : > { %v592_v33 = vadd.f32 1e-05, %v584_v2  ;;  %v585_v36 = vadd.f32 1e-05, %v577_v31 }
 0x166   : > { %v811_v38 = vpop.xlane.xlu1 %810  ;;  %v558_v39 = vpop.xlane.xlu0 %557 }
 0x167   : > { %5809 = vrsqrt.f32 %v592_v33  ;;  %v833_v46 = vmul.f32 0.03125, %v811_v38  ;;  %v578_v9 = vmul.f32 0.03125, %v558_v39 }
 0x168   : > { %5811 = vrsqrt.f32 %v585_v36 }
 0x169   : > { %v5804_v11 = vpop.eup %5803  ;;  %v841_v49 = vadd.f32 1e-05, %v833_v46  ;;  %v586_v35 = vadd.f32 1e-05, %v578_v9 }
 0x16a   : > { %v814_v53 = vpop.xlane.xlu1 %813  ;;  %v817_v54 = vpop.xlane.xlu0 %816  ;;  %v605_v37 = vmul.f32 %v5804_v11, %v6492_v50 }
 0x16b   : > { %5813 = vrsqrt.f32 %v841_v49  ;;  %v834_v25 = vmul.f32 0.03125, %v814_v53  ;;  %v835_v16 = vmul.f32 0.03125, %v817_v54 }
 0x16c   : > { %5815 = vrsqrt.f32 %v586_v35  ;;  %5114 = vmatprep.mubr.msk.f32.mxu1 %vm503_vm0, %v605_v37 }
 0x16d   : > { %v5806_v57 = vpop.eup %5805  ;;  %v842_v29 = vadd.f32 1e-05, %v834_v25 }
 0x16e   : > { %v5808_v58 = vpop.eup %5807  ;;  %v820_v59 = vpop.xlane.xlu1 %819  ;;  %v606_v19 = vmul.f32 %v5806_v57, %v6502_v62 }
 0x16f   : > { %v823_v17 = vpop.xlane.xlu0 %822  ;;  %v607_v55 = vmul.f32 %v5808_v58, %v6495_v52  ;;  %v836_v2 = vmul.f32 0.03125, %v820_v59  ;;  %5817 = vrsqrt.f32 %v842_v29 }
 0x170   : > { %5115 = vmatmul.mubr.msk.f32.vlgmr.msra.gmra.mrb[0].mxu1 %vm503_vm0, %v606_v19  ;;  %v837_v31 = vmul.f32 0.03125, %v823_v17 }
 0x171   : > { %v5810_v1 = vpop.eup %5809  ;;  %5117 = vmatprep.mubr.msk.f32.mxu1 %vm503_vm0, %v607_v55  ;;  %v844_v39 = vadd.f32 1e-05, %v836_v2 }
 0x172   : > { %v5812_v3 = vpop.eup %5811  ;;  %v826_v6 = vpop.xlane.xlu1 %825  ;;  %v608_v8 = vmul.f32 %v5810_v1, %v6506_v51 }
 0x173   : > { %v829_v50 = vpop.xlane.xlu0 %828  ;;  %v601_v23 = vmul.f32 %v5812_v3, %v6514_v56  ;;  %v843_v56 = vadd.f32 1e-05, %v835_v16  ;;  %v838_v46 = vmul.f32 0.03125, %v826_v6 }
 0x174   : > { %5118 = vmatmul.mubr.msk.f32.gmra.mrb[2].mxu1 %vm503_vm0, %v608_v8 }
 0x175   : > { %v5814_v15 = vpop.eup %5813  ;;  %5108 = vmatprep.mubr.msk.f32.mxu0 %vm503_vm0, %v601_v23  ;;  %5819 = vrsqrt.f32 %v843_v56  ;;  %v846_v35 = vadd.f32 1e-05, %v838_v46 }
 0x176   : > { %v5816_v52 = vpop.eup %5815  ;;  %v832_v62 = vpop.xlane.xlu1 %831  ;;  %v857_v18 = vmul.f32 %v5814_v15, %v6518_v61  ;;  %v845_v61 = vadd.f32 1e-05, %v837_v31 }
 0x177   : > { %v5685_v22 = vpop.permute.xlu0 %5684  ;;  %v602_v24 = vmul.f32 %v5816_v52, %v6526_v30  ;;  %v839_v30 = vmul.f32 0.03125, %v829_v50  ;;  %v840_v53 = vmul.f32 0.03125, %v832_v62 }
 0x178   : > { %v5687_v28 = vunpack.i.h.bf16 %v5685_v22  ;;  %5128 = vmatprep.mubr.msk.f32.mxu1 %vm503_vm0, %v857_v18  ;;  %v5686_v51 = vunpack.i.l.bf16 %v5685_v22 }
 0x179   : > { %5109 = vmatmul.mubr.msk.f32.vlgmr.msra.gmra.mrb[0].mxu0 %vm503_vm0, %v602_v24  ;;  %v847_v54 = vadd.f32 1e-05, %v839_v30  ;;  %v848_v17 = vadd.f32 1e-05, %v840_v53  ;;  %v5818_v55 = vpop.eup %5817 }
 0x17a   : > { %v561_v33 = vpop.xlane.xlu1 %560  ;;  %v5504_v36 = vpack.c.bf16 %v5687_v28, %v5686_v51  ;;  %v858_v6 = vmul.f32 %v5818_v55, %v6530_v32 }
 0x17b   : > { %v579_v38 = vmul.f32 0.03125, %v561_v33 }
 0x17c   : > { %5505 = vmatprep.subr.bf16.mxu1 %v5504_v36 }
 0x17d   : > { %v587_v9 = vadd.f32 1e-05, %v579_v38  ;;  %5507 = vmatpush3.bf16.msra.mxu1 %v5504_v36 }
 0x17e   : > { %v564_v11 = vpop.xlane.xlu1 %563 }
 0x17f   : > { %5821 = vrsqrt.f32 %v587_v9  ;;  %v580_v49 = vmul.f32 0.03125, %v564_v11  ;;  %v5820_v1 = vpop.eup %5819 }
 0x180   : > { %5823 = vrsqrt.f32 %v844_v39  ;;  %v859_v23 = vmul.f32 %v5820_v1, %v6538_v47 }
 0x181   : > { %5825 = vrsqrt.f32 %v845_v61  ;;  %v588_v37 = vadd.f32 1e-05, %v580_v49 }
 0x182   : > { %v5690_v57 = vpop.permute.xlu1 %5689 }
 0x183   : > { %5827 = vrsqrt.f32 %v588_v37  ;;  %v5692_v58 = vunpack.i.h.bf16 %v5690_v57  ;;  %v5691_v59 = vunpack.i.l.bf16 %v5690_v57 }
 0x184   : > { %5829 = vrsqrt.f32 %v846_v35 }
 0x185   : > { %5831 = vrsqrt.f32 %v847_v54  ;;  %v5508_v19 = vpack.c.bf16 %v5692_v58, %v5691_v59 }
 0x186   : > { %5833 = vrsqrt.f32 %v848_v17 }
 0x187   : > { %5509 = vmatprep.subr.bf16.mxu1 %v5508_v19 }
 0x188   : > { %5511 = vmatpush3.bf16.msra.mxu1 %v5508_v19 }
 0x189   : > { %v5822_v3 = vpop.eup %5821 }
 0x18a   : > { %v5824_v50 = vpop.eup %5823  ;;  %v603_v8 = vmul.f32 %v5822_v3, %v6575_v4  ;;  %v6696_v3 = vpack.c.bf16 %v6481_v44, %v6476_v43 }
 0x18b   : > { %v5826_v25 = vpop.eup %5825  ;;  %5129 = vmatmul.mubr.msk.f32.vlgmr.msra.gmra.mrb[4].mxu1 %vm503_vm0, %v858_v6  ;;  %v860_v16 = vmul.f32 %v5824_v50, %v6542_v48 }
 0x18c   : > { %5111 = vmatprep.mubr.msk.f32.mxu0 %vm503_vm0, %v603_v8  ;;  %5131 = vmatprep.mubr.msk.f32.mxu1 %vm503_vm0, %v859_v23  ;;  %v861_v32 = vmul.f32 %v5826_v25, %v6550_v60 }
 0x18d   : > { %v5828_v15 = vpop.eup %5827  ;;  %5521 = vmatprep.subr.bf16.mxu1 %v6696_v3 }
 0x18e   : > { %v5830_v52 = vpop.eup %5829  ;;  %v604_v62 = vmul.f32 %v5828_v15, %v6579_v34  ;;  %5523 = vmatpush3.bf16.msra.mxu1 %v6696_v3 }
 0x18f   : > { %v5832_v18 = vpop.eup %5831  ;;  %5132 = vmatmul.mubr.msk.f32.gmra.mrb[6].mxu1 %vm503_vm0, %v860_v16  ;;  %v862_v47 = vmul.f32 %v5830_v52, %v6554_v0 }
 0x190   : > { %5112 = vmatmul.mubr.msk.f32.gmra.mrb[2].mxu0 %vm503_vm0, %v604_v62  ;;  %5134 = vmatprep.mubr.msk.f32.mxu1 %vm503_vm0, %v861_v32  ;;  %v5834_v4 = vpop.eup %5833  ;;  %v863_v22 = vmul.f32 %v5832_v18, %v6562_v10 }
 0x191   : > { %v864_v48 = vmul.f32 %v5834_v4, %v6566_v13 }
 0x193   : > { %5135 = vmatmul.mubr.msk.f32.gmra.mrb[8].mxu1 %vm503_vm0, %v862_v47 }
 0x194   : > { %5137 = vmatprep.mubr.msk.f32.mxu1 %vm503_vm0, %v863_v22 }
 0x197   : > { %5138 = vmatmul.mubr.msk.f32.gmra.mrb[10].mxu1 %vm503_vm0, %v864_v48 }
 0x1a7   : > { %v1011_v60 = vpop.xlane.xlu0 %1010 }
 0x1a8   : > { %v1033_v34 = vmul.f32 0.03125, %v1011_v60 }
 0x1aa   : > { %v6647_v24 = vsub.f32 %v6368_v63, %v1033_v34 }
 0x1ab   : > { %v1017_v28 = vpop.xlane.xlu0 %1016 }
 0x1ac   : > { %v1049_v0 = vmul.f32 %v6647_v24, %v6647_v24  ;;  %v1035_v10 = vmul.f32 0.03125, %v1017_v28 }
 0x1ae   : > { %v1057_v29 = vsel %vm503_vm0, %v1049_v0, 0.0  ;;  %v6653_v51 = vsub.f32 %v6396_v12, %v1035_v10 }
 0x1af   : > { %1058 = vadd.xlane.f32.xlu1 %v1057_v29  ;;  %v1020_v2 = vpop.xlane.xlu0 %1019 }
 0x1b0   : > { %v1036_v31 = vmul.f32 0.03125, %v1020_v2  ;;  %v1051_v38 = vmul.f32 %v6653_v51, %v6653_v51 }
 0x1b2   : > { %v6661_v46 = vsub.f32 %v6400_v14, %v1036_v31 }
 0x1b3   : > { %v1014_v13 = vpop.xlane.xlu1 %1013  ;;  %v1023_v56 = vpop.xlane.xlu0 %1022 }
 0x1b4   : > { %v1034_v33 = vmul.f32 0.03125, %v1014_v13  ;;  %v1037_v61 = vmul.f32 0.03125, %v1023_v56  ;;  %v1052_v53 = vmul.f32 %v6661_v46, %v6661_v46 }
 0x1b6   : > { %v6656_v36 = vsub.f32 %v6384_v7, %v1034_v33  ;;  %v1063_v7 = vsel %vm503_vm0, %v1051_v38, 0.0  ;;  %v6671_v49 = vsub.f32 %v6414_v20, %v1037_v61  ;;  %v1066_v57 = vsel %vm503_vm0, %v1052_v53, 0.0 }
 0x1b7   : > { %v1029_v63 = vpop.xlane.xlu0 %1028  ;;  %v1026_v39 = vpop.xlane.xlu1 %1025 }
 0x1b8   : > { %v1039_v30 = vmul.f32 0.03125, %v1029_v63  ;;  %v1050_v12 = vmul.f32 %v6656_v36, %v6656_v36  ;;  %v1038_v35 = vmul.f32 0.03125, %v1026_v39  ;;  %v1053_v20 = vmul.f32 %v6671_v49, %v6671_v49 }
 0x1ba   : > { %v6666_v9 = vsub.f32 %v6430_v26, %v1039_v30  ;;  %v1060_v11 = vsel %vm503_vm0, %v1050_v12, 0.0  ;;  %v6679_v26 = vsub.f32 %v6417_v21, %v1038_v35  ;;  %v1069_v17 = vsel %vm503_vm0, %v1053_v20, 0.0 }
 0x1bb   : > { %1061 = vadd.xlane.f32.xlu1 %v1060_v11  ;;  %v1032_v54 = vpop.xlane.xlu1 %1031 }
 0x1bc   : > { %v1055_v14 = vmul.f32 %v6666_v9, %v6666_v9  ;;  %v1040_v58 = vmul.f32 0.03125, %v1032_v54  ;;  %v1054_v19 = vmul.f32 %v6679_v26, %v6679_v26 }
 0x1be   : > { %v1075_v37 = vsel %vm503_vm0, %v1055_v14, 0.0  ;;  %v6685_v59 = vsub.f32 %v6433_v27, %v1040_v58  ;;  %v1072_v55 = vsel %vm503_vm0, %v1054_v19, 0.0  ;;  %v6704_v27 = vpack.c.bf16 %v6467_v41, %v6462_v40 }
 0x1bf   : > { %1064 = vadd.xlane.f32.xlu1 %v1063_v7  ;;  %1076 = vadd.xlane.f32.xlu0 %v1075_v37 }
 0x1c0   : > { %v1056_v21 = vmul.f32 %v6685_v59, %v6685_v59  ;;  %5525 = vmatprep.subr.bf16.mxu1 %v6704_v27 }
 0x1c1   : > { %5527 = vmatpush3.bf16.msra.mxu1 %v6704_v27 }
 0x1c2   : > { %v1078_v1 = vsel %vm503_vm0, %v1056_v21, 0.0 }
 0x1c3   : > { %1067 = vadd.xlane.f32.xlu1 %v1066_v57 }
 0x1c7   : > { %1070 = vadd.xlane.f32.xlu1 %v1069_v17 }
 0x1cb   : > { %1073 = vadd.xlane.f32.xlu1 %v1072_v55 }
 0x1cf   : > { %1079 = vadd.xlane.f32.xlu1 %v1078_v1 }
 0x1e0   : > { %5694 = vrot.lane.b32.xlu1 %v6485_v45, %s6182_s24 }
 0x1e4   : > { %5699 = vrot.lane.b32.xlu1 %v6471_v42, %s6182_s24  ;;  %v6714_v42 = vpop.permute.xlu0 %877 }
 0x1e8   : > { %1125 = vrot.lane.b32.xlu1 %v6610_v5, %s6181_s20 }
 0x23c   : > { %v1059_v43 = vpop.xlane.xlu1 %1058 }
 0x23d   : > { %v1081_v44 = vmul.f32 0.03125, %v1059_v43 }
 0x23f   : > { %v1089_v6 = vadd.f32 1e-05, %v1081_v44 }
 0x241   : > { %5835 = vrsqrt.f32 %v1089_v6 }
 0x243   : > { %v5116_v50 = vpop.f32.mrb[0].mxu1 }
 0x244   : > { %v742_v45 = vpop.f32.mrb[1].mxu1 }
 0x245   : > { %v6720_v13 = vadd.f32 %v6610_v5, %v742_v45 }
 0x247   : > { %v5119_v8 = vpop.f32.mrb[2].mxu1 }
 0x248   : > { %v1062_v23 = vpop.xlane.xlu1 %1061  ;;  %v752_v40 = vpop.f32.mrb[3].mxu1  ;;  %v6723_v31 = vadd.f32 %v5119_v8, %v6610_v5 }
 0x249   : > { %v1082_v47 = vmul.f32 0.03125, %v1062_v23  ;;  %v6726_v33 = vadd.f32 %v6610_v5, %v752_v40 }
 0x24b   : > { %v5836_v41 = vpop.eup %5835  ;;  %v1090_v34 = vadd.f32 1e-05, %v1082_v47 }
 0x24c   : > { %v5110_v25 = vpop.f32.mrb[0].mxu0  ;;  %v1065_v15 = vpop.xlane.xlu1 %1064  ;;  %v1105_v16 = vmul.f32 %v5836_v41, %v6647_v24  ;;  %v6717_v24 = vadd.f32 %v5116_v50, %v6610_v5 }
 0x24d   : > { %v722_v52 = vpop.f32.mrb[1].mxu0  ;;  %v1077_v18 = vpop.xlane.xlu0 %1076  ;;  %v1083_v4 = vmul.f32 0.03125, %v1065_v15  ;;  %5837 = vrsqrt.f32 %v1090_v34  ;;  %v6729_v63 = vadd.f32 %v5110_v25, %v6610_v5 }
 0x24e   : > { %5148 = vmatprep.mubr.msk.f32.mxu0 %vm503_vm0, %v1105_v16  ;;  %v1087_v22 = vmul.f32 0.03125, %v1077_v18  ;;  %v6732_v39 = vadd.f32 %v6610_v5, %v722_v52 }
 0x24f   : > { %v1091_v28 = vadd.f32 1e-05, %v1083_v4 }
 0x250   : > { %v1068_v62 = vpop.xlane.xlu1 %1067  ;;  %v1095_v29 = vadd.f32 1e-05, %v1087_v22 }
 0x251   : > { %v1084_v60 = vmul.f32 0.03125, %v1068_v62  ;;  %5839 = vrsqrt.f32 %v1091_v28 }
 0x252   : > { %5841 = vrsqrt.f32 %v1095_v29 }
 0x253   : > { %v1092_v56 = vadd.f32 1e-05, %v1084_v60 }
 0x254   : > { %v1071_v32 = vpop.xlane.xlu1 %1070 }
 0x255   : > { %v1085_v0 = vmul.f32 0.03125, %v1071_v32  ;;  %5843 = vrsqrt.f32 %v1092_v56 }
 0x257   : > { %v1093_v61 = vadd.f32 1e-05, %v1085_v0  ;;  %v5838_v34 = vpop.eup %5837 }
 0x258   : > { %v1074_v48 = vpop.xlane.xlu1 %1073 }
 0x259   : > { %v1086_v10 = vmul.f32 0.03125, %v1074_v48  ;;  %5845 = vrsqrt.f32 %v1093_v61 }
 0x25b   : > { %v1094_v11 = vadd.f32 1e-05, %v1086_v10  ;;  %v5840_v10 = vpop.eup %5839 }
 0x25c   : > { %v1080_v2 = vpop.xlane.xlu1 %1079  ;;  %v5842_v61 = vpop.eup %5841 }
 0x25d   : > { %v1088_v7 = vmul.f32 0.03125, %v1080_v2  ;;  %5847 = vrsqrt.f32 %v1094_v11 }
 0x25e   : > { %v5130_v38 = vpop.f32.mrb[4].mxu1 }
 0x25f   : > { %v976_v30 = vadd.f32 %v5130_v38, %v6714_v42  ;;  %v970_v12 = vpop.f32.mrb[5].mxu1  ;;  %v1096_v6 = vadd.f32 1e-05, %v1088_v7 }
 0x260   : > { %v971_v14 = vadd.f32 %v970_v12, %v6714_v42  ;;  %v5695_v35 = vpop.permute.xlu1 %5694 }
 0x261   : > { %v1258_v53 = vmul.f32 %v976_v30, %v6729_v63  ;;  %v5697_v54 = vunpack.i.h.bf16 %v5695_v35  ;;  %v5696_v37 = vunpack.i.l.bf16 %v5695_v35  ;;  %v6742_v17 = vmul.f32 %v976_v30, %v6717_v24  ;;  %v5844_v35 = vpop.eup %5843 }
 0x262   : > { %v5133_v57 = vpop.f32.mrb[6].mxu1  ;;  %v1257_v58 = vmul.f32 %v971_v14, %v6732_v39  ;;  %v6739_v20 = vmul.f32 %v971_v14, %v6720_v13  ;;  %v6745_v19 = vmul.f32 %v971_v14, %v6726_v33  ;;  %v6749_v44 = vmul.f32 %v976_v30, %v6723_v31 }
 0x263   : > { %v986_v55 = vadd.f32 %v5133_v57, %v6714_v42  ;;  %v5113_v21 = vpop.f32.mrb[2].mxu0  ;;  %v980_v1 = vpop.f32.mrb[7].mxu1  ;;  %v5512_v43 = vpack.c.bf16 %v5697_v54, %v5696_v37  ;;  %5849 = vrsqrt.f32 %v1096_v6 }
 0x264   : > { %v738_v50 = vadd.f32 %v5113_v21, %v6610_v5  ;;  %v981_v45 = vadd.f32 %v980_v1, %v6714_v42  ;;  %v5700_v8 = vpop.permute.xlu1 %5699  ;;  %v732_v23 = vpop.f32.mrb[3].mxu0  ;;  %5168 = vmatprep.mubr.msk.f32.mxu1 %vm503_vm0, %v1257_v58  ;;  %v1107_v1 = vmul.f32 %v5840_v10, %v6653_v51 }
 0x265   : > { %v5702_v40 = vunpack.i.h.bf16 %v5700_v8  ;;  %v5701_v41 = vunpack.i.l.bf16 %v5700_v8  ;;  %v733_v25 = vadd.f32 %v6610_v5, %v732_v23  ;;  %5513 = vmatprep.subr.bf16.mxu0 %v5512_v43  ;;  %5169 = vmatmul.mubr.msk.f32.vlgmr.msra.gmra.mrb[12].mxu1 %vm503_vm0, %v1258_v53  ;;  %v1260_v15 = vmul.f32 %v986_v55, %v6729_v63 }
 0x266   : > { %v5136_v16 = vpop.f32.mrb[8].mxu1  ;;  %5515 = vmatpush3.bf16.msra.mxu0 %v5512_v43  ;;  %v1259_v52 = vmul.f32 %v981_v45, %v6732_v39  ;;  %v1266_v62 = vmul.f32 %v976_v30, %v738_v50  ;;  %v6758_v32 = vmul.f32 %v986_v55, %v738_v50  ;;  %v6761_v18 = vmul.f32 %v981_v45, %v6720_v13  ;;  %v5846_v43 = vpop.eup %5845 }
 0x267   : > { %v996_v47 = vadd.f32 %v5136_v16, %v6714_v42  ;;  %v990_v4 = vpop.f32.mrb[9].mxu1  ;;  %v5516_v22 = vpack.c.bf16 %v5702_v40, %v5701_v41  ;;  %v1265_v48 = vmul.f32 %v971_v14, %v733_v25  ;;  %v1267_v60 = vmul.f32 %v981_v45, %v733_v25 }
 0x268   : > { %v991_v28 = vadd.f32 %v990_v4, %v6714_v42  ;;  %5171 = vmatprep.mubr.msk.f32.mxu1 %vm503_vm0, %v1259_v52  ;;  %v1276_v0 = vmul.f32 %v986_v55, %v6717_v24  ;;  %v6768_v29 = vmul.f32 %v981_v45, %v6726_v33  ;;  %v1284_v14 = vmul.f32 %v986_v55, %v6723_v31  ;;  %v5848_v45 = vpop.eup %5847 }
 0x269   : > { %5517 = vmatprep.subr.bf16.mxu0 %v5516_v22  ;;  %5172 = vmatmul.mubr.msk.f32.gmra.mrb[14].mxu1 %vm503_vm0, %v1260_v15  ;;  %v1262_v2 = vmul.f32 %v996_v47, %v6729_v63  ;;  %v1270_v56 = vmul.f32 %v996_v47, %v738_v50  ;;  %v1278_v38 = vmul.f32 %v996_v47, %v6717_v24 }
 0x26a   : > { %v5139_v30 = vpop.f32.mrb[10].mxu1  ;;  %5519 = vmatpush3.bf16.msra.mxu0 %v5516_v22  ;;  %v1261_v12 = vmul.f32 %v991_v28, %v6732_v39  ;;  %v1269_v11 = vmul.f32 %v991_v28, %v733_v25  ;;  %v1277_v7 = vmul.f32 %v991_v28, %v6720_v13  ;;  %v1106_v53 = vmul.f32 %v5838_v34, %v6656_v36 }
 0x26b   : > { %v1006_v54 = vadd.f32 %v5139_v30, %v6714_v42  ;;  %v1000_v37 = vpop.f32.mrb[11].mxu1  ;;  %v1285_v57 = vmul.f32 %v991_v28, %v6726_v33  ;;  %v1286_v58 = vmul.f32 %v996_v47, %v6723_v31  ;;  %v1108_v40 = vmul.f32 %v5844_v35, %v6661_v46 }
 0x26c   : > { %v1001_v21 = vadd.f32 %v1000_v37, %v6714_v42  ;;  %5174 = vmatprep.mubr.msk.f32.mxu1 %vm503_vm0, %v1261_v12 }
 0x26d   : > { %5149 = vmatmul.mubr.msk.f32.vlgmr.msra.gmra.mrb[4].mxu0 %vm503_vm0, %v1106_v53  ;;  %5175 = vmatmul.mubr.msk.f32.gmra.mrb[16].mxu1 %vm503_vm0, %v1262_v2  ;;  %v1264_v36 = vmul.f32 %v1006_v54, %v6729_v63  ;;  %v1272_v55 = vmul.f32 %v1006_v54, %v738_v50  ;;  %v1280_v6 = vmul.f32 %v1006_v54, %v6717_v24  ;;  %v5850_v24 = vpop.eup %5849  ;;  %v1973_v50 = vld [vmem:[%s7935_s2 + $0x70] sm:$0xff] }
 0x26e   : > { %5151 = vmatprep.mubr.msk.f32.mxu0 %vm503_vm0, %v1107_v1  ;;  %v1263_v8 = vmul.f32 %v1001_v21, %v6732_v39  ;;  %v1271_v42 = vmul.f32 %v1001_v21, %v733_v25  ;;  %v1279_v23 = vmul.f32 %v1001_v21, %v6720_v13  ;;  %v1287_v51 = vmul.f32 %v1001_v21, %v6726_v33 }
 0x26f   : > { %v1288_v41 = vmul.f32 %v1006_v54, %v6723_v31  ;;  %v1109_v63 = vmul.f32 %v5846_v43, %v6671_v49  ;;  %v1110_v13 = vmul.f32 %v5848_v45, %v6679_v26  ;;  %v1111_v33 = vmul.f32 %v5842_v61, %v6666_v9  ;;  %v1826_v9 = vld [vmem:[%s7935_s2 + $0x8] sm:$0xff] }
 0x270   : > { %5177 = vmatprep.mubr.msk.f32.mxu1 %vm503_vm0, %v1263_v8  ;;  %v1112_v46 = vmul.f32 %v5850_v24, %v6685_v59  ;;  %v1827_v49 = vld [vmem:[%s7935_s2 + $0x28] sm:$0xff] }
 0x271   : > { %5152 = vmatmul.mubr.msk.f32.gmra.mrb[6].mxu0 %vm503_vm0, %v1108_v40  ;;  %5178 = vmatmul.mubr.msk.f32.gmra.mrb[18].mxu1 %vm503_vm0, %v1264_v36  ;;  %v5528_v26 = vpack.c.bf16 %v1827_v49, %v1826_v9  ;;  %v1828_v59 = vld [vmem:[%s7935_s2 + $0x48] sm:$0xff] }
 0x272   : > { %5154 = vmatprep.mubr.msk.f32.mxu0 %vm503_vm0, %v1109_v63  ;;  %5180 = vmatprep.mubr.msk.f32.mxu1 %vm503_vm0, %v1265_v48  ;;  %v1829_v31 = vld [vmem:[%s7935_s2 + $0x68] sm:$0xff]  ;;  %v1126_v63 = vpop.permute.xlu1 %1125 }
 0x273   : > { %5529 = vmatprep.subr.bf16.mxu0 %v5528_v26  ;;  %v5532_v39 = vpack.c.bf16 %v1829_v31, %v1828_v59 }
 0x274   : > { %5531 = vmatpush3.bf16.msra.mxu0 %v5528_v26 }
 0x275   : > { %5155 = vmatmul.mubr.msk.f32.gmra.mrb[8].mxu0 %vm503_vm0, %v1110_v13  ;;  %5181 = vmatmul.mubr.msk.f32.gmra.mrb[20].mxu1 %vm503_vm0, %v1266_v62 }
 0x276   : > { %5157 = vmatprep.mubr.msk.f32.mxu0 %vm503_vm0, %v1111_v33  ;;  %5183 = vmatprep.mubr.msk.f32.mxu1 %vm503_vm0, %v1267_v60 }
 0x277   : > { %5533 = vmatprep.subr.bf16.mxu0 %v5532_v39 }
 0x278   : > { %5535 = vmatpush3.bf16.msra.mxu0 %v5532_v39 }
 0x279   : > { %5158 = vmatmul.mubr.msk.f32.gmra.mrb[10].mxu0 %vm503_vm0, %v1112_v46  ;;  %5184 = vmatmul.mubr.msk.f32.gmra.mrb[22].mxu1 %vm503_vm0, %v6758_v32 }
 0x27a   : > { %5186 = vmatprep.mubr.msk.f32.mxu1 %vm503_vm0, %v1269_v11 }
 0x27d   : > { %5187 = vmatmul.mubr.msk.f32.gmra.mrb[24].mxu1 %vm503_vm0, %v1270_v56 }
 0x27e   : > { %5189 = vmatprep.mubr.msk.f32.mxu1 %vm503_vm0, %v1271_v42 }
 0x281   : > { %5190 = vmatmul.mubr.msk.f32.gmra.mrb[26].mxu1 %vm503_vm0, %v1272_v55 }
 0x282   : > { %5192 = vmatprep.mubr.msk.f32.mxu1 %vm503_vm0, %v6739_v20  ;;  %v1970_v20 = vld [vmem:[%s7935_s2 + $0x10] sm:$0xff] }
 0x285   : > { %5193 = vmatmul.mubr.msk.f32.gmra.mrb[28].mxu1 %vm503_vm0, %v6742_v17  ;;  %v1971_v17 = vld [vmem:[%s7935_s2 + $0x30] sm:$0xff] }
 0x286   : > { %5195 = vmatprep.mubr.msk.f32.mxu1 %vm503_vm0, %v6761_v18 }
 0x289   : > { %5196 = vmatmul.mubr.msk.f32.gmra.mrb[30].mxu1 %vm503_vm0, %v1276_v0 }
 0x28a   : > { %5198 = vmatprep.mubr.msk.f32.mxu1 %vm503_vm0, %v1277_v7 }
 0x28d   : > { %5199 = vmatmul.mubr.msk.f32.gmra.mrb[32].mxu1 %vm503_vm0, %v1278_v38 }
 0x28e   : > { %5201 = vmatprep.mubr.msk.f32.mxu1 %vm503_vm0, %v1279_v23 }
 0x291   : > { %5202 = vmatmul.mubr.msk.f32.gmra.mrb[34].mxu1 %vm503_vm0, %v1280_v6 }
 0x292   : > { %5204 = vmatprep.mubr.msk.f32.mxu1 %vm503_vm0, %v6745_v19  ;;  %v1972_v19 = vld [vmem:[%s7935_s2 + $0x50] sm:$0xff] }
 0x293   : > { %v5708_v25 = vpack.i.bf16 %v1973_v50, %v1972_v19 }
 0x295   : > { %5205 = vmatmul.mubr.msk.f32.gmra.mrb[36].mxu1 %vm503_vm0, %v6749_v44  ;;  %v5703_v44 = vpack.i.bf16 %v1971_v17, %v1970_v20  ;;  %5709 = vrot.lane.b32.xlu1 %v5708_v25, %s6180_s15 }
 0x296   : > { %5207 = vmatprep.mubr.msk.f32.mxu1 %vm503_vm0, %v6768_v29 }
 0x297   : > { %5704 = vrot.lane.b32.xlu0 %v5703_v44, %s6180_s15 }
 0x299   : > { %5208 = vmatmul.mubr.msk.f32.gmra.mrb[38].mxu1 %vm503_vm0, %v1284_v14  ;;  %1830 = vrot.lane.b32.xlu1 %v6610_v5, %s6182_s24 }
 0x29a   : > { %5210 = vmatprep.mubr.msk.f32.mxu1 %vm503_vm0, %v1285_v57 }
 0x29d   : > { %5211 = vmatmul.mubr.msk.f32.gmra.mrb[40].mxu1 %vm503_vm0, %v1286_v58 }
 0x29e   : > { %5213 = vmatprep.mubr.msk.f32.mxu1 %vm503_vm0, %v1287_v51 }
 0x2a1   : > { %5214 = vmatmul.mubr.msk.f32.gmra.mrb[42].mxu1 %vm503_vm0, %v1288_v41 }
 0x338   : > { %v5170_v15 = vpop.f32.mrb[12].mxu1 }
 0x339   : > { %v1451_v16 = vpop.f32.mrb[13].mxu1 }
 0x33c   : > { %v5173_v52 = vpop.f32.mrb[14].mxu1 }
 0x33d   : > { %v1611_v62 = vmax.f32 %v5170_v15, %v5173_v52  ;;  %v1461_v32 = vpop.f32.mrb[15].mxu1 }
 0x33e   : > { %v1610_v18 = vmax.f32 %v1451_v16, %v1461_v32 }
 0x340   : > { %v5150_v47 = vpop.f32.mrb[4].mxu0  ;;  %v5176_v4 = vpop.f32.mrb[16].mxu1 }
 0x341   : > { %v1619_v22 = vmax.f32 %v1611_v62, %v5176_v4  ;;  %v1218_v48 = vpop.f32.mrb[5].mxu0  ;;  %v1471_v60 = vpop.f32.mrb[17].mxu1  ;;  %v6872_v46 = vadd.f32 %v5150_v47, %v1126_v63 }
 0x342   : > { %v1618_v34 = vmax.f32 %v1610_v18, %v1471_v60  ;;  %v6874_v9 = vadd.f32 %v1218_v48, %v1126_v63 }
 0x344   : > { %v5153_v28 = vpop.f32.mrb[6].mxu0  ;;  %v5179_v0 = vpop.f32.mrb[18].mxu1 }
 0x345   : > { %v1627_v29 = vmax.f32 %v1619_v22, %v5179_v0  ;;  %v1228_v10 = vpop.f32.mrb[7].mxu0  ;;  %v1481_v2 = vpop.f32.mrb[19].mxu1  ;;  %v6876_v49 = vadd.f32 %v5153_v28, %v1126_v63 }
 0x346   : > { %v1626_v56 = vmax.f32 %v1618_v34, %v1481_v2  ;;  %v6878_v31 = vadd.f32 %v1228_v10, %v1126_v63 }
 0x347   : > { %v1635_v38 = vsub.f32 %v5170_v15, %v1627_v29  ;;  %v1659_v5 = vsub.f32 %v5173_v52, %v1627_v29  ;;  %v1683_v61 = vsub.f32 %v5176_v4, %v1627_v29  ;;  %v1707_v30 = vsub.f32 %v5179_v0, %v1627_v29 }
 0x348   : > { %v1634_v12 = vsub.f32 %v1451_v16, %v1626_v56  ;;  %v1658_v11 = vsub.f32 %v1461_v32, %v1626_v56  ;;  %v1682_v7 = vsub.f32 %v1471_v60, %v1626_v56  ;;  %v1706_v14 = vsub.f32 %v1481_v2, %v1626_v56  ;;  %v5156_v35 = vpop.f32.mrb[8].mxu0  ;;  %v5182_v53 = vpop.f32.mrb[20].mxu1 }
 0x349   : > { %v1644_v54 = vmul.f32 1.442695, %v1635_v38  ;;  %v1668_v37 = vmul.f32 1.442695, %v1659_v5  ;;  %v1692_v57 = vmul.f32 1.442695, %v1683_v61  ;;  %v6880_v39 = vadd.f32 %v5156_v35, %v1126_v63 }
 0x34a   : > { %v1716_v58 = vmul.f32 1.442695, %v1707_v30  ;;  %v1642_v21 = vmul.f32 1.442695, %v1634_v12  ;;  %v1238_v1 = vpop.f32.mrb[9].mxu0  ;;  %v6863_v43 = vpop.f32.mrb[21].mxu1 }
 0x34b   : > { %5851 = vpow2.f32 %v1644_v54  ;;  %v1666_v36 = vmul.f32 1.442695, %v1658_v11  ;;  %v1690_v45 = vmul.f32 1.442695, %v1682_v7  ;;  %v1714_v51 = vmul.f32 1.442695, %v1706_v14 }
 0x34c   : > { %5853 = vpow2.f32 %v1668_v37  ;;  %v5159_v55 = vpop.f32.mrb[10].mxu0  ;;  %v5185_v6 = vpop.f32.mrb[22].mxu1  ;;  %v6882_v20 = vadd.f32 %v1238_v1, %v1126_v63 }
 0x34d   : > { %5855 = vpow2.f32 %v1692_v57  ;;  %v1613_v8 = vmax.f32 %v5182_v53, %v5185_v6  ;;  %v1248_v42 = vpop.f32.mrb[11].mxu0  ;;  %v6865_v23 = vpop.f32.mrb[23].mxu1  ;;  %v6885_v25 = vadd.f32 %v5159_v55, %v1126_v63 }
 0x34e   : > { %5857 = vpow2.f32 %v1716_v58  ;;  %v1612_v40 = vmax.f32 %v6863_v43, %v6865_v23  ;;  %v6887_v15 = vadd.f32 %v1248_v42, %v1126_v63 }
 0x34f   : > { %5859 = vpow2.f32 %v1642_v21 }
 0x350   : > { %5861 = vpow2.f32 %v1666_v36  ;;  %v5188_v41 = vpop.f32.mrb[24].mxu1 }
 0x351   : > { %5863 = vpow2.f32 %v1690_v45  ;;  %v1621_v24 = vmax.f32 %v1613_v8, %v5188_v41  ;;  %v6869_v13 = vpop.f32.mrb[25].mxu1 }
 0x352   : > { %5865 = vpow2.f32 %v1714_v51  ;;  %v1620_v33 = vmax.f32 %v1612_v40, %v6869_v13 }
 0x354   : > { %v5191_v26 = vpop.f32.mrb[26].mxu1 }
 0x355   : > { %v5852_v59 = vpop.eup %5851  ;;  %v1629_v17 = vmax.f32 %v1621_v24, %v5191_v26  ;;  %v1521_v19 = vpop.f32.mrb[27].mxu1 }
 0x356   : > { %v5854_v44 = vpop.eup %5853  ;;  %v1755_v50 = vmul.f32 %v5852_v59, %v6872_v46  ;;  %v1628_v16 = vmax.f32 %v1620_v33, %v1521_v19 }
 0x357   : > { %v5856_v52 = vpop.eup %5855  ;;  %v1731_v62 = vadd.f32 %v5854_v44, %v5852_v59  ;;  %v1763_v32 = vmul.f32 %v5854_v44, %v6876_v49  ;;  %v1637_v18 = vsub.f32 %v5182_v53, %v1629_v17  ;;  %v1661_v47 = vsub.f32 %v5185_v6, %v1629_v17 }
 0x358   : > { %v5858_v4 = vpop.eup %5857  ;;  %v1779_v22 = vmul.f32 %v5856_v52, %v6880_v39  ;;  %v1685_v48 = vsub.f32 %v5188_v41, %v1629_v17  ;;  %v1709_v60 = vsub.f32 %v5191_v26, %v1629_v17  ;;  %v1636_v34 = vsub.f32 %v6863_v43, %v1628_v16  ;;  %v6892_v28 = vpop.f32.mrb[28].mxu1 }
 0x359   : > { %v5860_v0 = vpop.eup %5859  ;;  %v1739_v29 = vadd.f32 %v5856_v52, %v1731_v62  ;;  %v1771_v10 = vadd.f32 %v1763_v32, %v1755_v50  ;;  %v1795_v2 = vmul.f32 %v5858_v4, %v6885_v25  ;;  %v1648_v56 = vmul.f32 1.442695, %v1637_v18  ;;  %v6895_v38 = vpop.f32.mrb[29].mxu1 }
 0x35a   : > { %v5862_v5 = vpop.eup %5861  ;;  %v1754_v61 = vmul.f32 %v5860_v0, %v6874_v9  ;;  %v1672_v30 = vmul.f32 1.442695, %v1661_v47  ;;  %v1696_v12 = vmul.f32 1.442695, %v1685_v48  ;;  %v1720_v11 = vmul.f32 1.442695, %v1709_v60 }
 0x35b   : > { %v5864_v7 = vpop.eup %5863  ;;  %v1747_v14 = vadd.f32 %v5858_v4, %v1739_v29  ;;  %v1730_v35 = vadd.f32 %v5862_v5, %v5860_v0  ;;  %v1787_v53 = vadd.f32 %v1779_v22, %v1771_v10  ;;  %v1762_v54 = vmul.f32 %v5862_v5, %v6878_v31 }
 0x35c   : > { %v5866_v37 = vpop.eup %5865  ;;  %v1778_v57 = vmul.f32 %v5864_v7, %v6882_v20  ;;  %5867 = vpow2.f32 %v1648_v56  ;;  %v1646_v58 = vmul.f32 1.442695, %v1636_v34  ;;  %v1660_v21 = vsub.f32 %v6865_v23, %v1628_v16  ;;  %v5197_v1 = vpop.f32.mrb[30].mxu1 }
 0x35d   : > { %5869 = vrcp.f32 %v1747_v14  ;;  %v1738_v43 = vadd.f32 %v5864_v7, %v1730_v35  ;;  %v1770_v36 = vadd.f32 %v1762_v54, %v1754_v61  ;;  %v1803_v55 = vadd.f32 %v1795_v2, %v1787_v53  ;;  %v1541_v6 = vpop.f32.mrb[31].mxu1 }
 0x35e   : > { %v1794_v45 = vmul.f32 %v5866_v37, %v6887_v15  ;;  %5871 = vpow2.f32 %v1672_v30  ;;  %v1670_v8 = vmul.f32 1.442695, %v1660_v21  ;;  %v1684_v42 = vsub.f32 %v6869_v13, %v1628_v16 }
 0x35f   : > { %v1746_v51 = vadd.f32 %v5866_v37, %v1738_v43  ;;  %v1786_v40 = vadd.f32 %v1778_v57, %v1770_v36  ;;  %5873 = vpow2.f32 %v1696_v12  ;;  %v1708_v41 = vsub.f32 %v1521_v19, %v1628_v16 }
 0x360   : > { %5875 = vpow2.f32 %v1720_v11  ;;  %v1694_v63 = vmul.f32 1.442695, %v1684_v42  ;;  %v1615_v23 = vmax.f32 %v6892_v28, %v5197_v1  ;;  %v1614_v24 = vmax.f32 %v6895_v38, %v1541_v6  ;;  %v5200_v33 = vpop.f32.mrb[32].mxu1 }
 0x361   : > { %5877 = vrcp.f32 %v1746_v51  ;;  %v1718_v26 = vmul.f32 1.442695, %v1708_v41  ;;  %v1551_v59 = vpop.f32.mrb[33].mxu1  ;;  %v1802_v17 = vadd.f32 %v1794_v45, %v1786_v40 }
 0x362   : > { %5879 = vpow2.f32 %v1646_v58  ;;  %v1623_v44 = vmax.f32 %v1615_v23, %v5200_v33  ;;  %v1622_v50 = vmax.f32 %v1614_v24, %v1551_v59 }
 0x363   : > { %5881 = vpow2.f32 %v1670_v8 }
 0x364   : > { %5883 = vpow2.f32 %v1694_v63  ;;  %v5203_v13 = vpop.f32.mrb[34].mxu1 }
 0x365   : > { %5885 = vpow2.f32 %v1718_v26  ;;  %v1631_v52 = vmax.f32 %v1623_v44, %v5203_v13  ;;  %v1561_v19 = vpop.f32.mrb[35].mxu1 }
 0x366   : > { %v5868_v16 = vpop.eup %5867  ;;  %v1630_v62 = vmax.f32 %v1622_v50, %v1561_v19 }
 0x367   : > { %v5870_v32 = vpop.eup %5869  ;;  %v1639_v18 = vsub.f32 %v6892_v28, %v1631_v52  ;;  %v1663_v47 = vsub.f32 %v5197_v1, %v1631_v52  ;;  %v1687_v4 = vsub.f32 %v5200_v33, %v1631_v52  ;;  %v1711_v22 = vsub.f32 %v5203_v13, %v1631_v52 }
 0x368   : > { %v5872_v48 = vpop.eup %5871  ;;  %v1819_v60 = vmul.f32 %v5870_v32, %v1803_v55  ;;  %v1638_v34 = vsub.f32 %v6895_v38, %v1630_v62  ;;  %v1662_v0 = vsub.f32 %v1541_v6, %v1630_v62  ;;  %v1686_v29 = vsub.f32 %v1551_v59, %v1630_v62  ;;  %v6907_v10 = vpop.f32.mrb[36].mxu1 }
 0x369   : > { %v5874_v2 = vpop.eup %5873  ;;  %v1733_v56 = vadd.f32 %v5872_v48, %v5868_v16  ;;  %v1652_v5 = vmul.f32 1.442695, %v1639_v18  ;;  %v1676_v61 = vmul.f32 1.442695, %v1663_v47  ;;  %v1700_v30 = vmul.f32 1.442695, %v1687_v4 }
 0x36a   : > { %v5876_v12 = vpop.eup %5875  ;;  %v1724_v11 = vmul.f32 1.442695, %v1711_v22  ;;  %v1650_v7 = vmul.f32 1.442695, %v1638_v34  ;;  %v1674_v28 = vmul.f32 1.442695, %v1662_v0  ;;  %v1710_v14 = vsub.f32 %v1561_v19, %v1630_v62 }
 0x36b   : > { %v5878_v35 = vpop.eup %5877  ;;  %v1741_v53 = vadd.f32 %v5874_v2, %v1733_v56  ;;  %5887 = vpow2.f32 %v1652_v5  ;;  %v1698_v54 = vmul.f32 1.442695, %v1686_v29  ;;  %v6909_v37 = vpop.f32.mrb[37].mxu1  ;;  %v1757_v38 = vmul.f32 %v5868_v16, %v6872_v46 }
 0x36c   : > { %v5880_v57 = vpop.eup %5879  ;;  %5889 = vpow2.f32 %v1676_v61  ;;  %v1722_v58 = vmul.f32 1.442695, %v1710_v14  ;;  %v1818_v21 = vmul.f32 %v5878_v35, %v1802_v17  ;;  %v5209_v1 = vpop.f32.mrb[38].mxu1  ;;  %v1765_v43 = vmul.f32 %v5872_v48, %v6876_v49 }
 0x36d   : > { %v5882_v36 = vpop.eup %5881  ;;  %v1749_v55 = vadd.f32 %v5876_v12, %v1741_v53  ;;  %5891 = vpow2.f32 %v1700_v30  ;;  %v1617_v6 = vmax.f32 %v6907_v10, %v5209_v1  ;;  %v1581_v45 = vpop.f32.mrb[39].mxu1  ;;  %v1756_v8 = vmul.f32 %v5880_v57, %v6874_v9 }
 0x36e   : > { %v5884_v42 = vpop.eup %5883  ;;  %v1732_v51 = vadd.f32 %v5882_v36, %v5880_v57  ;;  %5893 = vpow2.f32 %v1724_v11  ;;  %5224 = vmatprep.mubr.msk.f32.mxu0 %vm503_vm0, %v1818_v21  ;;  %v1616_v40 = vmax.f32 %v6909_v37, %v1581_v45  ;;  %v1764_v41 = vmul.f32 %v5882_v36, %v6878_v31 }
 0x36f   : > { %v5886_v63 = vpop.eup %5885  ;;  %5895 = vrcp.f32 %v1749_v55  ;;  %5225 = vmatmul.mubr.msk.f32.vlgmr.msra.gmra.mrb[12].mxu0 %vm503_vm0, %v1819_v60  ;;  %v1780_v23 = vmul.f32 %v5884_v42, %v6882_v20  ;;  %v1773_v24 = vadd.f32 %v1765_v43, %v1757_v38  ;;  %v1781_v33 = vmul.f32 %v5874_v2, %v6880_v39 }
 0x370   : > { %v1740_v26 = vadd.f32 %v5884_v42, %v1732_v51  ;;  %5897 = vpow2.f32 %v1650_v7  ;;  %v5212_v59 = vpop.f32.mrb[40].mxu1  ;;  %v1772_v17 = vadd.f32 %v1764_v41, %v1756_v8  ;;  %v1796_v44 = vmul.f32 %v5886_v63, %v6887_v15 }
 0x371   : > { %5899 = vpow2.f32 %v1674_v28  ;;  %v1625_v50 = vmax.f32 %v1617_v6, %v5212_v59  ;;  %v1591_v13 = vpop.f32.mrb[41].mxu1  ;;  %v1789_v52 = vadd.f32 %v1781_v33, %v1773_v24  ;;  %v1797_v19 = vmul.f32 %v5876_v12, %v6885_v25 }
 0x372   : > { %v1748_v16 = vadd.f32 %v5886_v63, %v1740_v26  ;;  %5901 = vpow2.f32 %v1698_v54  ;;  %v1624_v62 = vmax.f32 %v1616_v40, %v1591_v13  ;;  %v1788_v32 = vadd.f32 %v1780_v23, %v1772_v17 }
 0x373   : > { %5903 = vpow2.f32 %v1722_v58  ;;  %v1805_v18 = vadd.f32 %v1797_v19, %v1789_v52 }
 0x374   : > { %5905 = vrcp.f32 %v1748_v16  ;;  %v5215_v47 = vpop.f32.mrb[42].mxu1  ;;  %v1804_v4 = vadd.f32 %v1796_v44, %v1788_v32 }
 0x375   : > { %v5888_v22 = vpop.eup %5887  ;;  %v1633_v48 = vmax.f32 %v1625_v50, %v5215_v47  ;;  %v1601_v60 = vpop.f32.mrb[43].mxu1 }
 0x376   : > { %v5890_v34 = vpop.eup %5889  ;;  %v1632_v0 = vmax.f32 %v1624_v62, %v1601_v60  ;;  %v1759_v29 = vmul.f32 %v5888_v22, %v6872_v46 }
 0x377   : > { %v5892_v2 = vpop.eup %5891  ;;  %v1735_v56 = vadd.f32 %v5890_v34, %v5888_v22  ;;  %v1641_v5 = vsub.f32 %v6907_v10, %v1633_v48  ;;  %v1665_v61 = vsub.f32 %v5209_v1, %v1633_v48  ;;  %v1689_v30 = vsub.f32 %v5212_v59, %v1633_v48 }
 0x378   : > { %v5894_v12 = vpop.eup %5893  ;;  %v1713_v11 = vsub.f32 %v5215_v47, %v1633_v48  ;;  %v1640_v7 = vsub.f32 %v6909_v37, %v1632_v0  ;;  %v1664_v28 = vsub.f32 %v1581_v45, %v1632_v0  ;;  %v1688_v14 = vsub.f32 %v1591_v13, %v1632_v0 }
 0x379   : > { %v5896_v35 = vpop.eup %5895  ;;  %v1743_v53 = vadd.f32 %v5892_v2, %v1735_v56  ;;  %v1656_v54 = vmul.f32 1.442695, %v1641_v5  ;;  %v1680_v38 = vmul.f32 1.442695, %v1665_v61  ;;  %v1704_v58 = vmul.f32 1.442695, %v1689_v30 }
 0x37a   : > { %v5898_v57 = vpop.eup %5897  ;;  %v1728_v21 = vmul.f32 1.442695, %v1713_v11  ;;  %v1654_v43 = vmul.f32 1.442695, %v1640_v7  ;;  %v1712_v36 = vsub.f32 %v1601_v60, %v1632_v0  ;;  %v1678_v10 = vmul.f32 1.442695, %v1664_v28 }
 0x37b   : > { %v5900_v55 = vpop.eup %5899  ;;  %v1751_v6 = vadd.f32 %v5894_v12, %v1743_v53  ;;  %5907 = vpow2.f32 %v1656_v54  ;;  %v1821_v1 = vmul.f32 %v5896_v35, %v1805_v18  ;;  %v1702_v37 = vmul.f32 1.442695, %v1688_v14 }
 0x37c   : > { %v5902_v8 = vpop.eup %5901  ;;  %v1734_v42 = vadd.f32 %v5900_v55, %v5898_v57  ;;  %5909 = vpow2.f32 %v1680_v38  ;;  %v1758_v45 = vmul.f32 %v5898_v57, %v6874_v9  ;;  %v1766_v40 = vmul.f32 %v5900_v55, %v6878_v31 }
 0x37d   : > { %v5904_v51 = vpop.eup %5903  ;;  %5911 = vrcp.f32 %v1751_v6  ;;  %v1782_v41 = vmul.f32 %v5902_v8, %v6882_v20  ;;  %v1767_v63 = vmul.f32 %v5890_v34, %v6876_v49  ;;  %v1783_v26 = vmul.f32 %v5892_v2, %v6880_v39 }
 0x37e   : > { %v5906_v23 = vpop.eup %5905  ;;  %v1742_v24 = vadd.f32 %v5902_v8, %v1734_v42  ;;  %5913 = vpow2.f32 %v1704_v58  ;;  %v1798_v33 = vmul.f32 %v5904_v51, %v6887_v15  ;;  %v1774_v17 = vadd.f32 %v1766_v40, %v1758_v45  ;;  %v6955_v40 = vld [vmem:[%s7936_s3 + $0x8] sm:$0xff] }
 0x37f   : > { %5915 = vpow2.f32 %v1728_v21  ;;  %v1820_v59 = vmul.f32 %v5906_v23, %v1804_v4  ;;  %v1775_v44 = vadd.f32 %v1767_v63, %v1759_v29  ;;  %v1726_v13 = vmul.f32 1.442695, %v1712_v36  ;;  %v6967_v23 = vld [vmem:[%s7936_s3 + $0x18] sm:$0xff] }
 0x380   : > { %v1750_v50 = vadd.f32 %v5904_v51, %v1742_v24  ;;  %5917 = vpow2.f32 %v1654_v43  ;;  %v1799_v52 = vmul.f32 %v5894_v12, %v6885_v25  ;;  %v1790_v19 = vadd.f32 %v1782_v41, %v1774_v17  ;;  %v6950_v51 = vld [vmem:[%s7936_s3] sm:$0xff]  ;;  %v6960_v41 = vld [vmem:[%s7936_s3 + $0x10] sm:$0xff] }
 0x381   : > { %5919 = vpow2.f32 %v1678_v10  ;;  %5227 = vmatprep.mubr.msk.f32.mxu0 %vm503_vm0, %v1820_v59  ;;  %v1791_v16 = vadd.f32 %v1783_v26, %v1775_v44  ;;  %v5713_v63 = vpack.i.bf16 %v6955_v40, %v6950_v51  ;;  %v5718_v24 = vpack.i.bf16 %v6967_v23, %v6960_v41  ;;  %v6980_v26 = vld [vmem:[%s7936_s3 + $0x28] sm:$0xff]  ;;  %v6988_v17 = vld [vmem:[%s7936_s3 + $0x30] sm:$0xff]  ;;  %v6993_v44 = vld [vmem:[%s7936_s3 + $0x38] sm:$0xff] }
 0x382   : > { %5921 = vrcp.f32 %v1750_v50  ;;  %5228 = vmatmul.mubr.msk.f32.gmra.mrb[14].mxu0 %vm503_vm0, %v1821_v1  ;;  %v1806_v62 = vadd.f32 %v1798_v33, %v1790_v19  ;;  %v6975_v33 = vld [vmem:[%s7936_s3 + $0x20] sm:$0xff]  ;;  %v5728_v50 = vpack.i.bf16 %v6993_v44, %v6988_v17 }
 0x383   : > { %5923 = vpow2.f32 %v1702_v37  ;;  %v1807_v32 = vadd.f32 %v1799_v52, %v1791_v16  ;;  %5714 = vrot.lane.b32.xlu1 %v5713_v63, %s6181_s20  ;;  %v5723_v59 = vpack.i.bf16 %v6980_v26, %v6975_v33 }
 0x384   : > { %5925 = vpow2.f32 %v1726_v13 }
 0x385   : > { %v5908_v18 = vpop.eup %5907 }
 0x386   : > { %v5910_v47 = vpop.eup %5909  ;;  %v1761_v4 = vmul.f32 %v5908_v18, %v6872_v46 }
 0x387   : > { %v5912_v22 = vpop.eup %5911  ;;  %v1737_v48 = vadd.f32 %v5910_v47, %v5908_v18  ;;  %v1769_v60 = vmul.f32 %v5910_v47, %v6876_v49  ;;  %5719 = vrot.lane.b32.xlu1 %v5718_v24, %s6181_s20  ;;  %v6124_v47 = vld [vmem:[%s6345_s6 + $0x8] sm:$0xff] }
 0x388   : > { %v5914_v34 = vpop.eup %5913  ;;  %v1823_v0 = vmul.f32 %v5912_v22, %v1807_v32  ;;  %v6123_v32 = vld [vmem:[%s6345_s6] sm:$0xff] }
 0x389   : > { %v5916_v29 = vpop.eup %5915  ;;  %v1745_v2 = vadd.f32 %v5914_v34, %v1737_v48  ;;  %v1777_v56 = vadd.f32 %v1769_v60, %v1761_v4  ;;  %v1785_v5 = vmul.f32 %v5914_v34, %v6880_v39 }
 0x38a   : > { %v5918_v61 = vpop.eup %5917  ;;  %v1801_v30 = vmul.f32 %v5916_v29, %v6885_v25 }
 0x38b   : > { %v5920_v12 = vpop.eup %5919  ;;  %v1753_v11 = vadd.f32 %v5916_v29, %v1745_v2  ;;  %v1760_v7 = vmul.f32 %v5918_v61, %v6874_v9  ;;  %v1793_v28 = vadd.f32 %v1785_v5, %v1777_v56  ;;  %5724 = vrot.lane.b32.xlu1 %v5723_v59, %s6181_s20  ;;  %v6126_v2 = vld [vmem:[%s6345_s6 + $0x18] sm:$0xff] }
 0x38c   : > { %v5922_v46 = vpop.eup %5921  ;;  %v1736_v14 = vadd.f32 %v5920_v12, %v5918_v61  ;;  %v1768_v35 = vmul.f32 %v5920_v12, %v6878_v31  ;;  %v5705_v31 = vpop.permute.xlu0 %5704 }
 0x38d   : > { %v5924_v49 = vpop.eup %5923  ;;  %5927 = vrcp.f32 %v1753_v11  ;;  %v1822_v53 = vmul.f32 %v5922_v46, %v1806_v62  ;;  %v1809_v54 = vadd.f32 %v1801_v30, %v1793_v28  ;;  %v5707_v36 = vunpack.i.h.bf16 %v5705_v31  ;;  %v6127_v11 = vld [vmem:[%s6345_s6 + $0x20] sm:$0xff]  ;;  %v6128_v28 = vld [vmem:[%s6345_s6 + $0x28] sm:$0xff] }
 0x38e   : > { %v5926_v38 = vpop.eup %5925  ;;  %v1744_v57 = vadd.f32 %v5924_v49, %v1736_v14  ;;  %v1776_v58 = vadd.f32 %v1768_v35, %v1760_v7  ;;  %v1784_v39 = vmul.f32 %v5924_v49, %v6882_v20  ;;  %v5706_v55 = vunpack.i.l.bf16 %v5705_v31 }
 0x38f   : > { %5230 = vmatprep.mubr.msk.f32.mxu0 %vm503_vm0, %v1822_v53  ;;  %v1800_v25 = vmul.f32 %v5926_v38, %v6887_v15  ;;  %v5710_v15 = vpop.permute.xlu1 %5709  ;;  %5729 = vrot.lane.b32.xlu1 %v5728_v50, %s6181_s20 }
 0x390   : > { %v1752_v21 = vadd.f32 %v5926_v38, %v1744_v57  ;;  %5231 = vmatmul.mubr.msk.f32.gmra.mrb[16].mxu0 %vm503_vm0, %v1823_v0  ;;  %v1792_v9 = vadd.f32 %v1784_v39, %v1776_v58  ;;  %v5536_v1 = vpack.c.bf16 %v5707_v36, %v5706_v55  ;;  %v5712_v42 = vunpack.i.h.bf16 %v5710_v15  ;;  %v6125_v0 = vld [vmem:[%s6345_s6 + $0x10] sm:$0xff]  ;;  %v6130_v57 = vld [vmem:[%s6345_s6 + $0x38] sm:$0xff]  ;;  %v7042_v39 = vld [vmem:[%s7934_s1 + $0x2] ss:$0 sm:$0xff] }
 0x391   : > { %v5711_v37 = vunpack.i.l.bf16 %v5710_v15  ;;  %2198 = vrot.lane.b32.xlu0 %v7042_v39, %s6181_s20 }
 0x392   : > { %5929 = vrcp.f32 %v1752_v21  ;;  %v1808_v43 = vadd.f32 %v1800_v25, %v1792_v9  ;;  %5537 = vmatprep.subr.bf16.mxu0 %v5536_v1 }
 0x393   : > { %5539 = vmatpush3.bf16.msra.mxu0 %v5536_v1  ;;  %v5540_v45 = vpack.c.bf16 %v5712_v42, %v5711_v37  ;;  %v1831_v13 = vpop.permute.xlu1 %1830 }
 0x395   : > { %5541 = vmatprep.subr.bf16.mxu0 %v5540_v45 }
 0x397   : > { %v5928_v6 = vpop.eup %5927  ;;  %5543 = vmatpush3.bf16.msra.mxu0 %v5540_v45 }
 0x398   : > { %v1825_v10 = vmul.f32 %v5928_v6, %v1809_v54  ;;  %v6129_v54 = vld [vmem:[%s6345_s6 + $0x30] sm:$0xff] }
 0x39c   : > { %v5930_v8 = vpop.eup %5929 }
 0x39d   : > { %v1824_v20 = vmul.f32 %v5930_v8, %v1808_v43 }
 0x39f   : > { %5233 = vmatprep.mubr.msk.f32.mxu0 %vm503_vm0, %v1824_v20 }
 0x3a0   : > { %5234 = vmatmul.mubr.msk.f32.gmra.mrb[18].mxu0 %vm503_vm0, %v1825_v10 }
 0x3f5   : > { %v5715_v25 = vpop.permute.xlu1 %5714 }
 0x3f6   : > { %v5717_v21 = vunpack.i.h.bf16 %v5715_v25  ;;  %v5716_v9 = vunpack.i.l.bf16 %v5715_v25 }
 0x3f8   : > { %v5544_v43 = vpack.c.bf16 %v5717_v21, %v5716_v9 }
 0x3f9   : > { %v5720_v31 = vpop.permute.xlu1 %5719 }
 0x3fa   : > { %v5722_v36 = vunpack.i.h.bf16 %v5720_v31  ;;  %v5721_v55 = vunpack.i.l.bf16 %v5720_v31  ;;  %5545 = vmatprep.subr.bf16.mxu0 %v5544_v43 }
 0x3fc   : > { %v5548_v6 = vpack.c.bf16 %v5722_v36, %v5721_v55 }
 0x3fd   : > { %v5725_v10 = vpop.permute.xlu1 %5724 }
 0x3fe   : > { %v5727_v1 = vunpack.i.h.bf16 %v5725_v10  ;;  %v5726_v8 = vunpack.i.l.bf16 %v5725_v10 }
 0x400   : > { %v5552_v20 = vpack.c.bf16 %v5727_v1, %v5726_v8 }
 0x401   : > { %v5730_v15 = vpop.permute.xlu1 %5729 }
 0x402   : > { %v5732_v42 = vunpack.i.h.bf16 %v5730_v15  ;;  %v5731_v37 = vunpack.i.l.bf16 %v5730_v15 }
 0x404   : > { %v5556_v45 = vpack.c.bf16 %v5732_v42, %v5731_v37 }
 0x442   : > { %v5226_v52 = vpop.f32.mrb[12].mxu0 }
 0x443   : > { %v1929_v19 = vadd.f32 %v5226_v52, %v1831_v13  ;;  %v1923_v16 = vpop.f32.mrb[13].mxu0 }
 0x444   : > { %v1924_v62 = vadd.f32 %v1923_v16, %v1831_v13 }
 0x445   : > { %v7003_v4 = vadd.f32 %v6124_v47, %v1929_v19 }
 0x446   : > { %v7000_v18 = vadd.f32 %v6123_v32, %v1924_v62 }
 0x448   : > { %5244 = vmatprep.mubr.msk.f32.mxu0 %vm503_vm0, %v7000_v18 }
 0x449   : > { %5245 = vmatmul.mubr.msk.f32.vlgmr.msra.gmra.mrb[20].mxu0 %vm503_vm0, %v7003_v4 }
 0x44a   : > { %5547 = vmatpush3.bf16.msra.mxu0 %v5544_v43 }
 0x44b   : > { %5549 = vmatprep.subr.bf16.mxu0 %v5548_v6 }
 0x44e   : > { %5551 = vmatpush3.bf16.msra.mxu0 %v5548_v6 }
 0x44f   : > { %5553 = vmatprep.subr.bf16.mxu0 %v5552_v20 }
 0x452   : > { %5555 = vmatpush3.bf16.msra.mxu0 %v5552_v20 }
 0x453   : > { %5557 = vmatprep.subr.bf16.mxu0 %v5556_v45 }
 0x455   : > { %v5229_v22 = vpop.f32.mrb[14].mxu0 }
 0x456   : > { %v1939_v48 = vadd.f32 %v5229_v22, %v1831_v13  ;;  %v1933_v60 = vpop.f32.mrb[15].mxu0  ;;  %5559 = vmatpush3.bf16.msra.mxu0 %v5556_v45 }
 0x457   : > { %v1934_v34 = vadd.f32 %v1933_v60, %v1831_v13 }
 0x458   : > { %v7013_v56 = vadd.f32 %v6126_v2, %v1939_v48 }
 0x459   : > { %v7010_v29 = vadd.f32 %v6125_v0, %v1934_v34 }
 0x45b   : > { %5247 = vmatprep.mubr.msk.f32.mxu0 %vm503_vm0, %v7010_v29 }
 0x45c   : > { %5248 = vmatmul.mubr.msk.f32.gmra.mrb[22].mxu0 %vm503_vm0, %v7013_v56 }
 0x463   : > { %v5232_v5 = vpop.f32.mrb[16].mxu0 }
 0x464   : > { %v1949_v61 = vadd.f32 %v5232_v5, %v1831_v13  ;;  %v1943_v30 = vpop.f32.mrb[17].mxu0 }
 0x465   : > { %v1944_v12 = vadd.f32 %v1943_v30, %v1831_v13 }
 0x466   : > { %v7023_v46 = vadd.f32 %v6128_v28, %v1949_v61 }
 0x467   : > { %v7020_v7 = vadd.f32 %v6127_v11, %v1944_v12 }
 0x469   : > { %5250 = vmatprep.mubr.msk.f32.mxu0 %vm503_vm0, %v7020_v7 }
 0x46a   : > { %5251 = vmatmul.mubr.msk.f32.gmra.mrb[24].mxu0 %vm503_vm0, %v7023_v46 }
 0x473   : > { %v5235_v14 = vpop.f32.mrb[18].mxu0 }
 0x474   : > { %v1959_v35 = vadd.f32 %v5235_v14, %v1831_v13  ;;  %v1953_v49 = vpop.f32.mrb[19].mxu0 }
 0x475   : > { %v1954_v53 = vadd.f32 %v1953_v49, %v1831_v13 }
 0x476   : > { %v7033_v58 = vadd.f32 %v6130_v57, %v1959_v35 }
 0x477   : > { %v7030_v38 = vadd.f32 %v6129_v54, %v1954_v53 }
 0x479   : > { %5253 = vmatprep.mubr.msk.f32.mxu0 %vm503_vm0, %v7030_v38 }
 0x47a   : > { %5254 = vmatmul.mubr.msk.f32.gmra.mrb[26].mxu0 %vm503_vm0, %v7033_v58 }
 0x51c   : > { %v5246_v63 = vpop.f32.mrb[20].mxu0 }
 0x51d   : > { %v2093_v24 = vadd.f32 %v5246_v63, %v7042_v39  ;;  %v2087_v59 = vpop.f32.mrb[21].mxu0 }
 0x51e   : > { %v2088_v50 = vadd.f32 %v7042_v39, %v2087_v59 }
 0x51f   : > { %v2135_v13 = vmul.f32 0.70710677, %v2093_v24  ;;  %v2127_v22 = vmul.f32 0.5, %v2093_v24 }
 0x520   : > { %v2134_v52 = vmul.f32 0.70710677, %v2088_v50  ;;  %v2126_v32 = vmul.f32 0.5, %v2088_v50 }
 0x521   : > { %5931 = verf.f32 %v2135_v13 }
 0x522   : > { %5933 = verf.f32 %v2134_v52 }
 0x52b   : > { %v5932_v19 = vpop.eup %5931 }
 0x52c   : > { %v5934_v16 = vpop.eup %5933  ;;  %v2151_v62 = vadd.f32 1.0, %v5932_v19 }
 0x52d   : > { %v2150_v47 = vadd.f32 1.0, %v5934_v16 }
 0x52e   : > { %v2159_v34 = vmul.f32 %v2151_v62, %v2127_v22  ;;  %v2199_v22 = vpop.permute.xlu0 %2198 }
 0x52f   : > { %v2158_v48 = vmul.f32 %v2150_v47, %v2126_v32  ;;  %v5249_v60 = vpop.f32.mrb[22].mxu0 }
 0x530   : > { %v2103_v0 = vadd.f32 %v5249_v60, %v7042_v39  ;;  %v2097_v2 = vpop.f32.mrb[23].mxu0 }
 0x531   : > { %v2098_v5 = vadd.f32 %v7042_v39, %v2097_v2  ;;  %5272 = vmatprep.mubr.msk.f32.mxu0 %vm2201_vm1, %v2158_v48 }
 0x532   : > { %v2137_v61 = vmul.f32 0.70710677, %v2103_v0  ;;  %5273 = vmatmul.mubr.msk.f32.vlgmr.msra.gmra.mrb[28].mxu0 %vm2201_vm1, %v2159_v34  ;;  %v2129_v21 = vmul.f32 0.5, %v2103_v0 }
 0x533   : > { %v2136_v30 = vmul.f32 0.70710677, %v2098_v5  ;;  %v2128_v54 = vmul.f32 0.5, %v2098_v5 }
 0x534   : > { %5935 = verf.f32 %v2137_v61 }
 0x535   : > { %5937 = verf.f32 %v2136_v30 }
 0x53d   : > { %v5252_v12 = vpop.f32.mrb[24].mxu0 }
 0x53e   : > { %v5936_v11 = vpop.eup %5935  ;;  %v2113_v28 = vadd.f32 %v5252_v12, %v7042_v39  ;;  %v2107_v14 = vpop.f32.mrb[25].mxu0 }
 0x53f   : > { %v5938_v35 = vpop.eup %5937  ;;  %v2153_v49 = vadd.f32 1.0, %v5936_v11  ;;  %v2108_v53 = vadd.f32 %v7042_v39, %v2107_v14 }
 0x540   : > { %v2152_v57 = vadd.f32 1.0, %v5938_v35  ;;  %v2139_v25 = vmul.f32 0.70710677, %v2113_v28  ;;  %v2131_v42 = vmul.f32 0.5, %v2113_v28 }
 0x541   : > { %v2138_v9 = vmul.f32 0.70710677, %v2108_v53  ;;  %v2161_v31 = vmul.f32 %v2153_v49, %v2129_v21  ;;  %v2130_v1 = vmul.f32 0.5, %v2108_v53 }
 0x542   : > { %v2160_v43 = vmul.f32 %v2152_v57, %v2128_v54  ;;  %5939 = verf.f32 %v2139_v25 }
 0x543   : > { %5941 = verf.f32 %v2138_v9 }
 0x544   : > { %5275 = vmatprep.mubr.msk.f32.mxu0 %vm2201_vm1, %v2160_v43 }
 0x545   : > { %5276 = vmatmul.mubr.msk.f32.gmra.mrb[30].mxu0 %vm2201_vm1, %v2161_v31 }
 0x54c   : > { %v5940_v36 = vpop.eup %5939 }
 0x54d   : > { %v5942_v55 = vpop.eup %5941  ;;  %v2155_v6 = vadd.f32 1.0, %v5940_v36  ;;  %v5255_v10 = vpop.f32.mrb[26].mxu0 }
 0x54e   : > { %v2154_v8 = vadd.f32 1.0, %v5942_v55  ;;  %v2123_v20 = vadd.f32 %v5255_v10, %v7042_v39  ;;  %v2117_v15 = vpop.f32.mrb[27].mxu0 }
 0x54f   : > { %v2118_v37 = vadd.f32 %v7042_v39, %v2117_v15  ;;  %v2163_v24 = vmul.f32 %v2155_v6, %v2131_v42 }
 0x550   : > { %v2162_v45 = vmul.f32 %v2154_v8, %v2130_v1  ;;  %v2141_v63 = vmul.f32 0.70710677, %v2123_v20  ;;  %v2133_v62 = vmul.f32 0.5, %v2123_v20 }
 0x551   : > { %v2140_v59 = vmul.f32 0.70710677, %v2118_v37  ;;  %v2132_v19 = vmul.f32 0.5, %v2118_v37 }
 0x552   : > { %5943 = verf.f32 %v2141_v63  ;;  %5278 = vmatprep.mubr.msk.f32.mxu0 %vm2201_vm1, %v2162_v45 }
 0x553   : > { %5945 = verf.f32 %v2140_v59  ;;  %5279 = vmatmul.mubr.msk.f32.gmra.mrb[32].mxu0 %vm2201_vm1, %v2163_v24 }
 0x55c   : > { %v5944_v50 = vpop.eup %5943 }
 0x55d   : > { %v5946_v13 = vpop.eup %5945  ;;  %v2157_v52 = vadd.f32 1.0, %v5944_v50 }
 0x55e   : > { %v2156_v16 = vadd.f32 1.0, %v5946_v13 }
 0x55f   : > { %v2165_v47 = vmul.f32 %v2157_v52, %v2133_v62 }
 0x560   : > { %v2164_v32 = vmul.f32 %v2156_v16, %v2132_v19 }
 0x562   : > { %5281 = vmatprep.mubr.msk.f32.mxu0 %vm2201_vm1, %v2164_v32 }
 0x563   : > { %5282 = vmatmul.mubr.msk.f32.gmra.mrb[34].mxu0 %vm2201_vm1, %v2165_v47 }
 0x564   : > { %5300 = vmatprep.mubr.msk.f32.mxu0 %vm2201_vm1, %v6950_v51 }
 0x605   : > { %v5274_v48 = vpop.f32.mrb[28].mxu0 }
 0x606   : > { %v2298_v60 = vadd.f32 %v5274_v48, %v2199_v22  ;;  %v2292_v34 = vpop.f32.mrb[29].mxu0 }
 0x607   : > { %v2293_v0 = vadd.f32 %v2292_v34, %v2199_v22 }
 0x608   : > { %v2332_v2 = vadd.f32 %v2298_v60, %v7003_v4 }
 0x609   : > { %v2331_v5 = vadd.f32 %v2293_v0, %v7000_v18 }
 0x60a   : > { %v2342_v61 = vsel %vm503_vm0, %v2332_v2, 0.0 }
 0x60b   : > { %2343 = vadd.xlane.f32.xlu0 %v2342_v61  ;;  %v2339_v30 = vsel %vm503_vm0, %v2331_v5, 0.0 }
 0x60c   : > { %2340 = vadd.xlane.f32.xlu1 %v2339_v30 }
 0x618   : > { %v5277_v12 = vpop.f32.mrb[30].mxu0 }
 0x619   : > { %v2308_v11 = vadd.f32 %v5277_v12, %v2199_v22  ;;  %v2302_v28 = vpop.f32.mrb[31].mxu0 }
 0x61a   : > { %v2303_v14 = vadd.f32 %v2302_v28, %v2199_v22 }
 0x61b   : > { %v2334_v51 = vadd.f32 %v2308_v11, %v7013_v56 }
 0x61c   : > { %v2333_v35 = vadd.f32 %v2303_v14, %v7010_v29 }
 0x61d   : > { %v2348_v49 = vsel %vm503_vm0, %v2334_v51, 0.0 }
 0x61e   : > { %2349 = vadd.xlane.f32.xlu1 %v2348_v49  ;;  %v2345_v4 = vsel %vm503_vm0, %v2333_v35, 0.0 }
 0x61f   : > { %2346 = vadd.xlane.f32.xlu0 %v2345_v4 }
 0x626   : > { %v5280_v18 = vpop.f32.mrb[32].mxu0 }
 0x627   : > { %v2318_v53 = vadd.f32 %v5280_v18, %v2199_v22  ;;  %v2312_v54 = vpop.f32.mrb[33].mxu0 }
 0x628   : > { %v2313_v57 = vadd.f32 %v2312_v54, %v2199_v22 }
 0x629   : > { %v2336_v25 = vadd.f32 %v2318_v53, %v7023_v46 }
 0x62a   : > { %v2335_v21 = vadd.f32 %v2313_v57, %v7020_v7  ;;  %v4660_v57 = vld [vmem:[%s6345_s6 + $0xc8] sm:$0xff] }
 0x62b   : > { %v2354_v9 = vsel %vm503_vm0, %v2336_v25, 0.0 }
 0x62c   : > { %2355 = vadd.xlane.f32.xlu1 %v2354_v9  ;;  %v2351_v56 = vsel %vm503_vm0, %v2335_v21, 0.0 }
 0x62d   : > { %2352 = vadd.xlane.f32.xlu0 %v2351_v56 }
 0x636   : > { %v5283_v29 = vpop.f32.mrb[34].mxu0 }
 0x637   : > { %v2328_v43 = vadd.f32 %v5283_v29, %v2199_v22  ;;  %v2322_v31 = vpop.f32.mrb[35].mxu0 }
 0x638   : > { %v2323_v36 = vadd.f32 %v2322_v31, %v2199_v22  ;;  %v4661_v31 = vld [vmem:[%s6345_s6 + $0xd0] sm:$0xff] }
 0x639   : > { %v2338_v55 = vadd.f32 %v2328_v43, %v7033_v58  ;;  %v7137_v43 = vld [vmem:[%s6345_s6 + $0x150] sm:$0xff] }
 0x63a   : > { %v2337_v6 = vadd.f32 %v2323_v36, %v7030_v38 }
 0x63b   : > { %v2360_v10 = vsel %vm503_vm0, %v2338_v55, 0.0 }
 0x63c   : > { %2361 = vadd.xlane.f32.xlu1 %v2360_v10  ;;  %v2357_v46 = vsel %vm503_vm0, %v2337_v6, 0.0  ;;  %v7147_v10 = vld [vmem:[%s6345_s6 + $0x158] sm:$0xff] }
 0x63d   : > { %2358 = vadd.xlane.f32.xlu0 %v2357_v46 }
 0x698   : > { %v2344_v7 = vpop.xlane.xlu0 %2343 }
 0x699   : > { %v2364_v1 = vmul.f32 0.03125, %v2344_v7  ;;  %v2341_v8 = vpop.xlane.xlu1 %2340 }
 0x69a   : > { %v2363_v20 = vmul.f32 0.03125, %v2341_v8  ;;  %v7159_v8 = vld [vmem:[%s6345_s6 + $0x170] sm:$0xff] }
 0x69b   : > { %v7080_v15 = vsub.f32 %v2332_v2, %v2364_v1 }
 0x69c   : > { %v7082_v42 = vsub.f32 %v2331_v5, %v2363_v20  ;;  %v4665_v20 = vld [vmem:[%s6345_s6 + $0xf0] sm:$0xff] }
 0x69d   : > { %v2380_v37 = vmul.f32 %v7080_v15, %v7080_v15 }
 0x69e   : > { %v2379_v38 = vmul.f32 %v7082_v42, %v7082_v42 }
 0x69f   : > { %v2390_v58 = vsel %vm503_vm0, %v2380_v37, 0.0  ;;  %v7163_v37 = vld [vmem:[%s6345_s6 + $0x160] sm:$0xff] }
 0x6a0   : > { %2391 = vadd.xlane.f32.xlu1 %v2390_v58  ;;  %v2387_v45 = vsel %vm503_vm0, %v2379_v38, 0.0  ;;  %v7166_v38 = vadd.f32 %v7159_v8, %v4665_v20  ;;  %v4663_v58 = vld [vmem:[%s6345_s6 + $0xe0] sm:$0xff] }
 0x6a1   : > { %2388 = vadd.xlane.f32.xlu0 %v2387_v45  ;;  %v4664_v45 = vld [vmem:[%s6345_s6 + $0xe8] sm:$0xff] }
 0x6ab   : > { %v2350_v63 = vpop.xlane.xlu1 %2349 }
 0x6ac   : > { %v2366_v24 = vmul.f32 0.03125, %v2350_v63  ;;  %v2347_v59 = vpop.xlane.xlu0 %2346  ;;  %v7171_v63 = vld [vmem:[%s6345_s6 + $0x168] sm:$0xff] }
 0x6ad   : > { %v2365_v50 = vmul.f32 0.03125, %v2347_v59  ;;  %v7177_v59 = vadd.f32 %v7171_v63, %v4664_v45 }
 0x6ae   : > { %v7090_v13 = vsub.f32 %v2334_v51, %v2366_v24  ;;  %v7111_v51 = vld [vmem:[%s6345_s6 + $0x140] sm:$0xff]  ;;  %v7174_v24 = vadd.f32 %v7163_v37, %v4663_v58 }
 0x6af   : > { %v7092_v52 = vsub.f32 %v2333_v35, %v2365_v50  ;;  %v4659_v35 = vld [vmem:[%s6345_s6 + $0xc0] sm:$0xff]  ;;  %v4666_v50 = vld [vmem:[%s6345_s6 + $0xf8] sm:$0xff] }
 0x6b0   : > { %v2382_v19 = vmul.f32 %v7090_v13, %v7090_v13  ;;  %v7121_v53 = vadd.f32 %v7111_v51, %v4659_v35 }
 0x6b1   : > { %v2381_v16 = vmul.f32 %v7092_v52, %v7092_v52 }
 0x6b2   : > { %v2396_v62 = vsel %vm503_vm0, %v2382_v19, 0.0  ;;  %v2598_v56 = vsel %vm503_vm0, %v7121_v53, 0.0  ;;  %v7183_v19 = vld [vmem:[%s6345_s6 + $0x178] sm:$0xff] }
 0x6b3   : > { %2397 = vadd.xlane.f32.xlu1 %v2396_v62  ;;  %v2393_v32 = vsel %vm503_vm0, %v2381_v16, 0.0  ;;  %v2610_v16 = vsel %vm503_vm0, %v7174_v24, 0.0  ;;  %v2613_v62 = vsel %vm503_vm0, %v7177_v59, 0.0 }
 0x6b4   : > { %2394 = vadd.xlane.f32.xlu0 %v2393_v32  ;;  %v7190_v32 = vadd.f32 %v7183_v19, %v4666_v50 }
 0x6b9   : > { %v2356_v47 = vpop.xlane.xlu1 %2355 }
 0x6ba   : > { %v2368_v22 = vmul.f32 0.03125, %v2356_v47  ;;  %v2353_v48 = vpop.xlane.xlu0 %2352  ;;  %v2619_v47 = vsel %vm503_vm0, %v7190_v32, 0.0 }
 0x6bb   : > { %v2367_v60 = vmul.f32 0.03125, %v2353_v48 }
 0x6bc   : > { %v7100_v34 = vsub.f32 %v2336_v25, %v2368_v22  ;;  %v7127_v25 = vld [vmem:[%s6345_s6 + $0x148] sm:$0xff] }
 0x6bd   : > { %v7102_v0 = vsub.f32 %v2335_v21, %v2367_v60  ;;  %v7134_v29 = vadd.f32 %v7127_v25, %v4660_v57 }
 0x6be   : > { %v2384_v2 = vmul.f32 %v7100_v34, %v7100_v34 }
 0x6bf   : > { %v2383_v5 = vmul.f32 %v7102_v0, %v7102_v0  ;;  %v2601_v36 = vsel %vm503_vm0, %v7134_v29, 0.0 }
 0x6c0   : > { %v2402_v61 = vsel %vm503_vm0, %v2384_v2, 0.0 }
 0x6c1   : > { %2403 = vadd.xlane.f32.xlu1 %v2402_v61  ;;  %v2399_v30 = vsel %vm503_vm0, %v2383_v5, 0.0 }
 0x6c2   : > { %2400 = vadd.xlane.f32.xlu0 %v2399_v30 }
 0x6c9   : > { %v2362_v12 = vpop.xlane.xlu1 %2361 }
 0x6ca   : > { %v2370_v11 = vmul.f32 0.03125, %v2362_v12  ;;  %v2359_v28 = vpop.xlane.xlu0 %2358 }
 0x6cb   : > { %v2369_v14 = vmul.f32 0.03125, %v2359_v28 }
 0x6cc   : > { %v7114_v49 = vsub.f32 %v2338_v55, %v2370_v11  ;;  %v7143_v55 = vadd.f32 %v7137_v43, %v4661_v31 }
 0x6cd   : > { %v7116_v4 = vsub.f32 %v2337_v6, %v2369_v14  ;;  %v4662_v6 = vld [vmem:[%s6345_s6 + $0xd8] sm:$0xff] }
 0x6ce   : > { %v2386_v18 = vmul.f32 %v7114_v49, %v7114_v49  ;;  %v2604_v46 = vsel %vm503_vm0, %v7143_v55, 0.0  ;;  %v7152_v7 = vadd.f32 %v7147_v10, %v4662_v6 }
 0x6cf   : > { %v2385_v54 = vmul.f32 %v7116_v4, %v7116_v4 }
 0x6d0   : > { %v2408_v21 = vsel %vm503_vm0, %v2386_v18, 0.0  ;;  %v2607_v1 = vsel %vm503_vm0, %v7152_v7, 0.0 }
 0x6d1   : > { %2409 = vadd.xlane.f32.xlu1 %v2408_v21  ;;  %v2405_v9 = vsel %vm503_vm0, %v2385_v54, 0.0 }
 0x6d2   : > { %2406 = vadd.xlane.f32.xlu0 %v2405_v9 }
 0x6d5   : > { %2599 = vadd.xlane.f32.xlu1 %v2598_v56 }
 0x6d9   : > { %2602 = vadd.xlane.f32.xlu1 %v2601_v36 }
 0x6dd   : > { %2605 = vadd.xlane.f32.xlu1 %v2604_v46 }
 0x6e1   : > { %2608 = vadd.xlane.f32.xlu1 %v2607_v1 }
 0x6e5   : > { %2611 = vadd.xlane.f32.xlu1 %v2610_v16 }
 0x6e8   : > { %2443 = vrot.lane.b32.xlu0 %v7042_v39, %s6182_s24  ;;  %v2616_v39 = vsel %vm503_vm0, %v7166_v38, 0.0 }
 0x6e9   : > { %2614 = vadd.xlane.f32.xlu1 %v2613_v62 }
 0x6ed   : > { %2620 = vadd.xlane.f32.xlu1 %v2619_v47 }
 0x707   : > { %2617 = vadd.xlane.f32.xlu0 %v2616_v39 }
 0x72d   : > { %v2392_v22 = vpop.xlane.xlu1 %2391 }
 0x72e   : > { %v2389_v48 = vpop.xlane.xlu0 %2388  ;;  %v2412_v2 = vmul.f32 0.03125, %v2392_v22 }
 0x72f   : > { %v2411_v61 = vmul.f32 0.03125, %v2389_v48 }
 0x730   : > { %v2420_v11 = vadd.f32 1e-05, %v2412_v2 }
 0x731   : > { %v2419_v28 = vadd.f32 1e-05, %v2411_v61  ;;  %v4765_v61 = vld [vmem:[%s7934_s1 + $0x3] ss:$0 sm:$0xff] }
 0x732   : > { %5947 = vrsqrt.f32 %v2420_v11 }
 0x733   : > { %5949 = vrsqrt.f32 %v2419_v28 }
 0x73c   : > { %v5948_v31 = vpop.eup %5947 }
 0x73d   : > { %v5950_v36 = vpop.eup %5949  ;;  %v2436_v62 = vmul.f32 %v5948_v31, %v7080_v15 }
 0x73e   : > { %v2435_v22 = vmul.f32 %v5950_v36, %v7082_v42 }
 0x740   : > { %v2398_v60 = vpop.xlane.xlu1 %2397 }
 0x741   : > { %v2395_v5 = vpop.xlane.xlu0 %2394  ;;  %v2414_v30 = vmul.f32 0.03125, %v2398_v60 }
 0x742   : > { %v2413_v12 = vmul.f32 0.03125, %v2395_v5 }
 0x743   : > { %v2422_v35 = vadd.f32 1e-05, %v2414_v30 }
 0x744   : > { %v2421_v57 = vadd.f32 1e-05, %v2413_v12 }
 0x745   : > { %5951 = vrsqrt.f32 %v2422_v35 }
 0x746   : > { %5953 = vrsqrt.f32 %v2421_v57 }
 0x74e   : > { %v2404_v14 = vpop.xlane.xlu1 %2403 }
 0x74f   : > { %v2416_v18 = vmul.f32 0.03125, %v2404_v14  ;;  %v2401_v54 = vpop.xlane.xlu0 %2400  ;;  %v5952_v6 = vpop.eup %5951 }
 0x750   : > { %v2415_v21 = vmul.f32 0.03125, %v2401_v54  ;;  %v5954_v46 = vpop.eup %5953  ;;  %v2438_v60 = vmul.f32 %v5952_v6, %v7090_v13 }
 0x751   : > { %v2424_v9 = vadd.f32 1e-05, %v2416_v18  ;;  %v2437_v48 = vmul.f32 %v5954_v46, %v7092_v52 }
 0x752   : > { %v2423_v56 = vadd.f32 1e-05, %v2415_v21 }
 0x753   : > { %5955 = vrsqrt.f32 %v2424_v9 }
 0x754   : > { %5957 = vrsqrt.f32 %v2423_v56 }
 0x75d   : > { %v5956_v20 = vpop.eup %5955 }
 0x75e   : > { %v2410_v1 = vpop.xlane.xlu1 %2409  ;;  %v5958_v39 = vpop.eup %5957  ;;  %v2440_v12 = vmul.f32 %v5956_v20, %v7100_v34 }
 0x75f   : > { %v2418_v58 = vmul.f32 0.03125, %v2410_v1  ;;  %v2407_v45 = vpop.xlane.xlu0 %2406  ;;  %v2439_v30 = vmul.f32 %v5958_v39, %v7102_v0 }
 0x760   : > { %v2417_v50 = vmul.f32 0.03125, %v2407_v45 }
 0x761   : > { %v2426_v16 = vadd.f32 1e-05, %v2418_v58 }
 0x762   : > { %v2425_v47 = vadd.f32 1e-05, %v2417_v50  ;;  %v2600_v2 = vpop.xlane.xlu1 %2599 }
 0x763   : > { %5959 = vrsqrt.f32 %v2426_v16  ;;  %v2444_v5 = vpop.permute.xlu0 %2443  ;;  %v2622_v11 = vmul.f32 0.03125, %v2600_v2 }
 0x764   : > { %5961 = vrsqrt.f32 %v2425_v47  ;;  %v2446_v15 = vmul.f32 %v2444_v5, %v2435_v22  ;;  %v2447_v28 = vmul.f32 %v2444_v5, %v2436_v62  ;;  %v2448_v42 = vmul.f32 %v2444_v5, %v2437_v48 }
 0x765   : > { %v2449_v14 = vmul.f32 %v2444_v5, %v2438_v60  ;;  %v2450_v52 = vmul.f32 %v2444_v5, %v2439_v30  ;;  %v2630_v13 = vsub.f32 %v7121_v53, %v2622_v11  ;;  %v2451_v57 = vmul.f32 %v2444_v5, %v2440_v12 }
 0x766   : > { %v2461_v35 = vadd.f32 %v4765_v61, %v2446_v15  ;;  %v2462_v18 = vadd.f32 %v4765_v61, %v2447_v28  ;;  %v2463_v54 = vadd.f32 %v4765_v61, %v2448_v42  ;;  %v2603_v21 = vpop.xlane.xlu1 %2602 }
 0x767   : > { %v2464_v9 = vadd.f32 %v4765_v61, %v2449_v14  ;;  %v2623_v56 = vmul.f32 0.03125, %v2603_v21  ;;  %v2638_v0 = vmul.f32 %v2630_v13, %v2630_v13  ;;  %v2465_v6 = vadd.f32 %v4765_v61, %v2450_v52 }
 0x768   : > { %v5560_v31 = vpack.c.bf16 %v2462_v18, %v2461_v35  ;;  %v2466_v46 = vadd.f32 %v4765_v61, %v2451_v57 }
 0x769   : > { %v7205_v34 = vsub.f32 %v7134_v29, %v2623_v56  ;;  %v5564_v36 = vpack.c.bf16 %v2464_v9, %v2463_v54  ;;  %v2646_v20 = vsel %vm503_vm0, %v2638_v0, 0.0 }
 0x76a   : > { %5561 = vmatprep.subr.bf16.mxu0 %v5560_v31  ;;  %v2606_v1 = vpop.xlane.xlu1 %2605  ;;  %2647 = vadd.xlane.f32.xlu0 %v2646_v20  ;;  %v5568_v16 = vpack.c.bf16 %v2466_v46, %v2465_v6  ;;  %v6131_v6 = vld [vmem:[%s7935_s2 + $0x8] sm:$0xff] }
 0x76b   : > { %5563 = vmatpush3.bf16.msra.mxu0 %v5560_v31  ;;  %v2624_v53 = vmul.f32 0.03125, %v2606_v1  ;;  %v2639_v58 = vmul.f32 %v7205_v34, %v7205_v34 }
 0x76c   : > { %5565 = vmatprep.subr.bf16.mxu0 %v5564_v36 }
 0x76d   : > { %v5960_v45 = vpop.eup %5959  ;;  %v7211_v39 = vsub.f32 %v7143_v55, %v2624_v53  ;;  %v2649_v29 = vsel %vm503_vm0, %v2639_v58, 0.0 }
 0x76e   : > { %v5962_v50 = vpop.eup %5961  ;;  %v2442_v62 = vmul.f32 %v5960_v45, %v7114_v49  ;;  %v2609_v47 = vpop.xlane.xlu1 %2608  ;;  %2650 = vadd.xlane.f32.xlu0 %v2649_v29 }
 0x76f   : > { %5567 = vmatpush3.bf16.msra.mxu0 %v5564_v36  ;;  %v2441_v22 = vmul.f32 %v5962_v50, %v7116_v4  ;;  %v2625_v48 = vmul.f32 0.03125, %v2609_v47  ;;  %v2640_v60 = vmul.f32 %v7211_v39, %v7211_v39 }
 0x770   : > { %5569 = vmatprep.subr.bf16.mxu0 %v5568_v16  ;;  %v2453_v2 = vmul.f32 %v2444_v5, %v2442_v62 }
 0x771   : > { %v2452_v30 = vmul.f32 %v2444_v5, %v2441_v22  ;;  %v7219_v55 = vsub.f32 %v7152_v7, %v2625_v48  ;;  %v2652_v12 = vsel %vm503_vm0, %v2640_v60, 0.0 }
 0x772   : > { %v2468_v11 = vadd.f32 %v4765_v61, %v2453_v2  ;;  %2653 = vadd.xlane.f32.xlu0 %v2652_v12 }
 0x773   : > { %5571 = vmatpush3.bf16.msra.mxu0 %v5568_v16  ;;  %v2467_v49 = vadd.f32 %v4765_v61, %v2452_v30  ;;  %v2641_v4 = vmul.f32 %v7219_v55, %v7219_v55 }
 0x775   : > { %v5572_v15 = vpack.c.bf16 %v2468_v11, %v2467_v49  ;;  %v2655_v28 = vsel %vm503_vm0, %v2641_v4, 0.0 }
 0x776   : > { %2656 = vadd.xlane.f32.xlu1 %v2655_v28 }
 0x777   : > { %5573 = vmatprep.subr.bf16.mxu0 %v5572_v15 }
 0x778   : > { %5575 = vmatpush3.bf16.msra.mxu0 %v5572_v15 }
 0x77b   : > { %5301 = vmatmul.mubr.msk.f32.vlgmr.msra.gmra.mrb[36].mxu0 %vm2201_vm1, %v6955_v40 }
 0x77c   : > { %5303 = vmatprep.mubr.msk.f32.mxu0 %vm2201_vm1, %v6960_v41 }
 0x77f   : > { %5304 = vmatmul.mubr.msk.f32.gmra.mrb[38].mxu0 %vm2201_vm1, %v6967_v23 }
 0x780   : > { %5306 = vmatprep.mubr.msk.f32.mxu0 %vm2201_vm1, %v6975_v33 }
 0x783   : > { %5307 = vmatmul.mubr.msk.f32.gmra.mrb[40].mxu0 %vm2201_vm1, %v6980_v26 }
 0x784   : > { %5309 = vmatprep.mubr.msk.f32.mxu0 %vm2201_vm1, %v6988_v17 }
 0x787   : > { %5310 = vmatmul.mubr.msk.f32.gmra.mrb[42].mxu0 %vm2201_vm1, %v6993_v44 }
 0x794   : > { %v7239_v7 = vpop.xlane.xlu0 %2617 }
 0x7f7   : > { %v2648_v40 = vpop.xlane.xlu0 %2647 }
 0x7f8   : > { %v2670_v5 = vmul.f32 0.03125, %v2648_v40 }
 0x7fa   : > { %v2678_v41 = vadd.f32 1e-05, %v2670_v5 }
 0x7fb   : > { %v7279_v53 = vpop.xlane.xlu0 %2650 }
 0x7fc   : > { %5963 = vrsqrt.f32 %v2678_v41 }
 0x7ff   : > { %v7283_v45 = vpop.xlane.xlu0 %2653 }
 0x806   : > { %v5964_v61 = vpop.eup %5963 }
 0x807   : > { %v2694_v23 = vmul.f32 %v5964_v61, %v2630_v13 }
 0x809   : > { %5320 = vmatprep.mubr.msk.f32.mxu1 %vm503_vm0, %v2694_v23 }
 0x84e   : > { %v5302_v33 = vpop.f32.mrb[36].mxu0 }
 0x84f   : > { %v2565_v42 = vadd.f32 %v5302_v33, %v7127_v25  ;;  %v2559_v26 = vpop.f32.mrb[37].mxu0 }
 0x850   : > { %v2560_v14 = vadd.f32 %v7111_v51, %v2559_v26 }
 0x851   : > { %v2857_v17 = vsel %vm503_vm0, %v2565_v42, 0.0 }
 0x852   : > { %2858 = vadd.xlane.f32.xlu1 %v2857_v17  ;;  %v5305_v44 = vpop.f32.mrb[38].mxu0  ;;  %v2854_v13 = vsel %vm503_vm0, %v2560_v14, 0.0 }
 0x853   : > { %v2575_v52 = vadd.f32 %v5305_v44, %v7147_v10  ;;  %v2569_v35 = vpop.f32.mrb[39].mxu0 }
 0x854   : > { %v2570_v18 = vadd.f32 %v7137_v43, %v2569_v35 }
 0x855   : > { %v2863_v54 = vsel %vm503_vm0, %v2575_v52, 0.0 }
 0x856   : > { %2864 = vadd.xlane.f32.xlu0 %v2863_v54  ;;  %2855 = vadd.xlane.f32.xlu1 %v2854_v13  ;;  %v5308_v57 = vpop.f32.mrb[40].mxu0  ;;  %v2860_v51 = vsel %vm503_vm0, %v2570_v18, 0.0 }
 0x857   : > { %v2585_v25 = vadd.f32 %v5308_v57, %v7171_v63  ;;  %v2579_v21 = vpop.f32.mrb[41].mxu0 }
 0x858   : > { %v2580_v31 = vadd.f32 %v7163_v37, %v2579_v21  ;;  %v6132_v37 = vld [vmem:[%s7935_s2 + $0x28] sm:$0xff] }
 0x859   : > { %v2869_v56 = vsel %vm503_vm0, %v2585_v25, 0.0  ;;  %v7265_v46 = vpack.i.bf16 %v6132_v37, %v6131_v6 }
 0x85a   : > { %2861 = vadd.xlane.f32.xlu1 %v2860_v51  ;;  %v5311_v9 = vpop.f32.mrb[42].mxu0  ;;  %v2866_v0 = vsel %vm503_vm0, %v2580_v31, 0.0 }
 0x85b   : > { %v2589_v10 = vpop.f32.mrb[43].mxu0  ;;  %v2595_v43 = vadd.f32 %v5311_v9, %v7183_v19 }
 0x85c   : > { %v7257_v63 = vadd.f32 %v7159_v8, %v2589_v10  ;;  %v7273_v8 = vpop.xlane.xlu1 %2611 }
 0x85d   : > { %v2875_v36 = vsel %vm503_vm0, %v2595_v43, 0.0 }
 0x85e   : > { %2870 = vadd.xlane.f32.xlu1 %v2869_v56  ;;  %v2872_v19 = vsel %vm503_vm0, %v7257_v63, 0.0 }
 0x860   : > { %v7275_v1 = vpop.xlane.xlu1 %2614 }
 0x862   : > { %2867 = vadd.xlane.f32.xlu1 %v2866_v0 }
 0x864   : > { %v7277_v20 = vpop.xlane.xlu1 %2620 }
 0x866   : > { %2876 = vadd.xlane.f32.xlu1 %v2875_v36 }
 0x868   : > { %v7281_v58 = vpop.xlane.xlu1 %2656 }
 0x86a   : > { %2873 = vadd.xlane.f32.xlu1 %v2872_v19 }
 0x86c   : > { %5734 = vrot.lane.b32.xlu0 %v7265_v46, %s6180_s15 }
 0x87b   : > { %5739 = vrot.lane.b32.xlu1 %v7265_v46, %s6181_s20 }
 0x8df   : > { %v2859_v29 = vpop.xlane.xlu1 %2858 }
 0x8e0   : > { %v2879_v50 = vmul.f32 0.03125, %v2859_v29 }
 0x8e2   : > { %v7285_v16 = vsub.f32 %v2565_v42, %v2879_v50 }
 0x8e3   : > { %v2856_v62 = vpop.xlane.xlu1 %2855  ;;  %v2865_v47 = vpop.xlane.xlu0 %2864 }
 0x8e4   : > { %v2878_v22 = vmul.f32 0.03125, %v2856_v62  ;;  %v2881_v48 = vmul.f32 0.03125, %v2865_v47  ;;  %v2895_v60 = vmul.f32 %v7285_v16, %v7285_v16  ;;  %v6134_v62 = vld [vmem:[%s7935_s2 + $0x68] sm:$0xff] }
 0x8e6   : > { %v7289_v2 = vsub.f32 %v2560_v14, %v2878_v22  ;;  %v7291_v30 = vsub.f32 %v2575_v52, %v2881_v48  ;;  %v2905_v12 = vsel %vm503_vm0, %v2895_v60, 0.0  ;;  %v2626_v22 = vmul.f32 0.03125, %v7273_v8 }
 0x8e7   : > { %2906 = vadd.xlane.f32.xlu1 %v2905_v12  ;;  %v2862_v11 = vpop.xlane.xlu1 %2861  ;;  %v5735_v49 = vpop.permute.xlu0 %5734  ;;  %v2627_v60 = vmul.f32 0.03125, %v7275_v1  ;;  %v2629_v12 = vmul.f32 0.03125, %v7277_v20 }
 0x8e8   : > { %v2880_v4 = vmul.f32 0.03125, %v2862_v11  ;;  %v2894_v15 = vmul.f32 %v7289_v2, %v7289_v2  ;;  %v5737_v28 = vunpack.i.h.bf16 %v5735_v49  ;;  %v5736_v40 = vunpack.i.l.bf16 %v5735_v49 }
 0x8e9   : > { %v2897_v61 = vmul.f32 %v7291_v30, %v7291_v30  ;;  %v7340_v48 = vsub.f32 %v7174_v24, %v2626_v22  ;;  %v2628_v11 = vmul.f32 0.03125, %v7239_v7  ;;  %v7346_v49 = vsub.f32 %v7177_v59, %v2627_v60  ;;  %v7362_v59 = vld [vmem:[%s6345_s6 + $0x108] sm:$0xff] }
 0x8ea   : > { %v7296_v5 = vsub.f32 %v2570_v18, %v2880_v4  ;;  %v2902_v41 = vsel %vm503_vm0, %v2894_v15, 0.0  ;;  %v5576_v33 = vpack.c.bf16 %v5737_v28, %v5736_v40  ;;  %v7349_v4 = vsub.f32 %v7190_v32, %v2629_v12  ;;  %v7371_v40 = vld [vmem:[%s6345_s6 + $0x100] sm:$0xff] }
 0x8eb   : > { %2903 = vadd.xlane.f32.xlu1 %v2902_v41  ;;  %v2871_v23 = vpop.xlane.xlu1 %2870  ;;  %v2911_v44 = vsel %vm503_vm0, %v2897_v61, 0.0  ;;  %v2642_v8 = vmul.f32 %v7340_v48, %v7340_v48  ;;  %v7354_v24 = vsub.f32 %v7166_v38, %v2628_v11  ;;  %v2643_v20 = vmul.f32 %v7346_v49, %v7346_v49  ;;  %v7374_v41 = vld [vmem:[%s6345_s6 + $0x118] sm:$0xff] }
 0x8ec   : > { %v2883_v42 = vmul.f32 0.03125, %v2871_v23  ;;  %v2896_v26 = vmul.f32 %v7296_v5, %v7296_v5  ;;  %5577 = vmatprep.subr.bf16.mxu1 %v5576_v33  ;;  %v2645_v7 = vmul.f32 %v7349_v4, %v7349_v4  ;;  %v3105_v28 = vsel %vm503_vm0, %v7362_v59, 0.0 }
 0x8ed   : > { %5579 = vmatpush3.bf16.msra.mxu1 %v5576_v33  ;;  %v2658_v1 = vsel %vm503_vm0, %v2642_v8, 0.0  ;;  %v2661_v32 = vsel %vm503_vm0, %v2643_v20, 0.0  ;;  %v2644_v38 = vmul.f32 %v7354_v24, %v7354_v24  ;;  %v3102_v23 = vsel %vm503_vm0, %v7371_v40, 0.0 }
 0x8ee   : > { %v7303_v14 = vsub.f32 %v2585_v25, %v2883_v42  ;;  %v2908_v17 = vsel %vm503_vm0, %v2896_v26, 0.0  ;;  %v2667_v15 = vsel %vm503_vm0, %v2645_v7, 0.0  ;;  %v3111_v33 = vsel %vm503_vm0, %v7374_v41, 0.0  ;;  %v7382_v42 = vld [vmem:[%s6345_s6 + $0x128] sm:$0xff]  ;;  %v7385_v26 = vld [vmem:[%s6345_s6 + $0x110] sm:$0xff] }
 0x8ef   : > { %2909 = vadd.xlane.f32.xlu0 %v2908_v17  ;;  %v2868_v52 = vpop.xlane.xlu1 %2867  ;;  %2912 = vadd.xlane.f32.xlu1 %v2911_v44  ;;  %v2664_v61 = vsel %vm503_vm0, %v2644_v38, 0.0  ;;  %v3117_v17 = vsel %vm503_vm0, %v7382_v42, 0.0  ;;  %v3108_v44 = vsel %vm503_vm0, %v7385_v26, 0.0 }
 0x8f0   : > { %v2882_v35 = vmul.f32 0.03125, %v2868_v52  ;;  %v2899_v18 = vmul.f32 %v7303_v14, %v7303_v14  ;;  %v7392_v52 = vld [vmem:[%s6345_s6 + $0x120] sm:$0xff] }
 0x8f2   : > { %v7309_v54 = vsub.f32 %v2580_v31, %v2882_v35  ;;  %v2917_v13 = vsel %vm503_vm0, %v2899_v18, 0.0  ;;  %v7395_v35 = vld [vmem:[%s6345_s6 + $0x138] sm:$0xff]  ;;  %v3114_v18 = vsel %vm503_vm0, %v7392_v52, 0.0 }
 0x8f3   : > { %v2877_v57 = vpop.xlane.xlu1 %2876  ;;  %2918 = vadd.xlane.f32.xlu1 %v2917_v13  ;;  %v3123_v13 = vsel %vm503_vm0, %v7395_v35, 0.0 }
 0x8f4   : > { %v2885_v25 = vmul.f32 0.03125, %v2877_v57  ;;  %v2898_v51 = vmul.f32 %v7309_v54, %v7309_v54  ;;  %v7402_v57 = vld [vmem:[%s6345_s6 + $0x130] sm:$0xff] }
 0x8f6   : > { %v7314_v21 = vsub.f32 %v2595_v43, %v2885_v25  ;;  %v2914_v9 = vsel %vm503_vm0, %v2898_v51, 0.0  ;;  %v3120_v25 = vsel %vm503_vm0, %v7402_v57, 0.0  ;;  %v7409_v51 = vld [vmem:[%s7934_s1 + $0x1] ss:$0 sm:$0xff] }
 0x8f7   : > { %2915 = vadd.xlane.f32.xlu0 %v2914_v9  ;;  %v2874_v56 = vpop.xlane.xlu1 %2873 }
 0x8f8   : > { %v2884_v10 = vmul.f32 0.03125, %v2874_v56  ;;  %v2901_v0 = vmul.f32 %v7314_v21, %v7314_v21 }
 0x8fa   : > { %v7320_v31 = vsub.f32 %v7257_v63, %v2884_v10  ;;  %v2923_v36 = vsel %vm503_vm0, %v2901_v0, 0.0  ;;  %v6133_v63 = vld [vmem:[%s7935_s2 + $0x48] sm:$0xff] }
 0x8fb   : > { %2924 = vadd.xlane.f32.xlu1 %v2923_v36  ;;  %v5740_v6 = vpop.permute.xlu1 %5739  ;;  %v7332_v47 = vpack.i.bf16 %v6134_v62, %v6133_v63  ;;  %v2671_v36 = vmul.f32 0.03125, %v7279_v53 }
 0x8fc   : > { %v2900_v37 = vmul.f32 %v7320_v31, %v7320_v31  ;;  %v5742_v43 = vunpack.i.h.bf16 %v5740_v6  ;;  %v5741_v19 = vunpack.i.l.bf16 %v5740_v6 }
 0x8fe   : > { %v2920_v29 = vsel %vm503_vm0, %v2900_v37, 0.0  ;;  %v5584_v50 = vpack.c.bf16 %v5742_v43, %v5741_v19  ;;  %v2672_v37 = vmul.f32 0.03125, %v7283_v45  ;;  %v2673_v19 = vmul.f32 0.03125, %v7281_v58 }
 0x8ff   : > { %2921 = vadd.xlane.f32.xlu0 %v2920_v29  ;;  %v2679_v29 = vadd.f32 1e-05, %v2671_v36 }
 0x900   : > { %5585 = vmatprep.subr.bf16.mxu0 %v5584_v50  ;;  %v2680_v63 = vadd.f32 1e-05, %v2672_v37  ;;  %v2681_v12 = vadd.f32 1e-05, %v2673_v19 }
 0x901   : > { %5587 = vmatpush3.bf16.msra.mxu0 %v5584_v50 }
 0x90c   : > { %5744 = vrot.lane.b32.xlu1 %v7332_v47, %s6180_s15 }
 0x915   : > { %5749 = vrot.lane.b32.xlu0 %v7332_v47, %s6181_s20 }
 0x930   : > { %2659 = vadd.xlane.f32.xlu1 %v2658_v1 }
 0x934   : > { %2662 = vadd.xlane.f32.xlu0 %v2661_v32  ;;  %2668 = vadd.xlane.f32.xlu1 %v2667_v15 }
 0x938   : > { %2665 = vadd.xlane.f32.xlu0 %v2664_v61  ;;  %3106 = vadd.xlane.f32.xlu1 %v3105_v28 }
 0x93c   : > { %3103 = vadd.xlane.f32.xlu0 %v3102_v23  ;;  %3112 = vadd.xlane.f32.xlu1 %v3111_v33 }
 0x940   : > { %3118 = vadd.xlane.f32.xlu1 %v3117_v17  ;;  %3109 = vadd.xlane.f32.xlu0 %v3108_v44 }
 0x944   : > { %3115 = vadd.xlane.f32.xlu0 %v3114_v18  ;;  %3124 = vadd.xlane.f32.xlu1 %v3123_v13 }
 0x948   : > { %3121 = vadd.xlane.f32.xlu0 %v3120_v25 }
 0x95e   : > { %2970 = vrot.lane.b32.xlu0 %v7409_v51, %s6180_s15 }
 0x974   : > { %v2907_v9 = vpop.xlane.xlu1 %2906 }
 0x975   : > { %v2927_v50 = vmul.f32 0.03125, %v2907_v9 }
 0x977   : > { %v2935_v11 = vadd.f32 1e-05, %v2927_v50 }
 0x978   : > { %v2904_v56 = vpop.xlane.xlu1 %2903 }
 0x979   : > { %v2926_v10 = vmul.f32 0.03125, %v2904_v56 }
 0x97b   : > { %v2934_v0 = vadd.f32 1e-05, %v2926_v10 }
 0x97c   : > { %v2913_v6 = vpop.xlane.xlu1 %2912  ;;  %v2910_v43 = vpop.xlane.xlu0 %2909 }
 0x97d   : > { %5965 = vrsqrt.f32 %v2934_v0  ;;  %v2928_v62 = vmul.f32 0.03125, %v2910_v43  ;;  %v2929_v8 = vmul.f32 0.03125, %v2913_v6 }
 0x97e   : > { %5967 = vrsqrt.f32 %v2679_v29 }
 0x97f   : > { %5969 = vrsqrt.f32 %v2680_v63  ;;  %v2936_v20 = vadd.f32 1e-05, %v2928_v62  ;;  %v2937_v58 = vadd.f32 1e-05, %v2929_v8 }
 0x980   : > { %v2919_v22 = vpop.xlane.xlu1 %2918  ;;  %5971 = vrsqrt.f32 %v2681_v12 }
 0x981   : > { %5973 = vrsqrt.f32 %v2935_v11  ;;  %v2931_v32 = vmul.f32 0.03125, %v2919_v22 }
 0x982   : > { %5975 = vrsqrt.f32 %v2936_v20 }
 0x983   : > { %5977 = vrsqrt.f32 %v2937_v58  ;;  %v2939_v17 = vadd.f32 1e-05, %v2931_v32 }
 0x984   : > { %v2916_v60 = vpop.xlane.xlu0 %2915 }
 0x985   : > { %v2930_v53 = vmul.f32 0.03125, %v2916_v60 }
 0x987   : > { %v5966_v1 = vpop.eup %5965  ;;  %v2938_v15 = vadd.f32 1e-05, %v2930_v53 }
 0x988   : > { %v2925_v7 = vpop.xlane.xlu1 %2924  ;;  %v2950_v45 = vmul.f32 %v5966_v1, %v7289_v2  ;;  %v5968_v2 = vpop.eup %5967 }
 0x989   : > { %v2933_v44 = vmul.f32 0.03125, %v2925_v7  ;;  %5979 = vrsqrt.f32 %v2938_v15  ;;  %v5970_v9 = vpop.eup %5969  ;;  %v2695_v6 = vmul.f32 %v5968_v2, %v7205_v34 }
 0x98a   : > { %5340 = vmatprep.mubr.msk.f32.mxu0 %vm503_vm0, %v2950_v45  ;;  %5981 = vrsqrt.f32 %v2939_v17  ;;  %v5972_v36 = vpop.eup %5971  ;;  %v2696_v19 = vmul.f32 %v5970_v9, %v7211_v39 }
 0x98b   : > { %v2941_v0 = vadd.f32 1e-05, %v2933_v44  ;;  %v5974_v43 = vpop.eup %5973  ;;  %v2697_v63 = vmul.f32 %v5972_v36, %v7219_v55 }
 0x98c   : > { %v5745_v38 = vpop.permute.xlu1 %5744  ;;  %v2922_v28 = vpop.xlane.xlu0 %2921  ;;  %v2951_v50 = vmul.f32 %v5974_v43, %v7285_v16 }
 0x98d   : > { %v5747_v61 = vunpack.i.h.bf16 %v5745_v38  ;;  %v5746_v23 = vunpack.i.l.bf16 %v5745_v38  ;;  %v2932_v33 = vmul.f32 0.03125, %v2922_v28  ;;  %v5976_v29 = vpop.eup %5975 }
 0x98e   : > { %v5978_v34 = vpop.eup %5977  ;;  %v2952_v62 = vmul.f32 %v5976_v29, %v7296_v5 }
 0x98f   : > { %v5580_v18 = vpack.c.bf16 %v5747_v61, %v5746_v23  ;;  %v2940_v13 = vadd.f32 1e-05, %v2932_v33  ;;  %v2953_v39 = vmul.f32 %v5978_v34, %v7291_v30 }
 0x990   : > { %v5750_v25 = vpop.permute.xlu0 %5749 }
 0x991   : > { %v5752_v56 = vunpack.i.h.bf16 %v5750_v25  ;;  %v5751_v10 = vunpack.i.l.bf16 %v5750_v25  ;;  %5581 = vmatprep.subr.bf16.mxu1 %v5580_v18  ;;  %5983 = vrsqrt.f32 %v2940_v13 }
 0x992   : > { %5583 = vmatpush3.bf16.msra.mxu1 %v5580_v18  ;;  %5985 = vrsqrt.f32 %v2941_v0 }
 0x993   : > { %v5588_v37 = vpack.c.bf16 %v5752_v56, %v5751_v10  ;;  %v5980_v22 = vpop.eup %5979 }
 0x994   : > { %v5982_v16 = vpop.eup %5981  ;;  %v2954_v55 = vmul.f32 %v5980_v22, %v7309_v54 }
 0x995   : > { %5321 = vmatmul.mubr.msk.f32.vlgmr.msra.gmra.mrb[44].mxu1 %vm503_vm0, %v2695_v6  ;;  %5589 = vmatprep.subr.bf16.mxu0 %v5588_v37  ;;  %v2955_v5 = vmul.f32 %v5982_v16, %v7303_v14 }
 0x996   : > { %5323 = vmatprep.mubr.msk.f32.mxu1 %vm503_vm0, %v2696_v19  ;;  %5591 = vmatpush3.bf16.msra.mxu0 %v5588_v37 }
 0x997   : > { %5601 = vmatprep.subr.bf16.mxu0 %v6696_v3 }
 0x999   : > { %5324 = vmatmul.mubr.msk.f32.gmra.mrb[46].mxu1 %vm503_vm0, %v2697_v63  ;;  %5341 = vmatmul.mubr.msk.f32.vlgmr.msra.gmra.mrb[44].mxu0 %vm503_vm0, %v2951_v50 }
 0x99a   : > { %5343 = vmatprep.mubr.msk.f32.mxu0 %vm503_vm0, %v2952_v62  ;;  %5603 = vmatpush3.bf16.msra.mxu0 %v6696_v3 }
 0x99b   : > { %5605 = vmatprep.subr.bf16.mxu0 %v6704_v27  ;;  %v5984_v60 = vpop.eup %5983 }
 0x99c   : > { %v5986_v12 = vpop.eup %5985  ;;  %v2956_v11 = vmul.f32 %v5984_v60, %v7320_v31 }
 0x99d   : > { %5344 = vmatmul.mubr.msk.f32.gmra.mrb[46].mxu0 %vm503_vm0, %v2953_v39  ;;  %v2957_v3 = vmul.f32 %v5986_v12, %v7314_v21 }
 0x99e   : > { %5346 = vmatprep.mubr.msk.f32.mxu0 %vm503_vm0, %v2954_v55  ;;  %5607 = vmatpush3.bf16.msra.mxu0 %v6704_v27 }
 0x9a1   : > { %5347 = vmatmul.mubr.msk.f32.gmra.mrb[48].mxu0 %vm503_vm0, %v2955_v5 }
 0x9a2   : > { %5349 = vmatprep.mubr.msk.f32.mxu0 %vm503_vm0, %v2956_v11 }
 0x9a5   : > { %5350 = vmatmul.mubr.msk.f32.gmra.mrb[50].mxu0 %vm503_vm0, %v2957_v3 }
 0x9bd   : > { %v2660_v30 = vpop.xlane.xlu1 %2659 }
 0x9be   : > { %v2674_v54 = vmul.f32 0.03125, %v2660_v30 }
 0x9c0   : > { %v2682_v8 = vadd.f32 1e-05, %v2674_v54 }
 0x9c1   : > { %v2669_v1 = vpop.xlane.xlu1 %2668  ;;  %v2663_v20 = vpop.xlane.xlu0 %2662 }
 0x9c2   : > { %5987 = vrsqrt.f32 %v2682_v8  ;;  %v2677_v27 = vmul.f32 0.03125, %v2669_v1  ;;  %v2675_v53 = vmul.f32 0.03125, %v2663_v20 }
 0x9c4   : > { %v2683_v14 = vadd.f32 1e-05, %v2675_v53  ;;  %v2685_v7 = vadd.f32 1e-05, %v2677_v27 }
 0x9c5   : > { %v3107_v45 = vpop.xlane.xlu1 %3106  ;;  %v2666_v31 = vpop.xlane.xlu0 %2665 }
 0x9c6   : > { %v3127_v58 = vmul.f32 0.03125, %v3107_v45  ;;  %v2676_v32 = vmul.f32 0.03125, %v2666_v31  ;;  %5989 = vrsqrt.f32 %v2683_v14 }
 0x9c7   : > { %5991 = vrsqrt.f32 %v2685_v7 }
 0x9c8   : > { %v2684_v15 = vadd.f32 1e-05, %v2676_v32  ;;  %v7443_v21 = vsub.f32 %v7362_v59, %v3127_v58 }
 0x9c9   : > { %v3113_v38 = vpop.xlane.xlu1 %3112  ;;  %v3104_v28 = vpop.xlane.xlu0 %3103 }
 0x9ca   : > { %5993 = vrsqrt.f32 %v2684_v15  ;;  %v3126_v61 = vmul.f32 0.03125, %v3104_v28  ;;  %v3129_v17 = vmul.f32 0.03125, %v3113_v38  ;;  %v3143_v2 = vmul.f32 %v7443_v21, %v7443_v21 }
 0x9cc   : > { %v5988_v23 = vpop.eup %5987  ;;  %v7446_v33 = vsub.f32 %v7371_v40, %v3126_v61  ;;  %v7462_v0 = vsub.f32 %v7374_v41, %v3129_v17  ;;  %v3153_v36 = vsel %vm503_vm0, %v3143_v2, 0.0 }
 0x9cd   : > { %v3119_v44 = vpop.xlane.xlu1 %3118  ;;  %v2698_v18 = vmul.f32 %v5988_v23, %v7340_v48  ;;  %v3110_v13 = vpop.xlane.xlu0 %3109 }
 0x9ce   : > { %v3131_v25 = vmul.f32 0.03125, %v3119_v44  ;;  %v3142_v59 = vmul.f32 %v7446_v33, %v7446_v33  ;;  %v3128_v9 = vmul.f32 0.03125, %v3110_v13 }
 0x9cf   : > { %5326 = vmatprep.mubr.msk.f32.mxu1 %vm503_vm0, %v2698_v18 }
 0x9d0   : > { %v7455_v56 = vsub.f32 %v7382_v42, %v3131_v25  ;;  %v3150_v40 = vsel %vm503_vm0, %v3142_v59, 0.0  ;;  %v7459_v10 = vsub.f32 %v7385_v26, %v3128_v9  ;;  %v5990_v48 = vpop.eup %5989 }
 0x9d1   : > { %3151 = vadd.xlane.f32.xlu1 %v3150_v40  ;;  %v3116_v6 = vpop.xlane.xlu0 %3115  ;;  %v2699_v37 = vmul.f32 %v5990_v48, %v7346_v49  ;;  %v5992_v29 = vpop.eup %5991  ;;  %v3145_v49 = vmul.f32 %v7462_v0, %v7462_v0 }
 0x9d2   : > { %v3147_v43 = vmul.f32 %v7455_v56, %v7455_v56  ;;  %v3144_v42 = vmul.f32 %v7459_v10, %v7459_v10  ;;  %v3130_v19 = vmul.f32 0.03125, %v3116_v6  ;;  %v2701_v34 = vmul.f32 %v5992_v29, %v7349_v4  ;;  %v3125_v16 = vpop.xlane.xlu1 %3124 }
 0x9d3   : > { %5327 = vmatmul.mubr.msk.f32.gmra.mrb[48].mxu1 %vm503_vm0, %v2699_v37  ;;  %v3133_v60 = vmul.f32 0.03125, %v3125_v16 }
 0x9d4   : > { %v5994_v26 = vpop.eup %5993  ;;  %v3165_v41 = vsel %vm503_vm0, %v3147_v43, 0.0  ;;  %v3156_v62 = vsel %vm503_vm0, %v3144_v42, 0.0  ;;  %v7478_v22 = vsub.f32 %v7392_v52, %v3130_v19 }
 0x9d5   : > { %3166 = vadd.xlane.f32.xlu0 %v3165_v41  ;;  %3154 = vadd.xlane.f32.xlu1 %v3153_v36  ;;  %v2700_v50 = vmul.f32 %v5994_v26, %v7354_v24  ;;  %v3122_v63 = vpop.xlane.xlu0 %3121  ;;  %v3159_v24 = vsel %vm503_vm0, %v3145_v49, 0.0  ;;  %v7489_v52 = vsub.f32 %v7395_v35, %v3133_v60 }
 0x9d6   : > { %v3132_v39 = vmul.f32 0.03125, %v3122_v63  ;;  %v3146_v4 = vmul.f32 %v7478_v22, %v7478_v22 }
 0x9d7   : > { %5329 = vmatprep.mubr.msk.f32.mxu1 %vm503_vm0, %v2700_v50 }
 0x9d8   : > { %5330 = vmatmul.mubr.msk.f32.gmra.mrb[50].mxu1 %vm503_vm0, %v2701_v34  ;;  %v7484_v55 = vsub.f32 %v7402_v57, %v3132_v39  ;;  %v3162_v5 = vsel %vm503_vm0, %v3146_v4, 0.0  ;;  %v3149_v57 = vmul.f32 %v7489_v52, %v7489_v52 }
 0x9d9   : > { %3157 = vadd.xlane.f32.xlu1 %v3156_v62  ;;  %v2971_v14 = vpop.permute.xlu0 %2970 }
 0x9da   : > { %v3148_v12 = vmul.f32 %v7484_v55, %v7484_v55  ;;  %v3171_v3 = vsel %vm503_vm0, %v3149_v57, 0.0 }
 0x9dc   : > { %v3168_v11 = vsel %vm503_vm0, %v3148_v12, 0.0 }
 0x9dd   : > { %3160 = vadd.xlane.f32.xlu1 %v3159_v24 }
 0x9e1   : > { %3163 = vadd.xlane.f32.xlu1 %v3162_v5 }
 0x9e5   : > { %3169 = vadd.xlane.f32.xlu1 %v3168_v11 }
 0x9e9   : > { %3172 = vadd.xlane.f32.xlu1 %v3171_v3 }
 0x9fa   : > { %5754 = vrot.lane.b32.xlu1 %v7265_v46, %s6182_s24 }
 0x9fe   : > { %5759 = vrot.lane.b32.xlu1 %v7332_v47, %s6182_s24 }
 0xa02   : > { %3218 = vrot.lane.b32.xlu1 %v7409_v51, %s6181_s20 }
 0xa5e   : > { %v3152_v35 = vpop.xlane.xlu1 %3151 }
 0xa5f   : > { %v3174_v30 = vmul.f32 0.03125, %v3152_v35 }
 0xa61   : > { %v3182_v54 = vadd.f32 1e-05, %v3174_v30 }
 0xa62   : > { %v3155_v8 = vpop.xlane.xlu1 %3154  ;;  %v3167_v6 = vpop.xlane.xlu0 %3166 }
 0xa63   : > { %5995 = vrsqrt.f32 %v3182_v54  ;;  %v3175_v13 = vmul.f32 0.03125, %v3155_v8  ;;  %v3179_v62 = vmul.f32 0.03125, %v3167_v6 }
 0xa65   : > { %v3183_v19 = vadd.f32 1e-05, %v3175_v13  ;;  %v3187_v54 = vadd.f32 1e-05, %v3179_v62 }
 0xa66   : > { %v3158_v1 = vpop.xlane.xlu1 %3157 }
 0xa67   : > { %v3176_v9 = vmul.f32 0.03125, %v3158_v1  ;;  %5997 = vrsqrt.f32 %v3183_v19 }
 0xa68   : > { %v5322_v20 = vpop.f32.mrb[44].mxu1 }
 0xa69   : > { %v2815_v27 = vpop.f32.mrb[45].mxu1  ;;  %v2821_v46 = vadd.f32 %v5322_v20, %v7409_v51  ;;  %v3184_v50 = vadd.f32 1e-05, %v3176_v9 }
 0xa6a   : > { %v3161_v53 = vpop.xlane.xlu1 %3160  ;;  %v2816_v38 = vadd.f32 %v7409_v51, %v2815_v27 }
 0xa6b   : > { %v3177_v37 = vmul.f32 0.03125, %v3161_v53  ;;  %5999 = vrsqrt.f32 %v3184_v50 }
 0xa6c   : > { %v5325_v7 = vpop.f32.mrb[46].mxu1  ;;  %v5342_v45 = vpop.f32.mrb[44].mxu0 }
 0xa6d   : > { %v5996_v31 = vpop.eup %5995  ;;  %v7506_v47 = vadd.f32 %v5325_v7, %v7409_v51  ;;  %v7508_v58 = vadd.f32 %v5342_v45, %v2971_v14  ;;  %v2825_v32 = vpop.f32.mrb[47].mxu1  ;;  %v3185_v24 = vadd.f32 1e-05, %v3177_v37 }
 0xa6e   : > { %v3063_v15 = vpop.f32.mrb[45].mxu0  ;;  %v2826_v28 = vadd.f32 %v7409_v51, %v2825_v32  ;;  %v3164_v23 = vpop.xlane.xlu1 %3163  ;;  %v3198_v17 = vmul.f32 %v5996_v31, %v7446_v33 }
 0xa6f   : > { %v7512_v61 = vadd.f32 %v3063_v15, %v2971_v14  ;;  %v3351_v44 = vmul.f32 %v7508_v58, %v2821_v46  ;;  %v7518_v18 = vmul.f32 %v7508_v58, %v7506_v47  ;;  %v3178_v49 = vmul.f32 0.03125, %v3164_v23 }
 0xa70   : > { %v5345_v2 = vpop.f32.mrb[46].mxu0  ;;  %5360 = vmatprep.mubr.msk.f32.mxu1 %vm503_vm0, %v3198_v17  ;;  %6001 = vrsqrt.f32 %v3185_v24 }
 0xa71   : > { %v3350_v25 = vmul.f32 %v7512_v61, %v2816_v38  ;;  %v3358_v59 = vmul.f32 %v7512_v61, %v2826_v28  ;;  %v7523_v40 = vadd.f32 %v5345_v2, %v2971_v14  ;;  %v3073_v48 = vpop.f32.mrb[47].mxu0  ;;  %v3186_v57 = vadd.f32 1e-05, %v3178_v49 }
 0xa72   : > { %v7525_v36 = vadd.f32 %v3073_v48, %v2971_v14  ;;  %v3170_v33 = vpop.xlane.xlu1 %3169 }
 0xa73   : > { %5380 = vmatprep.mubr.msk.f32.mxu0 %vm503_vm0, %v3350_v25  ;;  %v3353_v43 = vmul.f32 %v7523_v40, %v2821_v46  ;;  %v7532_v42 = vmul.f32 %v7523_v40, %v7506_v47  ;;  %v3180_v3 = vmul.f32 0.03125, %v3170_v33  ;;  %6003 = vrsqrt.f32 %v3186_v57 }
 0xa74   : > { %5381 = vmatmul.mubr.msk.f32.vlgmr.msra.gmra.mrb[52].mxu0 %vm503_vm0, %v3351_v44  ;;  %v5348_v29 = vpop.f32.mrb[48].mxu0  ;;  %v3352_v26 = vmul.f32 %v7525_v36, %v2816_v38  ;;  %v3360_v41 = vmul.f32 %v7525_v36, %v2826_v28  ;;  %6005 = vrsqrt.f32 %v3187_v54 }
 0xa75   : > { %v7536_v63 = vadd.f32 %v5348_v29, %v2971_v14  ;;  %v3083_v34 = vpop.f32.mrb[49].mxu0 }
 0xa76   : > { %v7538_v39 = vadd.f32 %v3083_v34, %v2971_v14  ;;  %v3173_v16 = vpop.xlane.xlu1 %3172  ;;  %5383 = vmatprep.mubr.msk.f32.mxu0 %vm503_vm0, %v3352_v26 }
 0xa77   : > { %v3355_v60 = vmul.f32 %v7536_v63, %v2821_v46  ;;  %v3363_v4 = vmul.f32 %v7536_v63, %v7506_v47  ;;  %v3181_v7 = vmul.f32 0.03125, %v3173_v16 }
 0xa78   : > { %5384 = vmatmul.mubr.msk.f32.gmra.mrb[54].mxu0 %vm503_vm0, %v3353_v43  ;;  %v5351_v5 = vpop.f32.mrb[50].mxu0  ;;  %v3354_v12 = vmul.f32 %v7538_v39, %v2816_v38  ;;  %v3362_v11 = vmul.f32 %v7538_v39, %v2826_v28 }
 0xa79   : > { %v7547_v35 = vadd.f32 %v5351_v5, %v2971_v14  ;;  %v3093_v30 = vpop.f32.mrb[51].mxu0 }
 0xa7a   : > { %v7549_v8 = vadd.f32 %v3093_v30, %v2971_v14  ;;  %v5755_v1 = vpop.permute.xlu1 %5754  ;;  %5386 = vmatprep.mubr.msk.f32.mxu0 %vm503_vm0, %v3354_v12  ;;  %v3188_v14 = vadd.f32 1e-05, %v3180_v3 }
 0xa7b   : > { %v5757_v20 = vunpack.i.h.bf16 %v5755_v1  ;;  %v5756_v27 = vunpack.i.l.bf16 %v5755_v1  ;;  %v3357_v53 = vmul.f32 %v7547_v35, %v2821_v46  ;;  %v3365_v32 = vmul.f32 %v7547_v35, %v7506_v47  ;;  %v4062_v1 = vld [vmem:[%s7935_s2 + $0x38] sm:$0xff] }
 0xa7c   : > { %5387 = vmatmul.mubr.msk.f32.gmra.mrb[56].mxu0 %vm503_vm0, %v3355_v60  ;;  %v3356_v45 = vmul.f32 %v7549_v8, %v2816_v38  ;;  %v3364_v31 = vmul.f32 %v7549_v8, %v2826_v28  ;;  %v3189_v46 = vadd.f32 1e-05, %v3181_v7  ;;  %6007 = vrsqrt.f32 %v3188_v14  ;;  %v5998_v28 = vpop.eup %5997 }
 0xa7d   : > { %v5592_v15 = vpack.c.bf16 %v5757_v20, %v5756_v27  ;;  %v6000_v47 = vpop.eup %5999  ;;  %v3199_v2 = vmul.f32 %v5998_v28, %v7443_v21  ;;  %v4063_v20 = vld [vmem:[%s7935_s2 + $0x50] sm:$0xff] }
 0xa7e   : > { %v5760_v23 = vpop.permute.xlu1 %5759  ;;  %5389 = vmatprep.mubr.msk.f32.mxu0 %vm503_vm0, %v3356_v45  ;;  %6009 = vrsqrt.f32 %v3189_v46  ;;  %v6002_v13 = vpop.eup %6001  ;;  %v3200_v25 = vmul.f32 %v6000_v47, %v7459_v10  ;;  %v4064_v45 = vld [vmem:[%s7935_s2 + $0x58] sm:$0xff] }
 0xa7f   : > { %v5762_v17 = vunpack.i.h.bf16 %v5760_v23  ;;  %v5761_v44 = vunpack.i.l.bf16 %v5760_v23  ;;  %5593 = vmatprep.subr.bf16.mxu1 %v5592_v15  ;;  %v6004_v9 = vpop.eup %6003  ;;  %v5773_v23 = vpack.i.bf16 %v4064_v45, %v4063_v20  ;;  %v4066_v46 = vld [vmem:[%s7935_s2 + $0x78] sm:$0xff] }
 0xa80   : > { %5390 = vmatmul.mubr.msk.f32.gmra.mrb[58].mxu0 %vm503_vm0, %v3357_v53  ;;  %5595 = vmatpush3.bf16.msra.mxu1 %v5592_v15  ;;  %v3202_v48 = vmul.f32 %v6004_v9, %v7478_v22 }
 0xa81   : > { %5392 = vmatprep.mubr.msk.f32.mxu0 %vm503_vm0, %v3358_v59  ;;  %v5596_v38 = vpack.c.bf16 %v5762_v17, %v5761_v44  ;;  %v6006_v59 = vpop.eup %6005  ;;  %v4065_v44 = vld [vmem:[%s7935_s2 + $0x70] sm:$0xff] }
 0xa82   : > { %v3203_v21 = vmul.f32 %v6006_v59, %v7455_v56 }
 0xa83   : > { %5597 = vmatprep.subr.bf16.mxu1 %v5596_v38 }
 0xa84   : > { %5393 = vmatmul.mubr.msk.f32.gmra.mrb[60].mxu0 %vm503_vm0, %v7518_v18  ;;  %5599 = vmatpush3.bf16.msra.mxu1 %v5596_v38  ;;  %v3201_v18 = vmul.f32 %v6002_v13, %v7462_v0  ;;  %v5778_v13 = vpack.i.bf16 %v4066_v46, %v4065_v44 }
 0xa85   : > { %5395 = vmatprep.mubr.msk.f32.mxu0 %vm503_vm0, %v3360_v41 }
 0xa86   : > { %v6008_v33 = vpop.eup %6007 }
 0xa87   : > { %5361 = vmatmul.mubr.msk.f32.vlgmr.msra.gmra.mrb[52].mxu1 %vm503_vm0, %v3199_v2  ;;  %v3204_v6 = vmul.f32 %v6008_v33, %v7484_v55 }
 0xa88   : > { %5396 = vmatmul.mubr.msk.f32.gmra.mrb[62].mxu0 %vm503_vm0, %v7532_v42  ;;  %5363 = vmatprep.mubr.msk.f32.mxu1 %vm503_vm0, %v3200_v25  ;;  %v6010_v10 = vpop.eup %6009 }
 0xa89   : > { %5398 = vmatprep.mubr.msk.f32.mxu0 %vm503_vm0, %v3362_v11  ;;  %v3205_v0 = vmul.f32 %v6010_v10, %v7489_v52 }
 0xa8b   : > { %5364 = vmatmul.mubr.msk.f32.gmra.mrb[54].mxu1 %vm503_vm0, %v3201_v18 }
 0xa8c   : > { %5399 = vmatmul.mubr.msk.f32.gmra.mrb[64].mxu0 %vm503_vm0, %v3363_v4  ;;  %5366 = vmatprep.mubr.msk.f32.mxu1 %vm503_vm0, %v3202_v48 }
 0xa8d   : > { %5401 = vmatprep.mubr.msk.f32.mxu0 %vm503_vm0, %v3364_v31  ;;  %v4059_v31 = vld [vmem:[%s7935_s2 + $0x10] sm:$0xff] }
 0xa8f   : > { %5367 = vmatmul.mubr.msk.f32.gmra.mrb[56].mxu1 %vm503_vm0, %v3203_v21 }
 0xa90   : > { %5402 = vmatmul.mubr.msk.f32.gmra.mrb[66].mxu0 %vm503_vm0, %v3365_v32  ;;  %5369 = vmatprep.mubr.msk.f32.mxu1 %vm503_vm0, %v3204_v6  ;;  %v4060_v32 = vld [vmem:[%s7935_s2 + $0x18] sm:$0xff] }
 0xa91   : > { %v5763_v15 = vpack.i.bf16 %v4060_v32, %v4059_v31 }
 0xa93   : > { %5370 = vmatmul.mubr.msk.f32.gmra.mrb[58].mxu1 %vm503_vm0, %v3205_v0  ;;  %5764 = vrot.lane.b32.xlu0 %v5763_v15, %s6182_s24 }
 0xaa6   : > { %v5328_v22 = vpop.f32.mrb[48].mxu1 }
 0xaa7   : > { %v2841_v37 = vadd.f32 %v5328_v22, %v7409_v51  ;;  %v2835_v43 = vpop.f32.mrb[49].mxu1 }
 0xaa8   : > { %v2836_v42 = vadd.f32 %v7409_v51, %v2835_v43 }
 0xaa9   : > { %v3367_v56 = vmul.f32 %v7508_v58, %v2841_v37  ;;  %v3369_v55 = vmul.f32 %v7523_v40, %v2841_v37  ;;  %v3371_v19 = vmul.f32 %v7536_v63, %v2841_v37  ;;  %v3373_v29 = vmul.f32 %v7547_v35, %v2841_v37 }
 0xaaa   : > { %v3366_v41 = vmul.f32 %v7512_v61, %v2836_v42  ;;  %v3368_v52 = vmul.f32 %v7525_v36, %v2836_v42  ;;  %v3370_v50 = vmul.f32 %v7538_v39, %v2836_v42  ;;  %v3372_v49 = vmul.f32 %v7549_v8, %v2836_v42 }
 0xaab   : > { %v5331_v26 = vpop.f32.mrb[50].mxu1 }
 0xaac   : > { %v2851_v34 = vadd.f32 %v5331_v26, %v7409_v51  ;;  %v2845_v62 = vpop.f32.mrb[51].mxu1  ;;  %5404 = vmatprep.mubr.msk.f32.mxu0 %vm503_vm0, %v3366_v41 }
 0xaad   : > { %v2846_v16 = vadd.f32 %v7409_v51, %v2845_v62  ;;  %5405 = vmatmul.mubr.msk.f32.gmra.mrb[68].mxu0 %vm503_vm0, %v3367_v56 }
 0xaae   : > { %v3375_v24 = vmul.f32 %v7508_v58, %v2851_v34  ;;  %v3377_v60 = vmul.f32 %v7523_v40, %v2851_v34  ;;  %v3379_v4 = vmul.f32 %v7536_v63, %v2851_v34  ;;  %v3381_v5 = vmul.f32 %v7547_v35, %v2851_v34  ;;  %5407 = vmatprep.mubr.msk.f32.mxu0 %vm503_vm0, %v3368_v52  ;;  %v6135_v58 = vld [vmem:[%s7935_s2 + $0x10] sm:$0xff] }
 0xaaf   : > { %v3374_v12 = vmul.f32 %v7512_v61, %v2846_v16  ;;  %v3376_v11 = vmul.f32 %v7525_v36, %v2846_v16  ;;  %v3378_v57 = vmul.f32 %v7538_v39, %v2846_v16  ;;  %v3380_v3 = vmul.f32 %v7549_v8, %v2846_v16  ;;  %v6136_v61 = vld [vmem:[%s7935_s2 + $0x30] sm:$0xff] }
 0xab0   : > { %v5608_v40 = vpack.c.bf16 %v6136_v61, %v6135_v58  ;;  %v6137_v36 = vld [vmem:[%s7935_s2 + $0x50] sm:$0xff] }
 0xab1   : > { %5408 = vmatmul.mubr.msk.f32.gmra.mrb[70].mxu0 %vm503_vm0, %v3369_v55  ;;  %v6138_v63 = vld [vmem:[%s7935_s2 + $0x70] sm:$0xff] }
 0xab2   : > { %5410 = vmatprep.mubr.msk.f32.mxu0 %vm503_vm0, %v3370_v50  ;;  %5609 = vmatprep.subr.bf16.mxu1 %v5608_v40  ;;  %v5612_v39 = vpack.c.bf16 %v6138_v63, %v6137_v36  ;;  %v4061_v8 = vld [vmem:[%s7935_s2 + $0x30] sm:$0xff] }
 0xab3   : > { %5611 = vmatpush3.bf16.msra.mxu1 %v5608_v40  ;;  %v5768_v7 = vpack.i.bf16 %v4062_v1, %v4061_v8 }
 0xab4   : > { %5613 = vmatprep.subr.bf16.mxu1 %v5612_v39 }
 0xab5   : > { %5411 = vmatmul.mubr.msk.f32.gmra.mrb[72].mxu0 %vm503_vm0, %v3371_v19  ;;  %5769 = vrot.lane.b32.xlu1 %v5768_v7, %s6182_s24 }
 0xab6   : > { %5413 = vmatprep.mubr.msk.f32.mxu0 %vm503_vm0, %v3372_v49 }
 0xab7   : > { %5615 = vmatpush3.bf16.msra.mxu1 %v5612_v39 }
 0xab9   : > { %5414 = vmatmul.mubr.msk.f32.gmra.mrb[74].mxu0 %vm503_vm0, %v3373_v29  ;;  %5774 = vrot.lane.b32.xlu1 %v5773_v23, %s6182_s24 }
 0xaba   : > { %5416 = vmatprep.mubr.msk.f32.mxu0 %vm503_vm0, %v3374_v12 }
 0xabd   : > { %5417 = vmatmul.mubr.msk.f32.gmra.mrb[76].mxu0 %vm503_vm0, %v3375_v24  ;;  %5779 = vrot.lane.b32.xlu1 %v5778_v13, %s6182_s24  ;;  %v7671_v24 = vpop.permute.xlu1 %3218 }
 0xabe   : > { %5419 = vmatprep.mubr.msk.f32.mxu0 %vm503_vm0, %v3376_v11 }
 0xac1   : > { %5420 = vmatmul.mubr.msk.f32.gmra.mrb[78].mxu0 %vm503_vm0, %v3377_v60  ;;  %3919 = vrot.lane.b32.xlu1 %v7409_v51, %s6182_s24  ;;  %v7676_v51 = vld [vmem:[%s7934_s1 + $0x3] ss:$0 sm:$0xff] }
 0xac2   : > { %5422 = vmatprep.mubr.msk.f32.mxu0 %vm503_vm0, %v3378_v57 }
 0xac5   : > { %5423 = vmatmul.mubr.msk.f32.gmra.mrb[80].mxu0 %vm503_vm0, %v3379_v4  ;;  %4099 = vrot.lane.b32.xlu1 %v7676_v51, %s6180_s15 }
 0xac6   : > { %5425 = vmatprep.mubr.msk.f32.mxu0 %vm503_vm0, %v3380_v3 }
 0xac9   : > { %5426 = vmatmul.mubr.msk.f32.gmra.mrb[82].mxu0 %vm503_vm0, %v3381_v5 }
 0xb47   : > { %v5382_v35 = vpop.f32.mrb[52].mxu0 }
 0xb48   : > { %v3544_v30 = vpop.f32.mrb[53].mxu0 }
 0xb4b   : > { %v5385_v54 = vpop.f32.mrb[54].mxu0 }
 0xb4c   : > { %v3704_v27 = vmax.f32 %v5382_v35, %v5385_v54  ;;  %v3554_v53 = vpop.f32.mrb[55].mxu0 }
 0xb4d   : > { %v3703_v14 = vmax.f32 %v3544_v30, %v3554_v53 }
 0xb4f   : > { %v5388_v17 = vpop.f32.mrb[56].mxu0 }
 0xb50   : > { %v3712_v38 = vmax.f32 %v3704_v27, %v5388_v17  ;;  %v3564_v28 = vpop.f32.mrb[57].mxu0 }
 0xb51   : > { %v3711_v47 = vmax.f32 %v3703_v14, %v3564_v28 }
 0xb53   : > { %v5391_v2 = vpop.f32.mrb[58].mxu0 }
 0xb54   : > { %v3720_v25 = vmax.f32 %v3712_v38, %v5391_v2  ;;  %v3574_v9 = vpop.f32.mrb[59].mxu0 }
 0xb55   : > { %v3719_v18 = vmax.f32 %v3711_v47, %v3574_v9 }
 0xb56   : > { %v3728_v59 = vsub.f32 %v5382_v35, %v3720_v25  ;;  %v3752_v48 = vsub.f32 %v5385_v54, %v3720_v25  ;;  %v3776_v33 = vsub.f32 %v5388_v17, %v3720_v25  ;;  %v3800_v21 = vsub.f32 %v5391_v2, %v3720_v25 }
 0xb57   : > { %v3727_v10 = vsub.f32 %v3544_v30, %v3719_v18  ;;  %v3751_v6 = vsub.f32 %v3554_v53, %v3719_v18  ;;  %v3775_v0 = vsub.f32 %v3564_v28, %v3719_v18  ;;  %v3799_v22 = vsub.f32 %v3574_v9, %v3719_v18  ;;  %v7660_v37 = vpop.f32.mrb[60].mxu0 }
 0xb58   : > { %v3737_v43 = vmul.f32 1.442695, %v3728_v59  ;;  %v3761_v42 = vmul.f32 1.442695, %v3752_v48  ;;  %v3785_v56 = vmul.f32 1.442695, %v3776_v33 }
 0xb59   : > { %v3809_v55 = vmul.f32 1.442695, %v3800_v21  ;;  %v3735_v19 = vmul.f32 1.442695, %v3727_v10  ;;  %v7662_v29 = vpop.f32.mrb[61].mxu0 }
 0xb5a   : > { %6011 = vpow2.f32 %v3737_v43  ;;  %v3759_v26 = vmul.f32 1.442695, %v3751_v6  ;;  %v5362_v41 = vpop.f32.mrb[52].mxu1  ;;  %v3783_v50 = vmul.f32 1.442695, %v3775_v0 }
 0xb5b   : > { %6013 = vpow2.f32 %v3761_v42  ;;  %v5397_v52 = vpop.f32.mrb[62].mxu0  ;;  %v3311_v34 = vpop.f32.mrb[53].mxu1  ;;  %v3807_v60 = vmul.f32 1.442695, %v3799_v22  ;;  %v7681_v58 = vadd.f32 %v5362_v41, %v7671_v24 }
 0xb5c   : > { %6015 = vpow2.f32 %v3785_v56  ;;  %v3706_v49 = vmax.f32 %v7660_v37, %v5397_v52  ;;  %v7667_v62 = vpop.f32.mrb[63].mxu0  ;;  %v7691_v20 = vadd.f32 %v3311_v34, %v7671_v24 }
 0xb5d   : > { %6017 = vpow2.f32 %v3809_v55  ;;  %v3705_v16 = vmax.f32 %v7662_v29, %v7667_v62 }
 0xb5e   : > { %6019 = vpow2.f32 %v3735_v19  ;;  %v5365_v4 = vpop.f32.mrb[54].mxu1 }
 0xb5f   : > { %6021 = vpow2.f32 %v3759_v26  ;;  %v5400_v5 = vpop.f32.mrb[64].mxu0  ;;  %v3321_v11 = vpop.f32.mrb[55].mxu1  ;;  %v7684_v63 = vadd.f32 %v5365_v4, %v7671_v24 }
 0xb60   : > { %6023 = vpow2.f32 %v3783_v50  ;;  %v3714_v12 = vmax.f32 %v3706_v49, %v5400_v5  ;;  %v3604_v57 = vpop.f32.mrb[65].mxu0  ;;  %v7701_v2 = vadd.f32 %v3321_v11, %v7671_v24 }
 0xb61   : > { %v3713_v3 = vmax.f32 %v3705_v16, %v3604_v57  ;;  %6025 = vpow2.f32 %v3807_v60 }
 0xb62   : > { %v5368_v61 = vpop.f32.mrb[56].mxu1 }
 0xb63   : > { %v5403_v40 = vpop.f32.mrb[66].mxu0  ;;  %v7687_v39 = vadd.f32 %v5368_v61, %v7671_v24  ;;  %v3331_v30 = vpop.f32.mrb[57].mxu1 }
 0xb64   : > { %v6012_v36 = vpop.eup %6011  ;;  %v3722_v35 = vmax.f32 %v3714_v12, %v5403_v40  ;;  %v3614_v54 = vpop.f32.mrb[67].mxu0  ;;  %v7694_v27 = vadd.f32 %v3331_v30, %v7671_v24 }
 0xb65   : > { %v6014_v8 = vpop.eup %6013  ;;  %v3848_v1 = vmul.f32 %v6012_v36, %v7681_v58  ;;  %v3721_v53 = vmax.f32 %v3713_v3, %v3614_v54 }
 0xb66   : > { %v6016_v7 = vpop.eup %6015  ;;  %v3824_v45 = vadd.f32 %v6014_v8, %v6012_v36  ;;  %v3856_v31 = vmul.f32 %v6014_v8, %v7684_v63  ;;  %v3730_v32 = vsub.f32 %v7660_v37, %v3722_v35  ;;  %v3754_v14 = vsub.f32 %v5397_v52, %v3722_v35  ;;  %v5371_v38 = vpop.f32.mrb[58].mxu1 }
 0xb67   : > { %v6018_v15 = vpop.eup %6017  ;;  %v3872_v23 = vmul.f32 %v6016_v7, %v7687_v39  ;;  %v3778_v17 = vsub.f32 %v5400_v5, %v3722_v35  ;;  %v3802_v44 = vsub.f32 %v5403_v40, %v3722_v35  ;;  %v3729_v46 = vsub.f32 %v7662_v29, %v3721_v53  ;;  %v3341_v9 = vpop.f32.mrb[59].mxu1 }
 0xb68   : > { %v6020_v28 = vpop.eup %6019  ;;  %v3832_v47 = vadd.f32 %v6016_v7, %v3824_v45  ;;  %v3864_v13 = vadd.f32 %v3856_v31, %v3848_v1  ;;  %v3741_v25 = vmul.f32 1.442695, %v3730_v32  ;;  %v3765_v48 = vmul.f32 1.442695, %v3754_v14 }
 0xb69   : > { %v6022_v18 = vpop.eup %6021  ;;  %v3847_v59 = vmul.f32 %v6020_v28, %v7691_v20  ;;  %v3789_v33 = vmul.f32 1.442695, %v3778_v17  ;;  %v3813_v21 = vmul.f32 1.442695, %v3802_v44  ;;  %v3753_v42 = vsub.f32 %v7667_v62, %v3721_v53 }
 0xb6a   : > { %v6024_v10 = vpop.eup %6023  ;;  %v3840_v6 = vadd.f32 %v6018_v15, %v3832_v47  ;;  %v3823_v0 = vadd.f32 %v6022_v18, %v6020_v28  ;;  %v3855_v22 = vmul.f32 %v6022_v18, %v7701_v2  ;;  %v3880_v37 = vadd.f32 %v3872_v23, %v3864_v13 }
 0xb6b   : > { %6027 = vpow2.f32 %v3741_v25  ;;  %v3871_v43 = vmul.f32 %v6024_v10, %v7694_v27  ;;  %v3777_v56 = vsub.f32 %v3604_v57, %v3721_v53  ;;  %v3801_v29 = vsub.f32 %v3614_v54, %v3721_v53  ;;  %v6026_v26 = vpop.eup %6025 }
 0xb6c   : > { %6029 = vrcp.f32 %v3840_v6  ;;  %v3831_v55 = vadd.f32 %v6024_v10, %v3823_v0  ;;  %v3863_v19 = vadd.f32 %v3855_v22, %v3847_v59  ;;  %v3739_v41 = vmul.f32 1.442695, %v3729_v46 }
 0xb6d   : > { %6031 = vpow2.f32 %v3765_v48  ;;  %v7708_v52 = vadd.f32 %v5371_v38, %v7671_v24  ;;  %v3763_v34 = vmul.f32 1.442695, %v3753_v42  ;;  %v3787_v16 = vmul.f32 1.442695, %v3777_v56 }
 0xb6e   : > { %v3839_v50 = vadd.f32 %v6026_v26, %v3831_v55  ;;  %6033 = vpow2.f32 %v3789_v33  ;;  %v3879_v49 = vadd.f32 %v3871_v43, %v3863_v19  ;;  %v7712_v62 = vadd.f32 %v3341_v9, %v7671_v24 }
 0xb6f   : > { %6035 = vpow2.f32 %v3813_v21  ;;  %v3888_v60 = vmul.f32 %v6018_v15, %v7708_v52  ;;  %v3811_v4 = vmul.f32 1.442695, %v3801_v29 }
 0xb70   : > { %6037 = vrcp.f32 %v3839_v50  ;;  %v3887_v12 = vmul.f32 %v6026_v26, %v7712_v62 }
 0xb71   : > { %6039 = vpow2.f32 %v3739_v41  ;;  %v3896_v5 = vadd.f32 %v3888_v60, %v3880_v37 }
 0xb72   : > { %6041 = vpow2.f32 %v3763_v34  ;;  %v3895_v11 = vadd.f32 %v3887_v12, %v3879_v49 }
 0xb73   : > { %6043 = vpow2.f32 %v3787_v16 }
 0xb74   : > { %6045 = vpow2.f32 %v3811_v4 }
 0xb75   : > { %v6028_v57 = vpop.eup %6027 }
 0xb76   : > { %v6030_v3 = vpop.eup %6029  ;;  %v3850_v61 = vmul.f32 %v6028_v57, %v7681_v58 }
 0xb77   : > { %v6032_v40 = vpop.eup %6031  ;;  %v3912_v36 = vmul.f32 %v6030_v3, %v3896_v5 }
 0xb78   : > { %v6034_v35 = vpop.eup %6033  ;;  %v3826_v30 = vadd.f32 %v6032_v40, %v6028_v57  ;;  %v3858_v24 = vmul.f32 %v6032_v40, %v7684_v63 }
 0xb79   : > { %v6036_v54 = vpop.eup %6035  ;;  %v3874_v7 = vmul.f32 %v6034_v35, %v7687_v39 }
 0xb7a   : > { %v6038_v8 = vpop.eup %6037  ;;  %v3834_v1 = vadd.f32 %v6034_v35, %v3826_v30  ;;  %v3866_v53 = vadd.f32 %v3858_v24, %v3850_v61  ;;  %v3890_v15 = vmul.f32 %v6036_v54, %v7708_v52 }
 0xb7b   : > { %v6040_v45 = vpop.eup %6039  ;;  %v3911_v31 = vmul.f32 %v6038_v8, %v3895_v11 }
 0xb7c   : > { %v6042_v32 = vpop.eup %6041  ;;  %v3842_v14 = vadd.f32 %v6036_v54, %v3834_v1  ;;  %v3849_v23 = vmul.f32 %v6040_v45, %v7691_v20  ;;  %v3882_v17 = vadd.f32 %v3874_v7, %v3866_v53 }
 0xb7d   : > { %v6044_v44 = vpop.eup %6043  ;;  %v3825_v46 = vadd.f32 %v6042_v32, %v6040_v45  ;;  %5436 = vmatprep.mubr.msk.f32.mxu1 %vm503_vm0, %v3911_v31  ;;  %v3857_v38 = vmul.f32 %v6042_v32, %v7701_v2 }
 0xb7e   : > { %v6046_v28 = vpop.eup %6045  ;;  %6047 = vrcp.f32 %v3842_v14  ;;  %5437 = vmatmul.mubr.msk.f32.vlgmr.msra.gmra.mrb[60].mxu1 %vm503_vm0, %v3912_v36  ;;  %v3898_v47 = vadd.f32 %v3890_v15, %v3882_v17  ;;  %v3873_v9 = vmul.f32 %v6044_v44, %v7694_v27 }
 0xb7f   : > { %v3833_v13 = vadd.f32 %v6044_v44, %v3825_v46  ;;  %v3865_v25 = vadd.f32 %v3857_v38, %v3849_v23  ;;  %v3889_v59 = vmul.f32 %v6046_v28, %v7712_v62 }
 0xb80   : > { %v5406_v33 = vpop.f32.mrb[68].mxu0 }
 0xb81   : > { %v3841_v18 = vadd.f32 %v6046_v28, %v3833_v13  ;;  %v3881_v48 = vadd.f32 %v3873_v9, %v3865_v25  ;;  %v3624_v21 = vpop.f32.mrb[69].mxu0 }
 0xb83   : > { %6049 = vrcp.f32 %v3841_v18  ;;  %v3897_v10 = vadd.f32 %v3889_v59, %v3881_v48 }
 0xb84   : > { %v5409_v6 = vpop.f32.mrb[70].mxu0 }
 0xb85   : > { %v3708_v0 = vmax.f32 %v5406_v33, %v5409_v6  ;;  %v3634_v22 = vpop.f32.mrb[71].mxu0 }
 0xb86   : > { %v3707_v43 = vmax.f32 %v3624_v21, %v3634_v22 }
 0xb88   : > { %v6048_v37 = vpop.eup %6047  ;;  %v5412_v56 = vpop.f32.mrb[72].mxu0 }
 0xb89   : > { %v3914_v42 = vmul.f32 %v6048_v37, %v3898_v47  ;;  %v3716_v55 = vmax.f32 %v3708_v0, %v5412_v56  ;;  %v3644_v19 = vpop.f32.mrb[73].mxu0 }
 0xb8a   : > { %v3715_v29 = vmax.f32 %v3707_v43, %v3644_v19 }
 0xb8c   : > { %v5415_v50 = vpop.f32.mrb[74].mxu0 }
 0xb8d   : > { %v6050_v26 = vpop.eup %6049  ;;  %v3724_v49 = vmax.f32 %v3716_v55, %v5415_v50  ;;  %v3654_v34 = vpop.f32.mrb[75].mxu0 }
 0xb8e   : > { %v3913_v41 = vmul.f32 %v6050_v26, %v3897_v10  ;;  %v3723_v16 = vmax.f32 %v3715_v29, %v3654_v34 }
 0xb8f   : > { %v3732_v60 = vsub.f32 %v5406_v33, %v3724_v49  ;;  %v3756_v4 = vsub.f32 %v5409_v6, %v3724_v49  ;;  %v3780_v5 = vsub.f32 %v5412_v56, %v3724_v49  ;;  %v3804_v12 = vsub.f32 %v5415_v50, %v3724_v49 }
 0xb90   : > { %5439 = vmatprep.mubr.msk.f32.mxu1 %vm503_vm0, %v3913_v41  ;;  %v3731_v11 = vsub.f32 %v3624_v21, %v3723_v16  ;;  %v3755_v57 = vsub.f32 %v3634_v22, %v3723_v16  ;;  %v3779_v3 = vsub.f32 %v3644_v19, %v3723_v16  ;;  %v3803_v61 = vsub.f32 %v3654_v34, %v3723_v16  ;;  %v5418_v40 = vpop.f32.mrb[76].mxu0 }
 0xb91   : > { %5440 = vmatmul.mubr.msk.f32.gmra.mrb[62].mxu1 %vm503_vm0, %v3914_v42  ;;  %v3745_v36 = vmul.f32 1.442695, %v3732_v60  ;;  %v3769_v35 = vmul.f32 1.442695, %v3756_v4  ;;  %v3793_v30 = vmul.f32 1.442695, %v3780_v5 }
 0xb92   : > { %v3817_v24 = vmul.f32 1.442695, %v3804_v12  ;;  %v3743_v54 = vmul.f32 1.442695, %v3731_v11  ;;  %v3664_v8 = vpop.f32.mrb[77].mxu0 }
 0xb93   : > { %6051 = vpow2.f32 %v3745_v36  ;;  %v3767_v1 = vmul.f32 1.442695, %v3755_v57  ;;  %v3791_v7 = vmul.f32 1.442695, %v3779_v3  ;;  %v3815_v32 = vmul.f32 1.442695, %v3803_v61 }
 0xb94   : > { %6053 = vpow2.f32 %v3769_v35  ;;  %v5421_v53 = vpop.f32.mrb[78].mxu0 }
 0xb95   : > { %6055 = vpow2.f32 %v3793_v30  ;;  %v3710_v45 = vmax.f32 %v5418_v40, %v5421_v53  ;;  %v3674_v31 = vpop.f32.mrb[79].mxu0 }
 0xb96   : > { %6057 = vpow2.f32 %v3817_v24  ;;  %v3709_v14 = vmax.f32 %v3664_v8, %v3674_v31 }
 0xb97   : > { %6059 = vpow2.f32 %v3743_v54 }
 0xb98   : > { %6061 = vpow2.f32 %v3767_v1  ;;  %v5424_v15 = vpop.f32.mrb[80].mxu0 }
 0xb99   : > { %6063 = vpow2.f32 %v3791_v7  ;;  %v3718_v23 = vmax.f32 %v3710_v45, %v5424_v15  ;;  %v3684_v17 = vpop.f32.mrb[81].mxu0 }
 0xb9a   : > { %6065 = vpow2.f32 %v3815_v32  ;;  %v3717_v44 = vmax.f32 %v3709_v14, %v3684_v17 }
 0xb9c   : > { %v5427_v46 = vpop.f32.mrb[82].mxu0 }
 0xb9d   : > { %v6052_v38 = vpop.eup %6051  ;;  %v3726_v28 = vmax.f32 %v3718_v23, %v5427_v46  ;;  %v3694_v47 = vpop.f32.mrb[83].mxu0 }
 0xb9e   : > { %v6054_v13 = vpop.eup %6053  ;;  %v3725_v25 = vmax.f32 %v3717_v44, %v3694_v47  ;;  %v3852_v26 = vmul.f32 %v6052_v38, %v7681_v58 }
 0xb9f   : > { %v6056_v9 = vpop.eup %6055  ;;  %v3828_v18 = vadd.f32 %v6054_v13, %v6052_v38  ;;  %v3734_v59 = vsub.f32 %v5418_v40, %v3726_v28  ;;  %v3758_v48 = vsub.f32 %v5421_v53, %v3726_v28  ;;  %v3782_v33 = vsub.f32 %v5424_v15, %v3726_v28 }
 0xba0   : > { %v6058_v21 = vpop.eup %6057  ;;  %v3806_v10 = vsub.f32 %v5427_v46, %v3726_v28  ;;  %v3733_v6 = vsub.f32 %v3664_v8, %v3725_v25  ;;  %v3757_v0 = vsub.f32 %v3674_v31, %v3725_v25  ;;  %v3781_v22 = vsub.f32 %v3684_v17, %v3725_v25 }
 0xba1   : > { %v6060_v37 = vpop.eup %6059  ;;  %v3836_v43 = vadd.f32 %v6056_v9, %v3828_v18  ;;  %v3749_v42 = vmul.f32 1.442695, %v3734_v59  ;;  %v3773_v56 = vmul.f32 1.442695, %v3758_v48  ;;  %v3797_v19 = vmul.f32 1.442695, %v3782_v33 }
 0xba2   : > { %v6062_v55 = vpop.eup %6061  ;;  %v3805_v29 = vsub.f32 %v3694_v47, %v3725_v25  ;;  %v3821_v34 = vmul.f32 1.442695, %v3806_v10  ;;  %v3747_v60 = vmul.f32 1.442695, %v3733_v6  ;;  %v3851_v4 = vmul.f32 %v6060_v37, %v7691_v20 }
 0xba3   : > { %v6064_v41 = vpop.eup %6063  ;;  %v3844_v50 = vadd.f32 %v6058_v21, %v3836_v43  ;;  %v3827_v49 = vadd.f32 %v6062_v55, %v6060_v37  ;;  %6067 = vpow2.f32 %v3749_v42  ;;  %v3859_v5 = vmul.f32 %v6062_v55, %v7701_v2  ;;  %v5770_v55 = vpop.permute.xlu1 %5769 }
 0xba4   : > { %v6066_v16 = vpop.eup %6065  ;;  %6069 = vpow2.f32 %v3773_v56  ;;  %v3771_v11 = vmul.f32 1.442695, %v3757_v0  ;;  %v3795_v57 = vmul.f32 1.442695, %v3781_v22  ;;  %v3875_v61 = vmul.f32 %v6064_v41, %v7694_v27 }
 0xba5   : > { %6071 = vrcp.f32 %v3844_v50  ;;  %v3835_v12 = vadd.f32 %v6064_v41, %v3827_v49  ;;  %v3867_v3 = vadd.f32 %v3859_v5, %v3851_v4  ;;  %v3860_v40 = vmul.f32 %v6054_v13, %v7684_v63 }
 0xba6   : > { %6073 = vpow2.f32 %v3797_v19  ;;  %v3819_v35 = vmul.f32 1.442695, %v3805_v29  ;;  %v3891_v30 = vmul.f32 %v6066_v16, %v7712_v62  ;;  %v3876_v8 = vmul.f32 %v6056_v9, %v7687_v39 }
 0xba7   : > { %v3843_v36 = vadd.f32 %v6066_v16, %v3835_v12  ;;  %6075 = vpow2.f32 %v3821_v34  ;;  %v3883_v24 = vadd.f32 %v3875_v61, %v3867_v3  ;;  %v3868_v54 = vadd.f32 %v3860_v40, %v3852_v26  ;;  %v5765_v26 = vpop.permute.xlu0 %5764  ;;  %v5775_v5 = vpop.permute.xlu1 %5774 }
 0xba8   : > { %6077 = vpow2.f32 %v3747_v60  ;;  %v3892_v7 = vmul.f32 %v6058_v21, %v7708_v52  ;;  %v5772_v29 = vunpack.i.h.bf16 %v5770_v55  ;;  %v5767_v50 = vunpack.i.h.bf16 %v5765_v26 }
 0xba9   : > { %6079 = vrcp.f32 %v3843_v36  ;;  %v3899_v1 = vadd.f32 %v3891_v30, %v3883_v24  ;;  %v3884_v53 = vadd.f32 %v3876_v8, %v3868_v54  ;;  %v5766_v49 = vunpack.i.l.bf16 %v5765_v26  ;;  %v6141_v30 = vld [vmem:[%s7936_s3 + $0x8] sm:$0xff]  ;;  %v6142_v54 = vld [vmem:[%s7936_s3 + $0x10] sm:$0xff]  ;;  %v6143_v8 = vld [vmem:[%s7936_s3 + $0x18] sm:$0xff] }
 0xbaa   : > { %6081 = vpow2.f32 %v3771_v11  ;;  %v5777_v12 = vunpack.i.h.bf16 %v5775_v5  ;;  %v5776_v11 = vunpack.i.l.bf16 %v5775_v5 }
 0xbab   : > { %6083 = vpow2.f32 %v3795_v57  ;;  %v3900_v45 = vadd.f32 %v3892_v7, %v3884_v53  ;;  %v4091_v16 = vsel %vm503_vm0, %v5766_v49, %v5767_v50  ;;  %v6144_v53 = vld [vmem:[%s7936_s3 + $0x20] sm:$0xff]  ;;  %v6145_v7 = vld [vmem:[%s7936_s3 + $0x28] sm:$0xff] }
 0xbac   : > { %6085 = vpow2.f32 %v3819_v35  ;;  %v4093_v61 = vsel %vm503_vm0, %v5776_v11, %v5777_v12  ;;  %v6140_v35 = vld [vmem:[%s7936_s3] sm:$0xff] }
 0xbad   : > { %v6068_v31 = vpop.eup %6067  ;;  %v5783_v24 = vpack.i.bf16 %v6141_v30, %v6140_v35 }
 0xbae   : > { %v6070_v32 = vpop.eup %6069  ;;  %v3854_v14 = vmul.f32 %v6068_v31, %v7681_v58 }
 0xbaf   : > { %v6072_v15 = vpop.eup %6071  ;;  %v3830_v23 = vadd.f32 %v6070_v32, %v6068_v31  ;;  %v3862_v17 = vmul.f32 %v6070_v32, %v7684_v63  ;;  %5784 = vrot.lane.b32.xlu0 %v5783_v24, %s6182_s24  ;;  %v6146_v31 = vld [vmem:[%s7936_s3 + $0x30] sm:$0xff]  ;;  %v6147_v32 = vld [vmem:[%s7936_s3 + $0x38] sm:$0xff] }
 0xbb0   : > { %v6074_v44 = vpop.eup %6073  ;;  %v3916_v46 = vmul.f32 %v6072_v15, %v3900_v45  ;;  %v5793_v45 = vpack.i.bf16 %v6145_v7, %v6144_v53 }
 0xbb1   : > { %v6076_v38 = vpop.eup %6075  ;;  %v3838_v28 = vadd.f32 %v6074_v44, %v3830_v23  ;;  %v3870_v47 = vadd.f32 %v3862_v17, %v3854_v14  ;;  %v3878_v13 = vmul.f32 %v6074_v44, %v7687_v39  ;;  %v5798_v14 = vpack.i.bf16 %v6147_v32, %v6146_v31 }
 0xbb2   : > { %v6078_v25 = vpop.eup %6077  ;;  %v3894_v33 = vmul.f32 %v6076_v38, %v7708_v52 }
 0xbb3   : > { %v6080_v9 = vpop.eup %6079  ;;  %v3846_v18 = vadd.f32 %v6076_v38, %v3838_v28  ;;  %v3853_v59 = vmul.f32 %v6078_v25, %v7691_v20  ;;  %v3886_v48 = vadd.f32 %v3878_v13, %v3870_v47  ;;  %5794 = vrot.lane.b32.xlu0 %v5793_v45, %s6182_s24  ;;  %v6148_v38 = vld [vmem:[%s6345_s6 + $0xc0] sm:$0xff]  ;;  %v6149_v47 = vld [vmem:[%s6345_s6 + $0xc8] sm:$0xff] }
 0xbb4   : > { %v6082_v58 = vpop.eup %6081  ;;  %v3915_v21 = vmul.f32 %v6080_v9, %v3899_v1  ;;  %v5788_v1 = vpack.i.bf16 %v6143_v8, %v6142_v54 }
 0xbb5   : > { %v6084_v10 = vpop.eup %6083  ;;  %6087 = vrcp.f32 %v3846_v18  ;;  %v3829_v63 = vadd.f32 %v6082_v58, %v6078_v25  ;;  %v3861_v6 = vmul.f32 %v6082_v58, %v7701_v2  ;;  %v3902_v0 = vadd.f32 %v3894_v33, %v3886_v48  ;;  %v6151_v33 = vld [vmem:[%s6345_s6 + $0xd8] sm:$0xff] }
 0xbb6   : > { %v6086_v22 = vpop.eup %6085  ;;  %5442 = vmatprep.mubr.msk.f32.mxu1 %vm503_vm0, %v3915_v21  ;;  %v3877_v20 = vmul.f32 %v6084_v10, %v7694_v27  ;;  %v5771_v2 = vunpack.i.l.bf16 %v5770_v55  ;;  %5789 = vrot.lane.b32.xlu1 %v5788_v1, %s6182_s24 }
 0xbb7   : > { %v3837_v39 = vadd.f32 %v6084_v10, %v3829_v63  ;;  %5443 = vmatmul.mubr.msk.f32.gmra.mrb[64].mxu1 %vm503_vm0, %v3916_v46  ;;  %v3869_v37 = vadd.f32 %v3861_v6, %v3853_v59  ;;  %v3893_v52 = vmul.f32 %v6086_v22, %v7712_v62  ;;  %v5780_v62 = vpop.permute.xlu1 %5779  ;;  %4295 = vrot.lane.b32.xlu0 %v7676_v51, %s6182_s24  ;;  %v6150_v59 = vld [vmem:[%s6345_s6 + $0xd0] sm:$0xff] }
 0xbb8   : > { %v4092_v34 = vsel %vm503_vm0, %v5771_v2, %v5772_v29  ;;  %v5782_v57 = vunpack.i.h.bf16 %v5780_v62  ;;  %v5781_v3 = vunpack.i.l.bf16 %v5780_v62 }
 0xbb9   : > { %v3845_v43 = vadd.f32 %v6086_v22, %v3837_v39  ;;  %v3885_v42 = vadd.f32 %v3877_v20, %v3869_v37  ;;  %v5616_v60 = vpack.c.bf16 %v4092_v34, %v4091_v16  ;;  %v6153_v39 = vld [vmem:[%s6345_s6 + $0xe8] sm:$0xff] }
 0xbba   : > { %v4094_v40 = vsel %vm503_vm0, %v5781_v3, %v5782_v57  ;;  %5799 = vrot.lane.b32.xlu1 %v5798_v14, %s6182_s24 }
 0xbbb   : > { %6089 = vrcp.f32 %v3845_v43  ;;  %v3901_v56 = vadd.f32 %v3893_v52, %v3885_v42  ;;  %5617 = vmatprep.subr.bf16.mxu1 %v5616_v60  ;;  %v5620_v36 = vpack.c.bf16 %v4094_v40, %v4093_v61  ;;  %v3920_v15 = vpop.permute.xlu1 %3919 }
 0xbbc   : > { %5619 = vmatpush3.bf16.msra.mxu1 %v5616_v60 }
 0xbbd   : > { %5621 = vmatprep.subr.bf16.mxu1 %v5620_v36 }
 0xbbf   : > { %v6088_v19 = vpop.eup %6087  ;;  %v7821_v2 = vpop.permute.xlu1 %4099 }
 0xbc0   : > { %v3918_v41 = vmul.f32 %v6088_v19, %v3902_v0  ;;  %5623 = vmatpush3.bf16.msra.mxu1 %v5620_v36  ;;  %v6152_v0 = vld [vmem:[%s6345_s6 + $0xe0] sm:$0xff]  ;;  %v6155_v19 = vld [vmem:[%s6345_s6 + $0xf8] sm:$0xff] }
 0xbc5   : > { %v6090_v27 = vpop.eup %6089 }
 0xbc6   : > { %v3917_v4 = vmul.f32 %v6090_v27, %v3901_v56  ;;  %v6154_v56 = vld [vmem:[%s6345_s6 + $0xf0] sm:$0xff] }
 0xbc8   : > { %5445 = vmatprep.mubr.msk.f32.mxu1 %vm503_vm0, %v3917_v4 }
 0xbc9   : > { %5446 = vmatmul.mubr.msk.f32.gmra.mrb[66].mxu1 %vm503_vm0, %v3918_v41 }
 0xc21   : > { %v5785_v26 = vpop.permute.xlu0 %5784 }
 0xc22   : > { %v5787_v41 = vunpack.i.h.bf16 %v5785_v26  ;;  %v5786_v50 = vunpack.i.l.bf16 %v5785_v26 }
 0xc24   : > { %v5624_v49 = vpack.c.bf16 %v5787_v41, %v5786_v50 }
 0xc25   : > { %v5795_v4 = vpop.permute.xlu0 %5794 }
 0xc26   : > { %5625 = vmatprep.subr.bf16.mxu1 %v5624_v49  ;;  %v5797_v5 = vunpack.i.h.bf16 %v5795_v4  ;;  %v5796_v62 = vunpack.i.l.bf16 %v5795_v4 }
 0xc28   : > { %v5790_v34 = vpop.permute.xlu1 %5789  ;;  %v5632_v12 = vpack.c.bf16 %v5797_v5, %v5796_v62 }
 0xc29   : > { %v5792_v16 = vunpack.i.h.bf16 %v5790_v34  ;;  %v5791_v60 = vunpack.i.l.bf16 %v5790_v34 }
 0xc2b   : > { %v5628_v27 = vpack.c.bf16 %v5792_v16, %v5791_v60 }
 0xc2c   : > { %v5800_v11 = vpop.permute.xlu1 %5799 }
 0xc2d   : > { %v5802_v57 = vunpack.i.h.bf16 %v5800_v11  ;;  %v5801_v3 = vunpack.i.l.bf16 %v5800_v11 }
 0xc2f   : > { %v5636_v61 = vpack.c.bf16 %v5802_v57, %v5801_v3 }
 0xc51   : > { %v5438_v23 = vpop.f32.mrb[60].mxu1 }
 0xc52   : > { %v4018_v17 = vadd.f32 %v5438_v23, %v3920_v15  ;;  %v4012_v44 = vpop.f32.mrb[61].mxu1 }
 0xc53   : > { %v4013_v46 = vadd.f32 %v4012_v44, %v3920_v15 }
 0xc54   : > { %v7785_v13 = vadd.f32 %v6149_v47, %v4018_v17 }
 0xc55   : > { %v7782_v28 = vadd.f32 %v6148_v38, %v4013_v46 }
 0xc57   : > { %5456 = vmatprep.mubr.msk.f32.mxu1 %vm503_vm0, %v7782_v28 }
 0xc58   : > { %5457 = vmatmul.mubr.msk.f32.vlgmr.msra.gmra.mrb[68].mxu1 %vm503_vm0, %v7785_v13 }
 0xc59   : > { %5627 = vmatpush3.bf16.msra.mxu1 %v5624_v49 }
 0xc5a   : > { %5629 = vmatprep.subr.bf16.mxu1 %v5628_v27 }
 0xc5d   : > { %5631 = vmatpush3.bf16.msra.mxu1 %v5628_v27 }
 0xc5e   : > { %5633 = vmatprep.subr.bf16.mxu1 %v5632_v12 }
 0xc61   : > { %5635 = vmatpush3.bf16.msra.mxu1 %v5632_v12 }
 0xc62   : > { %5637 = vmatprep.subr.bf16.mxu1 %v5636_v61 }
 0xc64   : > { %v5441_v51 = vpop.f32.mrb[62].mxu1 }
 0xc65   : > { %v4028_v25 = vadd.f32 %v5441_v51, %v3920_v15  ;;  %v4022_v9 = vpop.f32.mrb[63].mxu1  ;;  %5639 = vmatpush3.bf16.msra.mxu1 %v5636_v61 }
 0xc66   : > { %v4023_v18 = vadd.f32 %v4022_v9, %v3920_v15 }
 0xc67   : > { %v7795_v58 = vadd.f32 %v6151_v33, %v4028_v25 }
 0xc68   : > { %v7792_v48 = vadd.f32 %v6150_v59, %v4023_v18 }
 0xc6a   : > { %5459 = vmatprep.mubr.msk.f32.mxu1 %vm503_vm0, %v7792_v48 }
 0xc6b   : > { %5460 = vmatmul.mubr.msk.f32.gmra.mrb[70].mxu1 %vm503_vm0, %v7795_v58 }
 0xc8a   : > { %v5444_v21 = vpop.f32.mrb[64].mxu1 }
 0xc8b   : > { %v4038_v10 = vadd.f32 %v5444_v21, %v3920_v15  ;;  %v4032_v63 = vpop.f32.mrb[65].mxu1 }
 0xc8c   : > { %v4033_v6 = vadd.f32 %v4032_v63, %v3920_v15 }
 0xc8d   : > { %v7805_v37 = vadd.f32 %v6153_v39, %v4038_v10 }
 0xc8e   : > { %v7802_v22 = vadd.f32 %v6152_v0, %v4033_v6 }
 0xc90   : > { %5462 = vmatprep.mubr.msk.f32.mxu1 %vm503_vm0, %v7802_v22 }
 0xc91   : > { %5463 = vmatmul.mubr.msk.f32.gmra.mrb[72].mxu1 %vm503_vm0, %v7805_v37 }
 0xc9c   : > { %v5447_v20 = vpop.f32.mrb[66].mxu1 }
 0xc9d   : > { %v4048_v43 = vadd.f32 %v5447_v20, %v3920_v15  ;;  %v4042_v42 = vpop.f32.mrb[67].mxu1 }
 0xc9e   : > { %v4043_v52 = vadd.f32 %v4042_v42, %v3920_v15 }
 0xc9f   : > { %v7815_v29 = vadd.f32 %v6155_v19, %v4048_v43 }
 0xca0   : > { %v7812_v55 = vadd.f32 %v6154_v56, %v4043_v52 }
 0xca2   : > { %5465 = vmatprep.mubr.msk.f32.mxu1 %vm503_vm0, %v7812_v55 }
 0xca3   : > { %5466 = vmatmul.mubr.msk.f32.gmra.mrb[74].mxu1 %vm503_vm0, %v7815_v29 }
 0xd2b   : > { %v5458_v40 = vpop.f32.mrb[68].mxu1 }
 0xd2c   : > { %v4198_v36 = vadd.f32 %v5458_v40, %v7821_v2  ;;  %v4192_v35 = vpop.f32.mrb[69].mxu1 }
 0xd2d   : > { %v4193_v30 = vadd.f32 %v4192_v35, %v7821_v2 }
 0xd2e   : > { %v4240_v24 = vmul.f32 0.70710677, %v4198_v36  ;;  %v4232_v31 = vmul.f32 0.5, %v4198_v36 }
 0xd2f   : > { %v4239_v54 = vmul.f32 0.70710677, %v4193_v30  ;;  %v4231_v7 = vmul.f32 0.5, %v4193_v30 }
 0xd30   : > { %6091 = verf.f32 %v4240_v24 }
 0xd31   : > { %6093 = verf.f32 %v4239_v54 }
 0xd3a   : > { %v6092_v8 = vpop.eup %6091 }
 0xd3b   : > { %v6094_v1 = vpop.eup %6093  ;;  %v4256_v53 = vadd.f32 1.0, %v6092_v8 }
 0xd3c   : > { %v4255_v45 = vadd.f32 1.0, %v6094_v1 }
 0xd3d   : > { %v4264_v15 = vmul.f32 %v4256_v53, %v4232_v31 }
 0xd3e   : > { %v4263_v32 = vmul.f32 %v4255_v45, %v4231_v7  ;;  %v5461_v14 = vpop.f32.mrb[70].mxu1 }
 0xd3f   : > { %v4208_v23 = vadd.f32 %v5461_v14, %v7821_v2  ;;  %v4202_v17 = vpop.f32.mrb[71].mxu1 }
 0xd40   : > { %v4203_v44 = vadd.f32 %v4202_v17, %v7821_v2  ;;  %5484 = vmatprep.mubr.msk.f32.mxu1 %vm2201_vm1, %v4263_v32 }
 0xd41   : > { %v4242_v46 = vmul.f32 0.70710677, %v4208_v23  ;;  %5485 = vmatmul.mubr.msk.f32.vlgmr.msra.gmra.mrb[76].mxu1 %vm2201_vm1, %v4264_v15  ;;  %v4234_v59 = vmul.f32 0.5, %v4208_v23 }
 0xd42   : > { %v4241_v38 = vmul.f32 0.70710677, %v4203_v44  ;;  %v4233_v9 = vmul.f32 0.5, %v4203_v44 }
 0xd43   : > { %6095 = verf.f32 %v4242_v46 }
 0xd44   : > { %6097 = verf.f32 %v4241_v38 }
 0xd4d   : > { %v6096_v47 = vpop.eup %6095 }
 0xd4e   : > { %v6098_v51 = vpop.eup %6097  ;;  %v4258_v25 = vadd.f32 1.0, %v6096_v47 }
 0xd4f   : > { %v4257_v18 = vadd.f32 1.0, %v6098_v51 }
 0xd50   : > { %v4266_v21 = vmul.f32 %v4258_v25, %v4234_v59 }
 0xd51   : > { %v4265_v33 = vmul.f32 %v4257_v18, %v4233_v9 }
 0xd53   : > { %5487 = vmatprep.mubr.msk.f32.mxu1 %vm2201_vm1, %v4265_v33 }
 0xd54   : > { %5488 = vmatmul.mubr.msk.f32.gmra.mrb[78].mxu1 %vm2201_vm1, %v4266_v21 }
 0xd64   : > { %v5464_v10 = vpop.f32.mrb[72].mxu1 }
 0xd65   : > { %v4218_v63 = vadd.f32 %v5464_v10, %v7821_v2  ;;  %v4212_v6 = vpop.f32.mrb[73].mxu1 }
 0xd66   : > { %v4213_v0 = vadd.f32 %v4212_v6, %v7821_v2 }
 0xd67   : > { %v4244_v39 = vmul.f32 0.70710677, %v4218_v63  ;;  %v4236_v26 = vmul.f32 0.5, %v4218_v63 }
 0xd68   : > { %v4243_v20 = vmul.f32 0.70710677, %v4213_v0  ;;  %v4235_v56 = vmul.f32 0.5, %v4213_v0 }
 0xd69   : > { %6099 = verf.f32 %v4244_v39 }
 0xd6a   : > { %6101 = verf.f32 %v4243_v20 }
 0xd73   : > { %v6100_v43 = vpop.eup %6099 }
 0xd74   : > { %v6102_v42 = vpop.eup %6101  ;;  %v4260_v52 = vadd.f32 1.0, %v6100_v43 }
 0xd75   : > { %v4259_v19 = vadd.f32 1.0, %v6102_v42 }
 0xd76   : > { %v5467_v41 = vpop.f32.mrb[74].mxu1  ;;  %v4268_v16 = vmul.f32 %v4260_v52, %v4236_v26 }
 0xd77   : > { %v4267_v50 = vmul.f32 %v4259_v19, %v4235_v56  ;;  %v4228_v49 = vadd.f32 %v5467_v41, %v7821_v2  ;;  %v4222_v34 = vpop.f32.mrb[75].mxu1 }
 0xd78   : > { %v4223_v60 = vadd.f32 %v4222_v34, %v7821_v2  ;;  %v4296_v2 = vpop.permute.xlu0 %4295 }
 0xd79   : > { %v4246_v27 = vmul.f32 0.70710677, %v4228_v49  ;;  %5490 = vmatprep.mubr.msk.f32.mxu1 %vm2201_vm1, %v4267_v50  ;;  %v4238_v3 = vmul.f32 0.5, %v4228_v49 }
 0xd7a   : > { %v4245_v4 = vmul.f32 0.70710677, %v4223_v60  ;;  %5491 = vmatmul.mubr.msk.f32.gmra.mrb[80].mxu1 %vm2201_vm1, %v4268_v16  ;;  %v4237_v11 = vmul.f32 0.5, %v4223_v60 }
 0xd7b   : > { %6103 = verf.f32 %v4246_v27 }
 0xd7c   : > { %6105 = verf.f32 %v4245_v4 }
 0xd85   : > { %v6104_v5 = vpop.eup %6103 }
 0xd86   : > { %v6106_v62 = vpop.eup %6105  ;;  %v4262_v12 = vadd.f32 1.0, %v6104_v5 }
 0xd87   : > { %v4261_v57 = vadd.f32 1.0, %v6106_v62 }
 0xd88   : > { %v4270_v40 = vmul.f32 %v4262_v12, %v4238_v3 }
 0xd89   : > { %v4269_v61 = vmul.f32 %v4261_v57, %v4237_v11 }
 0xd8b   : > { %5493 = vmatprep.mubr.msk.f32.mxu1 %vm2201_vm1, %v4269_v61 }
 0xd8c   : > { %5494 = vmatmul.mubr.msk.f32.gmra.mrb[82].mxu1 %vm2201_vm1, %v4270_v40 }
 0xe14   : > { %v5486_v36 = vpop.f32.mrb[76].mxu1 }
 0xe15   : > { %v4394_v35 = vadd.f32 %v5486_v36, %v4296_v2  ;;  %v4388_v30 = vpop.f32.mrb[77].mxu1 }
 0xe16   : > { %v4389_v24 = vadd.f32 %v4388_v30, %v4296_v2 }
 0xe17   : > { %v4428_v54 = vadd.f32 %v4394_v35, %v7785_v13 }
 0xe18   : > { %v4427_v8 = vadd.f32 %v4389_v24, %v7782_v28 }
 0xe19   : > { %v4438_v1 = vsel %vm503_vm0, %v4428_v54, 0.0 }
 0xe1a   : > { %4439 = vadd.xlane.f32.xlu0 %v4438_v1  ;;  %v4435_v53 = vsel %vm503_vm0, %v4427_v8, 0.0 }
 0xe1b   : > { %4436 = vadd.xlane.f32.xlu1 %v4435_v53 }
 0xe27   : > { %v5489_v7 = vpop.f32.mrb[78].mxu1 }
 0xe28   : > { %v4404_v45 = vadd.f32 %v5489_v7, %v4296_v2  ;;  %v4398_v31 = vpop.f32.mrb[79].mxu1  ;;  %v7890_v7 = vld [vmem:[%s7934_s1 + $0x4] ss:$0 sm:$0xff] }
 0xe29   : > { %v4399_v32 = vadd.f32 %v4398_v31, %v4296_v2 }
 0xe2a   : > { %v4430_v14 = vadd.f32 %v4404_v45, %v7795_v58 }
 0xe2b   : > { %v4429_v15 = vadd.f32 %v4399_v32, %v7792_v48 }
 0xe2c   : > { %v4444_v23 = vsel %vm503_vm0, %v4430_v14, 0.0 }
 0xe2d   : > { %4445 = vadd.xlane.f32.xlu1 %v4444_v23  ;;  %v4441_v13 = vsel %vm503_vm0, %v4429_v15, 0.0 }
 0xe2e   : > { %4442 = vadd.xlane.f32.xlu0 %v4441_v13 }
 0xe4d   : > { %v5492_v28 = vpop.f32.mrb[80].mxu1 }
 0xe4e   : > { %v4414_v17 = vadd.f32 %v5492_v28, %v4296_v2  ;;  %v4408_v44 = vpop.f32.mrb[81].mxu1 }
 0xe4f   : > { %v4409_v46 = vadd.f32 %v4408_v44, %v4296_v2 }
 0xe50   : > { %v4432_v38 = vadd.f32 %v4414_v17, %v7805_v37 }
 0xe51   : > { %v4431_v47 = vadd.f32 %v4409_v46, %v7802_v22 }
 0xe52   : > { %v4450_v51 = vsel %vm503_vm0, %v4432_v38, 0.0 }
 0xe53   : > { %4451 = vadd.xlane.f32.xlu1 %v4450_v51  ;;  %v4447_v58 = vsel %vm503_vm0, %v4431_v47, 0.0 }
 0xe54   : > { %4448 = vadd.xlane.f32.xlu0 %v4447_v58 }
 0xe5f   : > { %v5495_v48 = vpop.f32.mrb[82].mxu1 }
 0xe60   : > { %v4424_v25 = vadd.f32 %v5495_v48, %v4296_v2  ;;  %v4418_v9 = vpop.f32.mrb[83].mxu1 }
 0xe61   : > { %v4419_v18 = vadd.f32 %v4418_v9, %v4296_v2 }
 0xe62   : > { %v4434_v59 = vadd.f32 %v4424_v25, %v7815_v29 }
 0xe63   : > { %v4433_v33 = vadd.f32 %v4419_v18, %v7812_v55 }
 0xe64   : > { %v4456_v21 = vsel %vm503_vm0, %v4434_v59, 0.0 }
 0xe65   : > { %4457 = vadd.xlane.f32.xlu1 %v4456_v21  ;;  %v4453_v37 = vsel %vm503_vm0, %v4433_v33, 0.0 }
 0xe66   : > { %4454 = vadd.xlane.f32.xlu0 %v4453_v37 }
 0xea7   : > { %v4440_v22 = vpop.xlane.xlu0 %4439 }
 0xea8   : > { %v4460_v10 = vmul.f32 0.03125, %v4440_v22  ;;  %v4437_v63 = vpop.xlane.xlu1 %4436 }
 0xea9   : > { %v4459_v6 = vmul.f32 0.03125, %v4437_v63 }
 0xeaa   : > { %v7855_v0 = vsub.f32 %v4428_v54, %v4460_v10 }
 0xeab   : > { %v7857_v39 = vsub.f32 %v4427_v8, %v4459_v6 }
 0xeac   : > { %v4476_v20 = vmul.f32 %v7855_v0, %v7855_v0 }
 0xead   : > { %v4475_v55 = vmul.f32 %v7857_v39, %v7857_v39 }
 0xeae   : > { %v4486_v29 = vsel %vm503_vm0, %v4476_v20, 0.0 }
 0xeaf   : > { %4487 = vadd.xlane.f32.xlu1 %v4486_v29  ;;  %v4483_v43 = vsel %vm503_vm0, %v4475_v55, 0.0 }
 0xeb0   : > { %4484 = vadd.xlane.f32.xlu0 %v4483_v43 }
 0xeba   : > { %v4446_v42 = vpop.xlane.xlu1 %4445 }
 0xebb   : > { %v4462_v52 = vmul.f32 0.03125, %v4446_v42  ;;  %v4443_v56 = vpop.xlane.xlu0 %4442 }
 0xebc   : > { %v4461_v19 = vmul.f32 0.03125, %v4443_v56 }
 0xebd   : > { %v7865_v26 = vsub.f32 %v4430_v14, %v4462_v52 }
 0xebe   : > { %v7867_v41 = vsub.f32 %v4429_v15, %v4461_v19 }
 0xebf   : > { %v4478_v50 = vmul.f32 %v7865_v26, %v7865_v26 }
 0xec0   : > { %v4477_v49 = vmul.f32 %v7867_v41, %v7867_v41 }
 0xec1   : > { %v4492_v34 = vsel %vm503_vm0, %v4478_v50, 0.0 }
 0xec2   : > { %4493 = vadd.xlane.f32.xlu1 %v4492_v34  ;;  %v4489_v16 = vsel %vm503_vm0, %v4477_v49, 0.0 }
 0xec3   : > { %4490 = vadd.xlane.f32.xlu0 %v4489_v16 }
 0xee0   : > { %v4452_v60 = vpop.xlane.xlu1 %4451 }
 0xee1   : > { %v4464_v27 = vmul.f32 0.03125, %v4452_v60  ;;  %v4449_v4 = vpop.xlane.xlu0 %4448 }
 0xee2   : > { %v4463_v5 = vmul.f32 0.03125, %v4449_v4 }
 0xee3   : > { %v4472_v62 = vsub.f32 %v4432_v38, %v4464_v27 }
 0xee4   : > { %v4471_v12 = vsub.f32 %v4431_v47, %v4463_v5 }
 0xee5   : > { %v4480_v11 = vmul.f32 %v4472_v62, %v4472_v62 }
 0xee6   : > { %v4479_v57 = vmul.f32 %v4471_v12, %v4471_v12 }
 0xee7   : > { %v4498_v3 = vsel %vm503_vm0, %v4480_v11, 0.0 }
 0xee8   : > { %4499 = vadd.xlane.f32.xlu1 %v4498_v3  ;;  %v4495_v61 = vsel %vm503_vm0, %v4479_v57, 0.0 }
 0xee9   : > { %4496 = vadd.xlane.f32.xlu0 %v4495_v61 }
 0xef2   : > { %v4458_v40 = vpop.xlane.xlu1 %4457 }
 0xef3   : > { %v4466_v2 = vmul.f32 0.03125, %v4458_v40  ;;  %v4455_v36 = vpop.xlane.xlu0 %4454 }
 0xef4   : > { %v4465_v35 = vmul.f32 0.03125, %v4455_v36 }
 0xef5   : > { %v7877_v30 = vsub.f32 %v4434_v59, %v4466_v2 }
 0xef6   : > { %v7879_v24 = vsub.f32 %v4433_v33, %v4465_v35 }
 0xef7   : > { %v4482_v54 = vmul.f32 %v7877_v30, %v7877_v30 }
 0xef8   : > { %v4481_v8 = vmul.f32 %v7879_v24, %v7879_v24 }
 0xef9   : > { %v4504_v1 = vsel %vm503_vm0, %v4482_v54, 0.0 }
 0xefa   : > { %4505 = vadd.xlane.f32.xlu1 %v4504_v1  ;;  %v4501_v53 = vsel %vm503_vm0, %v4481_v8, 0.0 }
 0xefb   : > { %4502 = vadd.xlane.f32.xlu0 %v4501_v53 }
 0xf11   : > { %4554 = vrot.lane.b32.xlu0 %v7890_v7, %s6180_s15  ;;  %s4859_s15 = sshll.u32 %s7942_s18, 6 }
 0xf12   : > { %s421_s26 = scalar_lea.vmem %s7937_s4, %s4859_s15 }
 0xf3c   : > { %v4488_v45 = vpop.xlane.xlu1 %4487 }
 0xf3d   : > { %v4485_v31 = vpop.xlane.xlu0 %4484  ;;  %v4508_v14 = vmul.f32 0.03125, %v4488_v45 }
 0xf3e   : > { %v4507_v23 = vmul.f32 0.03125, %v4485_v31 }
 0xf3f   : > { %v4516_v17 = vadd.f32 1e-05, %v4508_v14 }
 0xf40   : > { %v4515_v44 = vadd.f32 1e-05, %v4507_v23 }
 0xf41   : > { %6107 = vrsqrt.f32 %v4516_v17 }
 0xf42   : > { %6109 = vrsqrt.f32 %v4515_v44 }
 0xf4b   : > { %v6108_v18 = vpop.eup %6107 }
 0xf4c   : > { %v6110_v59 = vpop.eup %6109  ;;  %v4532_v63 = vmul.f32 %v6108_v18, %v7855_v0 }
 0xf4d   : > { %v4531_v6 = vmul.f32 %v6110_v59, %v7857_v39 }
 0xf4e   : > { %v4547_v49 = vmul.f32 %v7890_v7, %v4532_v63 }
 0xf4f   : > { %v4494_v32 = vpop.xlane.xlu1 %4493  ;;  %v4546_v34 = vmul.f32 %v7890_v7, %v4531_v6 }
 0xf50   : > { %v4491_v15 = vpop.xlane.xlu0 %4490  ;;  %v4510_v13 = vmul.f32 0.03125, %v4494_v32 }
 0xf51   : > { %v4509_v28 = vmul.f32 0.03125, %v4491_v15 }
 0xf52   : > { %v4518_v46 = vadd.f32 1e-05, %v4510_v13 }
 0xf53   : > { %v4517_v38 = vadd.f32 1e-05, %v4509_v28 }
 0xf54   : > { %6111 = vrsqrt.f32 %v4518_v46 }
 0xf55   : > { %6113 = vrsqrt.f32 %v4517_v38 }
 0xf5e   : > { %v6112_v33 = vpop.eup %6111 }
 0xf5f   : > { %v6114_v21 = vpop.eup %6113  ;;  %v4534_v29 = vmul.f32 %v6112_v33, %v7865_v26 }
 0xf60   : > { %v4533_v20 = vmul.f32 %v6114_v21, %v7867_v41 }
 0xf61   : > { %v4549_v41 = vmul.f32 %v7890_v7, %v4534_v29 }
 0xf62   : > { %v4548_v0 = vmul.f32 %v7890_v7, %v4533_v20 }
 0xf75   : > { %v4500_v47 = vpop.xlane.xlu1 %4499 }
 0xf76   : > { %v4512_v51 = vmul.f32 0.03125, %v4500_v47  ;;  %v4497_v58 = vpop.xlane.xlu0 %4496 }
 0xf77   : > { %v4511_v48 = vmul.f32 0.03125, %v4497_v58 }
 0xf78   : > { %v4520_v25 = vadd.f32 1e-05, %v4512_v51 }
 0xf79   : > { %v4519_v9 = vadd.f32 1e-05, %v4511_v48 }
 0xf7a   : > { %6115 = vrsqrt.f32 %v4520_v25 }
 0xf7b   : > { %6117 = vrsqrt.f32 %v4519_v9 }
 0xf84   : > { %v6116_v37 = vpop.eup %6115 }
 0xf85   : > { %v6118_v22 = vpop.eup %6117  ;;  %v4536_v43 = vmul.f32 %v6116_v37, %v4472_v62 }
 0xf86   : > { %v4535_v10 = vmul.f32 %v6118_v22, %v4471_v12 }
 0xf87   : > { %v4506_v55 = vpop.xlane.xlu1 %4505  ;;  %v4551_v16 = vmul.f32 %v7890_v7, %v4536_v43 }
 0xf88   : > { %v4514_v42 = vmul.f32 0.03125, %v4506_v55  ;;  %v4503_v52 = vpop.xlane.xlu0 %4502  ;;  %v4550_v19 = vmul.f32 %v7890_v7, %v4535_v10 }
 0xf89   : > { %v4513_v56 = vmul.f32 0.03125, %v4503_v52 }
 0xf8a   : > { %v4522_v50 = vadd.f32 1e-05, %v4514_v42 }
 0xf8b   : > { %v4521_v39 = vadd.f32 1e-05, %v4513_v56 }
 0xf8c   : > { %6119 = vrsqrt.f32 %v4522_v50  ;;  %v4555_v26 = vpop.permute.xlu0 %4554 }
 0xf8d   : > { %6121 = vrsqrt.f32 %v4521_v39  ;;  %v4557_v60 = vadd.f32 %v4555_v26, %v4546_v34  ;;  %v4558_v27 = vadd.f32 %v4555_v26, %v4547_v49  ;;  %v4559_v4 = vadd.f32 %v4555_v26, %v4548_v0 }
 0xf8e   : > { %v4560_v5 = vadd.f32 %v4555_v26, %v4549_v41  ;;  %v4561_v62 = vadd.f32 %v4555_v26, %v4550_v19  ;;  %v4562_v12 = vadd.f32 %v4555_v26, %v4551_v16 }
 0xf8f   : > { %4565 = vst.msk [vmem:[%s421_s26] sm:$0xff] %vm503_vm0, %v4557_v60  ;;  %4566 = vst.msk [vmem:[%s421_s26 + $0x8] sm:$0xff] %vm503_vm0, %v4558_v27 }
 0xf90   : > { %4567 = vst.msk [vmem:[%s421_s26 + $0x10] sm:$0xff] %vm503_vm0, %v4559_v4  ;;  %4568 = vst.msk [vmem:[%s421_s26 + $0x18] sm:$0xff] %vm503_vm0, %v4560_v5 }
 0xf91   : > { %4569 = vst.msk [vmem:[%s421_s26 + $0x20] sm:$0xff] %vm503_vm0, %v4561_v62  ;;  %4570 = vst.msk [vmem:[%s421_s26 + $0x28] sm:$0xff] %vm503_vm0, %v4562_v12 }
 0xf96   : > { %v6120_v11 = vpop.eup %6119 }
 0xf97   : > { %v6122_v57 = vpop.eup %6121  ;;  %v4538_v3 = vmul.f32 %v6120_v11, %v7877_v30 }
 0xf98   : > { %v4537_v61 = vmul.f32 %v6122_v57, %v7879_v24 }
 0xf99   : > { %v4553_v40 = vmul.f32 %v7890_v7, %v4538_v3 }
 0xf9a   : > { %v4552_v2 = vmul.f32 %v7890_v7, %v4537_v61 }
 0xf9b   : > { %v4564_v36 = vadd.f32 %v4555_v26, %v4553_v40 }
 0xf9c   : > { %v4563_v35 = vadd.f32 %v4555_v26, %v4552_v2 }
 0xf9d   : > { %4572 = vst.msk [vmem:[%s421_s26 + $0x38] sm:$0xff] %vm503_vm0, %v4564_v36 }
 0xf9e   : > { %4571 = vst.msk [vmem:[%s421_s26 + $0x30] sm:$0xff] %vm503_vm0, %v4563_v35 }
 0xf9f PF: > { %p11_p9 = scmp.ge.s32.totalorder %s6225_s19, 4   ;;  %s7938_s15 = smov %s6174_s16 }
 0xfa0   : > { %s7939_s16 = smov %s6234_s22  ;;  %s7940_s17 = smov %s6225_s19 }
 0xfa1   :  { %13 = sbr.rel (!%p11_p9) target bundleno = 2 (0x2), region = 114 }

</bundles_post_ra>
